<compile_context>
chip_gen: v7x
topology: tpu7x:2x2x1
jax: 0.10.0
libtpu: 0.0.40
codegen_flags: <defaults>
</compile_context>

<pallas_src>
import numpy as np
import jax
import jax.numpy as jnp
from jax.experimental import pallas as pl
from jax.experimental.pallas import tpu as pltpu

EPS = 1e-5
LATENT = 64
LANE = 128
CHANS = ((3, 8), (8, 16), (16, 32), (32, 64))


def _vmem():
    return pl.BlockSpec(memory_space=pltpu.MemorySpace.VMEM)


def _smem():
    return pl.BlockSpec(memory_space=pltpu.MemorySpace.SMEM)


def _conv_out(n):
    return (n - 3) // 2 + 1


# ------------------------------ fused kernel ------------------------------- #

def _prelu(y, a):
    return jnp.where(y > 0, y, a * y)


def _conv3x3s2(act, r_ref, bw_ref):
    """3x3 / stride-2 VALID conv on an [N*H, W*Cin] activation slab.

    r_ref[dy]  : [N*Ho, N*H]       0/1 row selection (input row 2i+dy per item)
    bw_ref[dy] : [W*Cin, Wo*Cout]  banded weight (stride-2 window along W)
    returns    : [N*Ho, Wo*Cout]
    """
    y = None
    for dy in range(3):
        rows = jnp.dot(r_ref[dy], act, preferred_element_type=jnp.float32)
        part = jnp.dot(rows, bw_ref[dy], preferred_element_type=jnp.float32)
        y = part if y is None else y + part
    return y


def _bn_prelu(y, s_ref, st_ref, gamma_ref, beta_ref, a):
    """Train-mode BatchNorm (biased var, eps=1e-5) folded to one scale/shift
    pass, then PReLU.  Columns of y are (w_out, channel) flattened; s / st
    pool / broadcast the channel axis via small matmuls."""
    s = s_ref[...]                              # [Wo*C, C]
    st = st_ref[...]                            # [C, Wo*C]
    rows = y.shape[0]                           # N*Ho
    wo = s.shape[0] // s.shape[1]
    inv_count = 1.0 / float(rows * wo)

    mean = jnp.dot(jnp.sum(y, axis=0, keepdims=True), s,
                   preferred_element_type=jnp.float32) * inv_count       # [1, C]
    mean_cols = jnp.dot(mean, st, preferred_element_type=jnp.float32)    # [1, Wo*C]
    centered = y - mean_cols
    var = jnp.dot(jnp.sum(centered * centered, axis=0, keepdims=True), s,
                  preferred_element_type=jnp.float32) * inv_count        # [1, C]

    scale = gamma_ref[...] * jax.lax.rsqrt(var + EPS)                    # [1, C]
    shift = beta_ref[...] - mean * scale
    scale_cols = jnp.dot(scale, st, preferred_element_type=jnp.float32)
    shift_cols = jnp.dot(shift, st, preferred_element_type=jnp.float32)
    return _prelu(y * scale_cols + shift_cols, a)


def fused_encoder_kernel(a_ref, x_ref,
                         r1, bw1, s1, st1, g1, be1,
                         r2, bw2, s2, st2, g2, be2,
                         r3, bw3, s3, st3, g3, be3,
                         r4, bw4, bias4,
                         wl, bl, gp,
                         o_ref):
    act = x_ref[...]                                          # [N*64, 64*3]

    # Layers 1-3: conv -> BN(batch stats) -> PReLU, fully on-chip.
    for idx, (r, bw, s, st, g, be) in enumerate(
            ((r1, bw1, s1, st1, g1, be1),
             (r2, bw2, s2, st2, g2, be2),
             (r3, bw3, s3, st3, g3, be3))):
        y = _conv3x3s2(act, r, bw)
        act = _bn_prelu(y, s, st, g, be, a_ref[idx])

    # Layer 4: conv + bias + PReLU.
    y4 = _conv3x3s2(act, r4, bw4) + bias4[...]                # [N*3, 3*64]
    y4 = _prelu(y4, a_ref[3])

    # AvgPool2d(3) folded into the linear weight (wl already carries 1/9 and
    # the sum over the W positions); gp sums the 3 H positions per batch item.
    z = jnp.dot(y4, wl[...], preferred_element_type=jnp.float32)   # [N*3, 128]
    out = jnp.dot(gp[...], z, preferred_element_type=jnp.float32) + bl[...]
    o_ref[...] = jnp.maximum(out, 0.0)                        # lane-dense [N,128]


# ------------------------ weight-side preprocessing ------------------------ #

def prepare_operands(params, n, hw=64, latent=LATENT):
    """One-time prep: banded conv weights + constant 0/1 selection matrices."""
    ops = {}
    h = hw
    for l, (cin, cout) in enumerate(CHANS, start=1):
        ho = _conv_out(h)
        wconv = params[f"w{l}"].reshape(3, 3, cin, cout)            # HWIO

        # T[dx, w, j] = 1 iff w == 2*j + dx  (stride-2 window along W)
        T = np.zeros((3, h, ho), np.float32)
        for dx in range(3):
            for j in range(ho):
                T[dx, 2 * j + dx, j] = 1.0
        bw = jnp.einsum("xwj,yxio->ywijo", jnp.asarray(T), wconv)
        ops[f"bw{l}"] = bw.reshape(3, h * cin, ho * cout)

        # R[dy, b*ho+i, b*h+2i+dy] = 1  (stride-2 row selection per batch item)
        R = np.zeros((3, n * ho, n * h), np.float32)
        for dy in range(3):
            for b in range(n):
                for i in range(ho):
                    R[dy, b * ho + i, b * h + 2 * i + dy] = 1.0
        ops[f"r{l}"] = jnp.asarray(R)

        if l <= 3:
            S = np.kron(np.ones((ho, 1), np.float32),
                        np.eye(cout, dtype=np.float32))             # [ho*cout, cout]
            ops[f"s{l}"] = jnp.asarray(S)
            ops[f"st{l}"] = jnp.asarray(np.ascontiguousarray(S.T))
            ops[f"g{l}"] = params[f"gamma{l}"].reshape(1, cout)
            ops[f"be{l}"] = params[f"beta{l}"].reshape(1, cout)
        h = ho

    wo4 = h                                                         # == 3
    cout4 = CHANS[-1][1]
    ops["bias4"] = jnp.tile(params["b4"], (wo4,)).reshape(1, wo4 * cout4)

    # Fold AvgPool2d(wo4) into the linear layer; pad output width to 128 lanes.
    wl_fold = jnp.tile(params["wl"], (wo4, 1)) / float(wo4 * wo4)   # [wo4*64, latent]
    ops["wl"] = jnp.zeros((wo4 * cout4, LANE), jnp.float32).at[:, :latent].set(wl_fold)
    ops["bl"] = jnp.zeros((1, LANE), jnp.float32).at[:, :latent].set(
        params["bl"][None, :])

    G = np.zeros((n, n * wo4), np.float32)                          # row-group sum
    for b in range(n):
        G[b, b * wo4:(b + 1) * wo4] = 1.0
    ops["gp"] = jnp.asarray(G)

    ops["a"] = jnp.concatenate([params[f"a{l}"].reshape(1) for l in (1, 2, 3, 4)])
    return ops


# ------------------------------ forward pass ------------------------------- #

def visual_encoder_forward(x_nchw, ops, latent=LATENT):
    n, c, h, w = x_nchw.shape
    x = jnp.transpose(x_nchw, (0, 2, 3, 1)).astype(jnp.float32)     # NCHW -> NHWC
    x2d = x.reshape(n * h, w * c)                                   # [N*H, W*C]

    args = [ops["a"], x2d]
    in_specs = [_smem(), _vmem()]
    for l in (1, 2, 3):
        args += [ops[f"r{l}"], ops[f"bw{l}"], ops[f"s{l}"],
                 ops[f"st{l}"], ops[f"g{l}"], ops[f"be{l}"]]
        in_specs += [_vmem() for _ in range(6)]
    args += [ops["r4"], ops["bw4"], ops["bias4"], ops["wl"], ops["bl"], ops["gp"]]
    in_specs += [_vmem() for _ in range(6)]

    flops = 0
    for l in (1, 2, 3, 4):
        mo, mi = ops[f"r{l}"].shape[1], ops[f"r{l}"].shape[2]
        k, cols = ops[f"bw{l}"].shape[1], ops[f"bw{l}"].shape[2]
        flops += 3 * 2 * (mo * mi * k + mo * k * cols)
    flops += 2 * (ops["wl"].shape[0] * ops["wl"].shape[1] * ops["gp"].shape[1]
                  + ops["gp"].shape[0] * ops["gp"].shape[1] * ops["wl"].shape[1])
    bytes_accessed = sum(int(np.prod(a.shape)) * a.dtype.itemsize for a in args)
    bytes_accessed += n * LANE * 4

    out = pl.pallas_call(
        fused_encoder_kernel,
        out_shape=jax.ShapeDtypeStruct((n, LANE), jnp.float32),
        in_specs=in_specs,
        out_specs=_vmem(),
        compiler_params=pltpu.CompilerParams(vmem_limit_bytes=32 * 1024 * 1024),
        cost_estimate=pl.CostEstimate(flops=int(flops), transcendentals=64,
                                      bytes_accessed=int(bytes_accessed)),
    )(*args)
    return out[:, :latent]


# -------------------------- parameter construction ------------------------- #

def init_params(key, latent_size=LATENT):
    ks = jax.random.split(key, 12)
    p = {}
    for i, (cin, cout) in enumerate(CHANS[:3], start=1):
        k0, k1, k2 = ks[3 * (i - 1)], ks[3 * (i - 1) + 1], ks[3 * (i - 1) + 2]
        w = jax.random.normal(k0, (3, 3, cin, cout), jnp.float32) * 0.1
        p[f"w{i}"] = w.reshape(9 * cin, cout)
        p[f"gamma{i}"] = 1.0 + 0.1 * jax.random.normal(k1, (cout,), jnp.float32)
        p[f"beta{i}"] = 0.1 * jax.random.normal(k2, (cout,), jnp.float32)
        p[f"a{i}"] = jnp.array([0.25], jnp.float32)      # nn.PReLU() default init
    p["w4"] = (jax.random.normal(ks[9], (3, 3, 32, 64), jnp.float32) * 0.1).reshape(9 * 32, 64)
    p["b4"] = 0.1 * jax.random.normal(ks[10], (64,), jnp.float32)
    p["a4"] = jnp.array([0.25], jnp.float32)
    p["wl"] = jax.random.normal(ks[11], (64, latent_size), jnp.float32) * 0.1
    p["bl"] = jnp.zeros((latent_size,), jnp.float32)
    return p


# ------------------------------- reference --------------------------------- #

def reference_forward(x_nchw, params):
    x = jnp.transpose(x_nchw, (0, 2, 3, 1)).astype(jnp.float32)

    def conv(x, w_mat, cin, cout, stride=2):
        w = w_mat.reshape(3, 3, cin, cout)
        return jax.lax.conv_general_dilated(
            x, w, (stride, stride), "VALID",
            dimension_numbers=("NHWC", "HWIO", "NHWC"))

    def bn(y, gamma, beta):
        mean = jnp.mean(y, axis=(0, 1, 2), keepdims=True)
        var = jnp.mean((y - mean) ** 2, axis=(0, 1, 2), keepdims=True)
        return (y - mean) * jax.lax.rsqrt(var + EPS) * gamma + beta

    def prelu(y, a):
        return jnp.where(y > 0, y, a[0] * y)

    for i, (cin, cout) in enumerate(CHANS[:3], start=1):
        x = prelu(bn(conv(x, params[f"w{i}"], cin, cout),
                     params[f"gamma{i}"], params[f"beta{i}"]), params[f"a{i}"])
    x = prelu(conv(x, params["w4"], 32, 64) + params["b4"], params["a4"])
    pooled = jnp.mean(x, axis=(1, 2))                     # AvgPool2d(3) on 3x3
    y = pooled @ params["wl"] + params["bl"]
    return jnp.maximum(y, 0.0)


# --------------------------------- main ------------------------------------ #

if __name__ == "__main__":
    key = jax.random.PRNGKey(0)
    kx, kp = jax.random.split(key)
    # Smallest clean input: 64x64 -> 31 -> 15 -> 7 -> 3 -> AvgPool(3) -> 1x1x64.
    x = jax.random.normal(kx, (2, 3, 64, 64), jnp.float32)   # NCHW, like PyTorch
    params = init_params(kp, LATENT)

    ops = prepare_operands(params, n=x.shape[0], hw=x.shape[2], latent=LATENT)
    fwd = jax.jit(visual_encoder_forward)
    out = jax.block_until_ready(fwd(x, ops))
    assert out.shape == (2, LATENT), out.shape

    ref = jax.block_until_ready(reference_forward(x, params))
    assert jnp.allclose(out, ref, rtol=1e-2, atol=1e-2), (
        float(jnp.max(jnp.abs(out - ref))))

    print("KERNEL_OK")
</pallas_src>

<mosaic_0001>
module attributes {stable_mosaic.version = 11 : i64} {
  func.func @fused_encoder_kernel(%arg0: memref<4xf32, #tpu.memory_space<smem>>, %arg1: memref<128x192xf32, #tpu.memory_space<vmem>>, %arg2: memref<3x62x128xf32, #tpu.memory_space<vmem>>, %arg3: memref<3x192x248xf32, #tpu.memory_space<vmem>>, %arg4: memref<248x8xf32, #tpu.memory_space<vmem>>, %arg5: memref<8x248xf32, #tpu.memory_space<vmem>>, %arg6: memref<1x8xf32, #tpu.memory_space<vmem>>, %arg7: memref<1x8xf32, #tpu.memory_space<vmem>>, %arg8: memref<3x30x62xf32, #tpu.memory_space<vmem>>, %arg9: memref<3x248x240xf32, #tpu.memory_space<vmem>>, %arg10: memref<240x16xf32, #tpu.memory_space<vmem>>, %arg11: memref<16x240xf32, #tpu.memory_space<vmem>>, %arg12: memref<1x16xf32, #tpu.memory_space<vmem>>, %arg13: memref<1x16xf32, #tpu.memory_space<vmem>>, %arg14: memref<3x14x30xf32, #tpu.memory_space<vmem>>, %arg15: memref<3x240x224xf32, #tpu.memory_space<vmem>>, %arg16: memref<224x32xf32, #tpu.memory_space<vmem>>, %arg17: memref<32x224xf32, #tpu.memory_space<vmem>>, %arg18: memref<1x32xf32, #tpu.memory_space<vmem>>, %arg19: memref<1x32xf32, #tpu.memory_space<vmem>>, %arg20: memref<3x6x14xf32, #tpu.memory_space<vmem>>, %arg21: memref<3x224x192xf32, #tpu.memory_space<vmem>>, %arg22: memref<1x192xf32, #tpu.memory_space<vmem>>, %arg23: memref<192x128xf32, #tpu.memory_space<vmem>>, %arg24: memref<1x128xf32, #tpu.memory_space<vmem>>, %arg25: memref<2x6xf32, #tpu.memory_space<vmem>>, %arg26: memref<2x128xf32, #tpu.memory_space<vmem>>) attributes {dimension_semantics = [], scalar_prefetch = 0 : i64, scratch_operands = 0 : i64, tpu.core_type = #tpu.core_type<tc>} {
    %c0 = arith.constant 0 : index
    %c0_0 = arith.constant 0 : index
    %0 = vector.load %arg1[%c0, %c0_0] : memref<128x192xf32, #tpu.memory_space<vmem>>, vector<128x192xf32>
    %c0_1 = arith.constant 0 : index
    %c0_2 = arith.constant 0 : index
    %c0_3 = arith.constant 0 : index
    %1 = vector.load %arg2[%c0_1, %c0_2, %c0_3] : memref<3x62x128xf32, #tpu.memory_space<vmem>>, vector<1x62x128xf32>
    %2 = vector.shape_cast %1 : vector<1x62x128xf32> to vector<62x128xf32>
    %cst = arith.constant dense<0.000000e+00> : vector<62x192xf32>
    %3 = tpu.matmul %2, %0, %cst {dimension_numbers = #tpu.dot_dimension_numbers<[1], [0], [0], [1], [0, 0, 1, 1], [], []>} : vector<62x128xf32>, vector<128x192xf32>, vector<62x192xf32> -> vector<62x192xf32>
    %c0_4 = arith.constant 0 : index
    %c0_5 = arith.constant 0 : index
    %c0_6 = arith.constant 0 : index
    %4 = vector.load %arg3[%c0_4, %c0_5, %c0_6] : memref<3x192x248xf32, #tpu.memory_space<vmem>>, vector<1x192x248xf32>
    %5 = vector.shape_cast %4 : vector<1x192x248xf32> to vector<192x248xf32>
    %cst_7 = arith.constant dense<0.000000e+00> : vector<62x248xf32>
    %6 = tpu.matmul %3, %5, %cst_7 {dimension_numbers = #tpu.dot_dimension_numbers<[1], [0], [0], [1], [0, 0, 1, 1], [], []>} : vector<62x192xf32>, vector<192x248xf32>, vector<62x248xf32> -> vector<62x248xf32>
    %c1 = arith.constant 1 : index
    %c0_8 = arith.constant 0 : index
    %c0_9 = arith.constant 0 : index
    %7 = vector.load %arg2[%c1, %c0_8, %c0_9] : memref<3x62x128xf32, #tpu.memory_space<vmem>>, vector<1x62x128xf32>
    %8 = vector.shape_cast %7 : vector<1x62x128xf32> to vector<62x128xf32>
    %cst_10 = arith.constant dense<0.000000e+00> : vector<62x192xf32>
    %9 = tpu.matmul %8, %0, %cst_10 {dimension_numbers = #tpu.dot_dimension_numbers<[1], [0], [0], [1], [0, 0, 1, 1], [], []>} : vector<62x128xf32>, vector<128x192xf32>, vector<62x192xf32> -> vector<62x192xf32>
    %c1_11 = arith.constant 1 : index
    %c0_12 = arith.constant 0 : index
    %c0_13 = arith.constant 0 : index
    %10 = vector.load %arg3[%c1_11, %c0_12, %c0_13] : memref<3x192x248xf32, #tpu.memory_space<vmem>>, vector<1x192x248xf32>
    %11 = vector.shape_cast %10 : vector<1x192x248xf32> to vector<192x248xf32>
    %cst_14 = arith.constant dense<0.000000e+00> : vector<62x248xf32>
    %12 = tpu.matmul %9, %11, %cst_14 {dimension_numbers = #tpu.dot_dimension_numbers<[1], [0], [0], [1], [0, 0, 1, 1], [], []>} : vector<62x192xf32>, vector<192x248xf32>, vector<62x248xf32> -> vector<62x248xf32>
    %13 = arith.addf %6, %12 : vector<62x248xf32>
    %c2 = arith.constant 2 : index
    %c0_15 = arith.constant 0 : index
    %c0_16 = arith.constant 0 : index
    %14 = vector.load %arg2[%c2, %c0_15, %c0_16] : memref<3x62x128xf32, #tpu.memory_space<vmem>>, vector<1x62x128xf32>
    %15 = vector.shape_cast %14 : vector<1x62x128xf32> to vector<62x128xf32>
    %cst_17 = arith.constant dense<0.000000e+00> : vector<62x192xf32>
    %16 = tpu.matmul %15, %0, %cst_17 {dimension_numbers = #tpu.dot_dimension_numbers<[1], [0], [0], [1], [0, 0, 1, 1], [], []>} : vector<62x128xf32>, vector<128x192xf32>, vector<62x192xf32> -> vector<62x192xf32>
    %c2_18 = arith.constant 2 : index
    %c0_19 = arith.constant 0 : index
    %c0_20 = arith.constant 0 : index
    %17 = vector.load %arg3[%c2_18, %c0_19, %c0_20] : memref<3x192x248xf32, #tpu.memory_space<vmem>>, vector<1x192x248xf32>
    %18 = vector.shape_cast %17 : vector<1x192x248xf32> to vector<192x248xf32>
    %cst_21 = arith.constant dense<0.000000e+00> : vector<62x248xf32>
    %19 = tpu.matmul %16, %18, %cst_21 {dimension_numbers = #tpu.dot_dimension_numbers<[1], [0], [0], [1], [0, 0, 1, 1], [], []>} : vector<62x192xf32>, vector<192x248xf32>, vector<62x248xf32> -> vector<62x248xf32>
    %20 = arith.addf %13, %19 : vector<62x248xf32>
    %c0_22 = arith.constant 0 : index
    %21 = memref.load %arg0[%c0_22] : memref<4xf32, #tpu.memory_space<smem>>
    %c0_23 = arith.constant 0 : index
    %c0_24 = arith.constant 0 : index
    %22 = vector.load %arg4[%c0_23, %c0_24] : memref<248x8xf32, #tpu.memory_space<vmem>>, vector<248x8xf32>
    %c0_25 = arith.constant 0 : index
    %c0_26 = arith.constant 0 : index
    %23 = vector.load %arg5[%c0_25, %c0_26] : memref<8x248xf32, #tpu.memory_space<vmem>>, vector<8x248xf32>
    %cst_27 = arith.constant dense<0.000000e+00> : vector<248xf32>
    %24 = vector.multi_reduction <add>, %20, %cst_27 [0] : vector<62x248xf32> to vector<248xf32>
    %25 = vector.shape_cast %24 : vector<248xf32> to vector<1x248xf32>
    %cst_28 = arith.constant dense<0.000000e+00> : vector<1x8xf32>
    %26 = tpu.matmul %25, %22, %cst_28 {dimension_numbers = #tpu.dot_dimension_numbers<[1], [0], [0], [1], [0, 0, 1, 1], [], []>} : vector<1x248xf32>, vector<248x8xf32>, vector<1x8xf32> -> vector<1x8xf32>
    %cst_29 = arith.constant 5.20291389E-4 : f32
    %27 = vector.broadcast %cst_29 : f32 to vector<1x8xf32>
    %28 = arith.mulf %26, %27 : vector<1x8xf32>
    %cst_30 = arith.constant dense<0.000000e+00> : vector<1x248xf32>
    %29 = tpu.matmul %28, %23, %cst_30 {dimension_numbers = #tpu.dot_dimension_numbers<[1], [0], [0], [1], [0, 0, 1, 1], [], []>} : vector<1x8xf32>, vector<8x248xf32>, vector<1x248xf32> -> vector<1x248xf32>
    %30 = vector.broadcast %29 : vector<1x248xf32> to vector<62x248xf32>
    %31 = arith.subf %20, %30 : vector<62x248xf32>
    %32 = arith.mulf %31, %31 : vector<62x248xf32>
    %cst_31 = arith.constant dense<0.000000e+00> : vector<248xf32>
    %33 = vector.multi_reduction <add>, %32, %cst_31 [0] : vector<62x248xf32> to vector<248xf32>
    %34 = vector.shape_cast %33 : vector<248xf32> to vector<1x248xf32>
    %cst_32 = arith.constant dense<0.000000e+00> : vector<1x8xf32>
    %35 = tpu.matmul %34, %22, %cst_32 {dimension_numbers = #tpu.dot_dimension_numbers<[1], [0], [0], [1], [0, 0, 1, 1], [], []>} : vector<1x248xf32>, vector<248x8xf32>, vector<1x8xf32> -> vector<1x8xf32>
    %cst_33 = arith.constant 5.20291389E-4 : f32
    %36 = vector.broadcast %cst_33 : f32 to vector<1x8xf32>
    %37 = arith.mulf %35, %36 : vector<1x8xf32>
    %c0_34 = arith.constant 0 : index
    %c0_35 = arith.constant 0 : index
    %38 = vector.load %arg6[%c0_34, %c0_35] : memref<1x8xf32, #tpu.memory_space<vmem>>, vector<1x8xf32>
    %cst_36 = arith.constant 9.99999974E-6 : f32
    %39 = vector.broadcast %cst_36 : f32 to vector<1x8xf32>
    %40 = arith.addf %37, %39 : vector<1x8xf32>
    %41 = math.rsqrt %40 : vector<1x8xf32>
    %42 = arith.mulf %38, %41 : vector<1x8xf32>
    %c0_37 = arith.constant 0 : index
    %c0_38 = arith.constant 0 : index
    %43 = vector.load %arg7[%c0_37, %c0_38] : memref<1x8xf32, #tpu.memory_space<vmem>>, vector<1x8xf32>
    %44 = arith.mulf %28, %42 : vector<1x8xf32>
    %45 = arith.subf %43, %44 : vector<1x8xf32>
    %cst_39 = arith.constant dense<0.000000e+00> : vector<1x248xf32>
    %46 = tpu.matmul %42, %23, %cst_39 {dimension_numbers = #tpu.dot_dimension_numbers<[1], [0], [0], [1], [0, 0, 1, 1], [], []>} : vector<1x8xf32>, vector<8x248xf32>, vector<1x248xf32> -> vector<1x248xf32>
    %cst_40 = arith.constant dense<0.000000e+00> : vector<1x248xf32>
    %47 = tpu.matmul %45, %23, %cst_40 {dimension_numbers = #tpu.dot_dimension_numbers<[1], [0], [0], [1], [0, 0, 1, 1], [], []>} : vector<1x8xf32>, vector<8x248xf32>, vector<1x248xf32> -> vector<1x248xf32>
    %48 = vector.broadcast %46 : vector<1x248xf32> to vector<62x248xf32>
    %49 = arith.mulf %20, %48 : vector<62x248xf32>
    %50 = vector.broadcast %47 : vector<1x248xf32> to vector<62x248xf32>
    %51 = arith.addf %49, %50 : vector<62x248xf32>
    %cst_41 = arith.constant 0.000000e+00 : f32
    %52 = vector.broadcast %cst_41 : f32 to vector<62x248xf32>
    %53 = arith.cmpf ogt, %51, %52 : vector<62x248xf32>
    %54 = vector.broadcast %21 : f32 to vector<62x248xf32>
    %55 = arith.mulf %54, %51 : vector<62x248xf32>
    %56 = arith.select %53, %51, %55 : vector<62x248xi1>, vector<62x248xf32>
    %c0_42 = arith.constant 0 : index
    %c0_43 = arith.constant 0 : index
    %c0_44 = arith.constant 0 : index
    %57 = vector.load %arg8[%c0_42, %c0_43, %c0_44] : memref<3x30x62xf32, #tpu.memory_space<vmem>>, vector<1x30x62xf32>
    %58 = vector.shape_cast %57 : vector<1x30x62xf32> to vector<30x62xf32>
    %cst_45 = arith.constant dense<0.000000e+00> : vector<30x248xf32>
    %59 = tpu.matmul %58, %56, %cst_45 {dimension_numbers = #tpu.dot_dimension_numbers<[1], [0], [0], [1], [0, 0, 1, 1], [], []>} : vector<30x62xf32>, vector<62x248xf32>, vector<30x248xf32> -> vector<30x248xf32>
    %c0_46 = arith.constant 0 : index
    %c0_47 = arith.constant 0 : index
    %c0_48 = arith.constant 0 : index
    %60 = vector.load %arg9[%c0_46, %c0_47, %c0_48] : memref<3x248x240xf32, #tpu.memory_space<vmem>>, vector<1x248x240xf32>
    %61 = vector.shape_cast %60 : vector<1x248x240xf32> to vector<248x240xf32>
    %cst_49 = arith.constant dense<0.000000e+00> : vector<30x240xf32>
    %62 = tpu.matmul %59, %61, %cst_49 {dimension_numbers = #tpu.dot_dimension_numbers<[1], [0], [0], [1], [0, 0, 1, 1], [], []>} : vector<30x248xf32>, vector<248x240xf32>, vector<30x240xf32> -> vector<30x240xf32>
    %c1_50 = arith.constant 1 : index
    %c0_51 = arith.constant 0 : index
    %c0_52 = arith.constant 0 : index
    %63 = vector.load %arg8[%c1_50, %c0_51, %c0_52] : memref<3x30x62xf32, #tpu.memory_space<vmem>>, vector<1x30x62xf32>
    %64 = vector.shape_cast %63 : vector<1x30x62xf32> to vector<30x62xf32>
    %cst_53 = arith.constant dense<0.000000e+00> : vector<30x248xf32>
    %65 = tpu.matmul %64, %56, %cst_53 {dimension_numbers = #tpu.dot_dimension_numbers<[1], [0], [0], [1], [0, 0, 1, 1], [], []>} : vector<30x62xf32>, vector<62x248xf32>, vector<30x248xf32> -> vector<30x248xf32>
    %c1_54 = arith.constant 1 : index
    %c0_55 = arith.constant 0 : index
    %c0_56 = arith.constant 0 : index
    %66 = vector.load %arg9[%c1_54, %c0_55, %c0_56] : memref<3x248x240xf32, #tpu.memory_space<vmem>>, vector<1x248x240xf32>
    %67 = vector.shape_cast %66 : vector<1x248x240xf32> to vector<248x240xf32>
    %cst_57 = arith.constant dense<0.000000e+00> : vector<30x240xf32>
    %68 = tpu.matmul %65, %67, %cst_57 {dimension_numbers = #tpu.dot_dimension_numbers<[1], [0], [0], [1], [0, 0, 1, 1], [], []>} : vector<30x248xf32>, vector<248x240xf32>, vector<30x240xf32> -> vector<30x240xf32>
    %69 = arith.addf %62, %68 : vector<30x240xf32>
    %c2_58 = arith.constant 2 : index
    %c0_59 = arith.constant 0 : index
    %c0_60 = arith.constant 0 : index
    %70 = vector.load %arg8[%c2_58, %c0_59, %c0_60] : memref<3x30x62xf32, #tpu.memory_space<vmem>>, vector<1x30x62xf32>
    %71 = vector.shape_cast %70 : vector<1x30x62xf32> to vector<30x62xf32>
    %cst_61 = arith.constant dense<0.000000e+00> : vector<30x248xf32>
    %72 = tpu.matmul %71, %56, %cst_61 {dimension_numbers = #tpu.dot_dimension_numbers<[1], [0], [0], [1], [0, 0, 1, 1], [], []>} : vector<30x62xf32>, vector<62x248xf32>, vector<30x248xf32> -> vector<30x248xf32>
    %c2_62 = arith.constant 2 : index
    %c0_63 = arith.constant 0 : index
    %c0_64 = arith.constant 0 : index
    %73 = vector.load %arg9[%c2_62, %c0_63, %c0_64] : memref<3x248x240xf32, #tpu.memory_space<vmem>>, vector<1x248x240xf32>
    %74 = vector.shape_cast %73 : vector<1x248x240xf32> to vector<248x240xf32>
    %cst_65 = arith.constant dense<0.000000e+00> : vector<30x240xf32>
    %75 = tpu.matmul %72, %74, %cst_65 {dimension_numbers = #tpu.dot_dimension_numbers<[1], [0], [0], [1], [0, 0, 1, 1], [], []>} : vector<30x248xf32>, vector<248x240xf32>, vector<30x240xf32> -> vector<30x240xf32>
    %76 = arith.addf %69, %75 : vector<30x240xf32>
    %c1_66 = arith.constant 1 : index
    %77 = memref.load %arg0[%c1_66] : memref<4xf32, #tpu.memory_space<smem>>
    %c0_67 = arith.constant 0 : index
    %c0_68 = arith.constant 0 : index
    %78 = vector.load %arg10[%c0_67, %c0_68] : memref<240x16xf32, #tpu.memory_space<vmem>>, vector<240x16xf32>
    %c0_69 = arith.constant 0 : index
    %c0_70 = arith.constant 0 : index
    %79 = vector.load %arg11[%c0_69, %c0_70] : memref<16x240xf32, #tpu.memory_space<vmem>>, vector<16x240xf32>
    %cst_71 = arith.constant dense<0.000000e+00> : vector<240xf32>
    %80 = vector.multi_reduction <add>, %76, %cst_71 [0] : vector<30x240xf32> to vector<240xf32>
    %81 = vector.shape_cast %80 : vector<240xf32> to vector<1x240xf32>
    %cst_72 = arith.constant dense<0.000000e+00> : vector<1x16xf32>
    %82 = tpu.matmul %81, %78, %cst_72 {dimension_numbers = #tpu.dot_dimension_numbers<[1], [0], [0], [1], [0, 0, 1, 1], [], []>} : vector<1x240xf32>, vector<240x16xf32>, vector<1x16xf32> -> vector<1x16xf32>
    %cst_73 = arith.constant 0.00222222228 : f32
    %83 = vector.broadcast %cst_73 : f32 to vector<1x16xf32>
    %84 = arith.mulf %82, %83 : vector<1x16xf32>
    %cst_74 = arith.constant dense<0.000000e+00> : vector<1x240xf32>
    %85 = tpu.matmul %84, %79, %cst_74 {dimension_numbers = #tpu.dot_dimension_numbers<[1], [0], [0], [1], [0, 0, 1, 1], [], []>} : vector<1x16xf32>, vector<16x240xf32>, vector<1x240xf32> -> vector<1x240xf32>
    %86 = vector.broadcast %85 : vector<1x240xf32> to vector<30x240xf32>
    %87 = arith.subf %76, %86 : vector<30x240xf32>
    %88 = arith.mulf %87, %87 : vector<30x240xf32>
    %cst_75 = arith.constant dense<0.000000e+00> : vector<240xf32>
    %89 = vector.multi_reduction <add>, %88, %cst_75 [0] : vector<30x240xf32> to vector<240xf32>
    %90 = vector.shape_cast %89 : vector<240xf32> to vector<1x240xf32>
    %cst_76 = arith.constant dense<0.000000e+00> : vector<1x16xf32>
    %91 = tpu.matmul %90, %78, %cst_76 {dimension_numbers = #tpu.dot_dimension_numbers<[1], [0], [0], [1], [0, 0, 1, 1], [], []>} : vector<1x240xf32>, vector<240x16xf32>, vector<1x16xf32> -> vector<1x16xf32>
    %cst_77 = arith.constant 0.00222222228 : f32
    %92 = vector.broadcast %cst_77 : f32 to vector<1x16xf32>
    %93 = arith.mulf %91, %92 : vector<1x16xf32>
    %c0_78 = arith.constant 0 : index
    %c0_79 = arith.constant 0 : index
    %94 = vector.load %arg12[%c0_78, %c0_79] : memref<1x16xf32, #tpu.memory_space<vmem>>, vector<1x16xf32>
    %cst_80 = arith.constant 9.99999974E-6 : f32
    %95 = vector.broadcast %cst_80 : f32 to vector<1x16xf32>
    %96 = arith.addf %93, %95 : vector<1x16xf32>
    %97 = math.rsqrt %96 : vector<1x16xf32>
    %98 = arith.mulf %94, %97 : vector<1x16xf32>
    %c0_81 = arith.constant 0 : index
    %c0_82 = arith.constant 0 : index
    %99 = vector.load %arg13[%c0_81, %c0_82] : memref<1x16xf32, #tpu.memory_space<vmem>>, vector<1x16xf32>
    %100 = arith.mulf %84, %98 : vector<1x16xf32>
    %101 = arith.subf %99, %100 : vector<1x16xf32>
    %cst_83 = arith.constant dense<0.000000e+00> : vector<1x240xf32>
    %102 = tpu.matmul %98, %79, %cst_83 {dimension_numbers = #tpu.dot_dimension_numbers<[1], [0], [0], [1], [0, 0, 1, 1], [], []>} : vector<1x16xf32>, vector<16x240xf32>, vector<1x240xf32> -> vector<1x240xf32>
    %cst_84 = arith.constant dense<0.000000e+00> : vector<1x240xf32>
    %103 = tpu.matmul %101, %79, %cst_84 {dimension_numbers = #tpu.dot_dimension_numbers<[1], [0], [0], [1], [0, 0, 1, 1], [], []>} : vector<1x16xf32>, vector<16x240xf32>, vector<1x240xf32> -> vector<1x240xf32>
    %104 = vector.broadcast %102 : vector<1x240xf32> to vector<30x240xf32>
    %105 = arith.mulf %76, %104 : vector<30x240xf32>
    %106 = vector.broadcast %103 : vector<1x240xf32> to vector<30x240xf32>
    %107 = arith.addf %105, %106 : vector<30x240xf32>
    %cst_85 = arith.constant 0.000000e+00 : f32
    %108 = vector.broadcast %cst_85 : f32 to vector<30x240xf32>
    %109 = arith.cmpf ogt, %107, %108 : vector<30x240xf32>
    %110 = vector.broadcast %77 : f32 to vector<30x240xf32>
    %111 = arith.mulf %110, %107 : vector<30x240xf32>
    %112 = arith.select %109, %107, %111 : vector<30x240xi1>, vector<30x240xf32>
    %c0_86 = arith.constant 0 : index
    %c0_87 = arith.constant 0 : index
    %c0_88 = arith.constant 0 : index
    %113 = vector.load %arg14[%c0_86, %c0_87, %c0_88] : memref<3x14x30xf32, #tpu.memory_space<vmem>>, vector<1x14x30xf32>
    %114 = vector.shape_cast %113 : vector<1x14x30xf32> to vector<14x30xf32>
    %cst_89 = arith.constant dense<0.000000e+00> : vector<14x240xf32>
    %115 = tpu.matmul %114, %112, %cst_89 {dimension_numbers = #tpu.dot_dimension_numbers<[1], [0], [0], [1], [0, 0, 1, 1], [], []>} : vector<14x30xf32>, vector<30x240xf32>, vector<14x240xf32> -> vector<14x240xf32>
    %c0_90 = arith.constant 0 : index
    %c0_91 = arith.constant 0 : index
    %c0_92 = arith.constant 0 : index
    %116 = vector.load %arg15[%c0_90, %c0_91, %c0_92] : memref<3x240x224xf32, #tpu.memory_space<vmem>>, vector<1x240x224xf32>
    %117 = vector.shape_cast %116 : vector<1x240x224xf32> to vector<240x224xf32>
    %cst_93 = arith.constant dense<0.000000e+00> : vector<14x224xf32>
    %118 = tpu.matmul %115, %117, %cst_93 {dimension_numbers = #tpu.dot_dimension_numbers<[1], [0], [0], [1], [0, 0, 1, 1], [], []>} : vector<14x240xf32>, vector<240x224xf32>, vector<14x224xf32> -> vector<14x224xf32>
    %c1_94 = arith.constant 1 : index
    %c0_95 = arith.constant 0 : index
    %c0_96 = arith.constant 0 : index
    %119 = vector.load %arg14[%c1_94, %c0_95, %c0_96] : memref<3x14x30xf32, #tpu.memory_space<vmem>>, vector<1x14x30xf32>
    %120 = vector.shape_cast %119 : vector<1x14x30xf32> to vector<14x30xf32>
    %cst_97 = arith.constant dense<0.000000e+00> : vector<14x240xf32>
    %121 = tpu.matmul %120, %112, %cst_97 {dimension_numbers = #tpu.dot_dimension_numbers<[1], [0], [0], [1], [0, 0, 1, 1], [], []>} : vector<14x30xf32>, vector<30x240xf32>, vector<14x240xf32> -> vector<14x240xf32>
    %c1_98 = arith.constant 1 : index
    %c0_99 = arith.constant 0 : index
    %c0_100 = arith.constant 0 : index
    %122 = vector.load %arg15[%c1_98, %c0_99, %c0_100] : memref<3x240x224xf32, #tpu.memory_space<vmem>>, vector<1x240x224xf32>
    %123 = vector.shape_cast %122 : vector<1x240x224xf32> to vector<240x224xf32>
    %cst_101 = arith.constant dense<0.000000e+00> : vector<14x224xf32>
    %124 = tpu.matmul %121, %123, %cst_101 {dimension_numbers = #tpu.dot_dimension_numbers<[1], [0], [0], [1], [0, 0, 1, 1], [], []>} : vector<14x240xf32>, vector<240x224xf32>, vector<14x224xf32> -> vector<14x224xf32>
    %125 = arith.addf %118, %124 : vector<14x224xf32>
    %c2_102 = arith.constant 2 : index
    %c0_103 = arith.constant 0 : index
    %c0_104 = arith.constant 0 : index
    %126 = vector.load %arg14[%c2_102, %c0_103, %c0_104] : memref<3x14x30xf32, #tpu.memory_space<vmem>>, vector<1x14x30xf32>
    %127 = vector.shape_cast %126 : vector<1x14x30xf32> to vector<14x30xf32>
    %cst_105 = arith.constant dense<0.000000e+00> : vector<14x240xf32>
    %128 = tpu.matmul %127, %112, %cst_105 {dimension_numbers = #tpu.dot_dimension_numbers<[1], [0], [0], [1], [0, 0, 1, 1], [], []>} : vector<14x30xf32>, vector<30x240xf32>, vector<14x240xf32> -> vector<14x240xf32>
    %c2_106 = arith.constant 2 : index
    %c0_107 = arith.constant 0 : index
    %c0_108 = arith.constant 0 : index
    %129 = vector.load %arg15[%c2_106, %c0_107, %c0_108] : memref<3x240x224xf32, #tpu.memory_space<vmem>>, vector<1x240x224xf32>
    %130 = vector.shape_cast %129 : vector<1x240x224xf32> to vector<240x224xf32>
    %cst_109 = arith.constant dense<0.000000e+00> : vector<14x224xf32>
    %131 = tpu.matmul %128, %130, %cst_109 {dimension_numbers = #tpu.dot_dimension_numbers<[1], [0], [0], [1], [0, 0, 1, 1], [], []>} : vector<14x240xf32>, vector<240x224xf32>, vector<14x224xf32> -> vector<14x224xf32>
    %132 = arith.addf %125, %131 : vector<14x224xf32>
    %c2_110 = arith.constant 2 : index
    %133 = memref.load %arg0[%c2_110] : memref<4xf32, #tpu.memory_space<smem>>
    %c0_111 = arith.constant 0 : index
    %c0_112 = arith.constant 0 : index
    %134 = vector.load %arg16[%c0_111, %c0_112] : memref<224x32xf32, #tpu.memory_space<vmem>>, vector<224x32xf32>
    %c0_113 = arith.constant 0 : index
    %c0_114 = arith.constant 0 : index
    %135 = vector.load %arg17[%c0_113, %c0_114] : memref<32x224xf32, #tpu.memory_space<vmem>>, vector<32x224xf32>
    %cst_115 = arith.constant dense<0.000000e+00> : vector<224xf32>
    %136 = vector.multi_reduction <add>, %132, %cst_115 [0] : vector<14x224xf32> to vector<224xf32>
    %137 = vector.shape_cast %136 : vector<224xf32> to vector<1x224xf32>
    %cst_116 = arith.constant dense<0.000000e+00> : vector<1x32xf32>
    %138 = tpu.matmul %137, %134, %cst_116 {dimension_numbers = #tpu.dot_dimension_numbers<[1], [0], [0], [1], [0, 0, 1, 1], [], []>} : vector<1x224xf32>, vector<224x32xf32>, vector<1x32xf32> -> vector<1x32xf32>
    %cst_117 = arith.constant 0.0102040814 : f32
    %139 = vector.broadcast %cst_117 : f32 to vector<1x32xf32>
    %140 = arith.mulf %138, %139 : vector<1x32xf32>
    %cst_118 = arith.constant dense<0.000000e+00> : vector<1x224xf32>
    %141 = tpu.matmul %140, %135, %cst_118 {dimension_numbers = #tpu.dot_dimension_numbers<[1], [0], [0], [1], [0, 0, 1, 1], [], []>} : vector<1x32xf32>, vector<32x224xf32>, vector<1x224xf32> -> vector<1x224xf32>
    %142 = vector.broadcast %141 : vector<1x224xf32> to vector<14x224xf32>
    %143 = arith.subf %132, %142 : vector<14x224xf32>
    %144 = arith.mulf %143, %143 : vector<14x224xf32>
    %cst_119 = arith.constant dense<0.000000e+00> : vector<224xf32>
    %145 = vector.multi_reduction <add>, %144, %cst_119 [0] : vector<14x224xf32> to vector<224xf32>
    %146 = vector.shape_cast %145 : vector<224xf32> to vector<1x224xf32>
    %cst_120 = arith.constant dense<0.000000e+00> : vector<1x32xf32>
    %147 = tpu.matmul %146, %134, %cst_120 {dimension_numbers = #tpu.dot_dimension_numbers<[1], [0], [0], [1], [0, 0, 1, 1], [], []>} : vector<1x224xf32>, vector<224x32xf32>, vector<1x32xf32> -> vector<1x32xf32>
    %cst_121 = arith.constant 0.0102040814 : f32
    %148 = vector.broadcast %cst_121 : f32 to vector<1x32xf32>
    %149 = arith.mulf %147, %148 : vector<1x32xf32>
    %c0_122 = arith.constant 0 : index
    %c0_123 = arith.constant 0 : index
    %150 = vector.load %arg18[%c0_122, %c0_123] : memref<1x32xf32, #tpu.memory_space<vmem>>, vector<1x32xf32>
    %cst_124 = arith.constant 9.99999974E-6 : f32
    %151 = vector.broadcast %cst_124 : f32 to vector<1x32xf32>
    %152 = arith.addf %149, %151 : vector<1x32xf32>
    %153 = math.rsqrt %152 : vector<1x32xf32>
    %154 = arith.mulf %150, %153 : vector<1x32xf32>
    %c0_125 = arith.constant 0 : index
    %c0_126 = arith.constant 0 : index
    %155 = vector.load %arg19[%c0_125, %c0_126] : memref<1x32xf32, #tpu.memory_space<vmem>>, vector<1x32xf32>
    %156 = arith.mulf %140, %154 : vector<1x32xf32>
    %157 = arith.subf %155, %156 : vector<1x32xf32>
    %cst_127 = arith.constant dense<0.000000e+00> : vector<1x224xf32>
    %158 = tpu.matmul %154, %135, %cst_127 {dimension_numbers = #tpu.dot_dimension_numbers<[1], [0], [0], [1], [0, 0, 1, 1], [], []>} : vector<1x32xf32>, vector<32x224xf32>, vector<1x224xf32> -> vector<1x224xf32>
    %cst_128 = arith.constant dense<0.000000e+00> : vector<1x224xf32>
    %159 = tpu.matmul %157, %135, %cst_128 {dimension_numbers = #tpu.dot_dimension_numbers<[1], [0], [0], [1], [0, 0, 1, 1], [], []>} : vector<1x32xf32>, vector<32x224xf32>, vector<1x224xf32> -> vector<1x224xf32>
    %160 = vector.broadcast %158 : vector<1x224xf32> to vector<14x224xf32>
    %161 = arith.mulf %132, %160 : vector<14x224xf32>
    %162 = vector.broadcast %159 : vector<1x224xf32> to vector<14x224xf32>
    %163 = arith.addf %161, %162 : vector<14x224xf32>
    %cst_129 = arith.constant 0.000000e+00 : f32
    %164 = vector.broadcast %cst_129 : f32 to vector<14x224xf32>
    %165 = arith.cmpf ogt, %163, %164 : vector<14x224xf32>
    %166 = vector.broadcast %133 : f32 to vector<14x224xf32>
    %167 = arith.mulf %166, %163 : vector<14x224xf32>
    %168 = arith.select %165, %163, %167 : vector<14x224xi1>, vector<14x224xf32>
    %c0_130 = arith.constant 0 : index
    %c0_131 = arith.constant 0 : index
    %c0_132 = arith.constant 0 : index
    %169 = vector.load %arg20[%c0_130, %c0_131, %c0_132] : memref<3x6x14xf32, #tpu.memory_space<vmem>>, vector<1x6x14xf32>
    %170 = vector.shape_cast %169 : vector<1x6x14xf32> to vector<6x14xf32>
    %cst_133 = arith.constant dense<0.000000e+00> : vector<6x224xf32>
    %171 = tpu.matmul %170, %168, %cst_133 {dimension_numbers = #tpu.dot_dimension_numbers<[1], [0], [0], [1], [0, 0, 1, 1], [], []>} : vector<6x14xf32>, vector<14x224xf32>, vector<6x224xf32> -> vector<6x224xf32>
    %c0_134 = arith.constant 0 : index
    %c0_135 = arith.constant 0 : index
    %c0_136 = arith.constant 0 : index
    %172 = vector.load %arg21[%c0_134, %c0_135, %c0_136] : memref<3x224x192xf32, #tpu.memory_space<vmem>>, vector<1x224x192xf32>
    %173 = vector.shape_cast %172 : vector<1x224x192xf32> to vector<224x192xf32>
    %cst_137 = arith.constant dense<0.000000e+00> : vector<6x192xf32>
    %174 = tpu.matmul %171, %173, %cst_137 {dimension_numbers = #tpu.dot_dimension_numbers<[1], [0], [0], [1], [0, 0, 1, 1], [], []>} : vector<6x224xf32>, vector<224x192xf32>, vector<6x192xf32> -> vector<6x192xf32>
    %c1_138 = arith.constant 1 : index
    %c0_139 = arith.constant 0 : index
    %c0_140 = arith.constant 0 : index
    %175 = vector.load %arg20[%c1_138, %c0_139, %c0_140] : memref<3x6x14xf32, #tpu.memory_space<vmem>>, vector<1x6x14xf32>
    %176 = vector.shape_cast %175 : vector<1x6x14xf32> to vector<6x14xf32>
    %cst_141 = arith.constant dense<0.000000e+00> : vector<6x224xf32>
    %177 = tpu.matmul %176, %168, %cst_141 {dimension_numbers = #tpu.dot_dimension_numbers<[1], [0], [0], [1], [0, 0, 1, 1], [], []>} : vector<6x14xf32>, vector<14x224xf32>, vector<6x224xf32> -> vector<6x224xf32>
    %c1_142 = arith.constant 1 : index
    %c0_143 = arith.constant 0 : index
    %c0_144 = arith.constant 0 : index
    %178 = vector.load %arg21[%c1_142, %c0_143, %c0_144] : memref<3x224x192xf32, #tpu.memory_space<vmem>>, vector<1x224x192xf32>
    %179 = vector.shape_cast %178 : vector<1x224x192xf32> to vector<224x192xf32>
    %cst_145 = arith.constant dense<0.000000e+00> : vector<6x192xf32>
    %180 = tpu.matmul %177, %179, %cst_145 {dimension_numbers = #tpu.dot_dimension_numbers<[1], [0], [0], [1], [0, 0, 1, 1], [], []>} : vector<6x224xf32>, vector<224x192xf32>, vector<6x192xf32> -> vector<6x192xf32>
    %181 = arith.addf %174, %180 : vector<6x192xf32>
    %c2_146 = arith.constant 2 : index
    %c0_147 = arith.constant 0 : index
    %c0_148 = arith.constant 0 : index
    %182 = vector.load %arg20[%c2_146, %c0_147, %c0_148] : memref<3x6x14xf32, #tpu.memory_space<vmem>>, vector<1x6x14xf32>
    %183 = vector.shape_cast %182 : vector<1x6x14xf32> to vector<6x14xf32>
    %cst_149 = arith.constant dense<0.000000e+00> : vector<6x224xf32>
    %184 = tpu.matmul %183, %168, %cst_149 {dimension_numbers = #tpu.dot_dimension_numbers<[1], [0], [0], [1], [0, 0, 1, 1], [], []>} : vector<6x14xf32>, vector<14x224xf32>, vector<6x224xf32> -> vector<6x224xf32>
    %c2_150 = arith.constant 2 : index
    %c0_151 = arith.constant 0 : index
    %c0_152 = arith.constant 0 : index
    %185 = vector.load %arg21[%c2_150, %c0_151, %c0_152] : memref<3x224x192xf32, #tpu.memory_space<vmem>>, vector<1x224x192xf32>
    %186 = vector.shape_cast %185 : vector<1x224x192xf32> to vector<224x192xf32>
    %cst_153 = arith.constant dense<0.000000e+00> : vector<6x192xf32>
    %187 = tpu.matmul %184, %186, %cst_153 {dimension_numbers = #tpu.dot_dimension_numbers<[1], [0], [0], [1], [0, 0, 1, 1], [], []>} : vector<6x224xf32>, vector<224x192xf32>, vector<6x192xf32> -> vector<6x192xf32>
    %188 = arith.addf %181, %187 : vector<6x192xf32>
    %c0_154 = arith.constant 0 : index
    %c0_155 = arith.constant 0 : index
    %189 = vector.load %arg22[%c0_154, %c0_155] : memref<1x192xf32, #tpu.memory_space<vmem>>, vector<1x192xf32>
    %190 = vector.broadcast %189 : vector<1x192xf32> to vector<6x192xf32>
    %191 = arith.addf %188, %190 : vector<6x192xf32>
    %c3 = arith.constant 3 : index
    %192 = memref.load %arg0[%c3] : memref<4xf32, #tpu.memory_space<smem>>
    %cst_156 = arith.constant 0.000000e+00 : f32
    %193 = vector.broadcast %cst_156 : f32 to vector<6x192xf32>
    %194 = arith.cmpf ogt, %191, %193 : vector<6x192xf32>
    %195 = vector.broadcast %192 : f32 to vector<6x192xf32>
    %196 = arith.mulf %195, %191 : vector<6x192xf32>
    %197 = arith.select %194, %191, %196 : vector<6x192xi1>, vector<6x192xf32>
    %c0_157 = arith.constant 0 : index
    %c0_158 = arith.constant 0 : index
    %198 = vector.load %arg23[%c0_157, %c0_158] : memref<192x128xf32, #tpu.memory_space<vmem>>, vector<192x128xf32>
    %cst_159 = arith.constant dense<0.000000e+00> : vector<6x128xf32>
    %199 = tpu.matmul %197, %198, %cst_159 {dimension_numbers = #tpu.dot_dimension_numbers<[1], [0], [0], [1], [0, 0, 1, 1], [], []>} : vector<6x192xf32>, vector<192x128xf32>, vector<6x128xf32> -> vector<6x128xf32>
    %c0_160 = arith.constant 0 : index
    %c0_161 = arith.constant 0 : index
    %200 = vector.load %arg25[%c0_160, %c0_161] : memref<2x6xf32, #tpu.memory_space<vmem>>, vector<2x6xf32>
    %cst_162 = arith.constant dense<0.000000e+00> : vector<2x128xf32>
    %201 = tpu.matmul %200, %199, %cst_162 {dimension_numbers = #tpu.dot_dimension_numbers<[1], [0], [0], [1], [0, 0, 1, 1], [], []>} : vector<2x6xf32>, vector<6x128xf32>, vector<2x128xf32> -> vector<2x128xf32>
    %c0_163 = arith.constant 0 : index
    %c0_164 = arith.constant 0 : index
    %202 = vector.load %arg24[%c0_163, %c0_164] : memref<1x128xf32, #tpu.memory_space<vmem>>, vector<1x128xf32>
    %203 = vector.broadcast %202 : vector<1x128xf32> to vector<2x128xf32>
    %204 = arith.addf %201, %203 : vector<2x128xf32>
    %cst_165 = arith.constant 0.000000e+00 : f32
    %205 = vector.broadcast %cst_165 : f32 to vector<2x128xf32>
    %206 = arith.maximumf %204, %205 : vector<2x128xf32>
    %c0_166 = arith.constant 0 : index
    %c0_167 = arith.constant 0 : index
    %207 = vector.load %arg26[%c0_166, %c0_167] : memref<2x128xf32, #tpu.memory_space<vmem>>, vector<2x128xf32>
    tpu.vector_store %arg26[%c0_166, %c0_167], %206 {strides = array<i32>} : memref<2x128xf32, #tpu.memory_space<vmem>>, vector<2x128xf32>,
    return
  }
}

</mosaic_0001>

<bundles_post_ra>
// kernel: visual_encoder_forward.1
= control target key start
LH: loop header
LB: loop body
LE: loop exit
PB: predicated region body
PF: predicated region fallthrough
CT: control target
= control target key end

     0   :  { %s10880_s0 = inlined_call_operand.vmem [shape: f32[4], index: 0, kind: input, shape index: {}]   ;;  %s10881_s1 = inlined_call_operand.vmem [shape: f32[128,192], index: 1, kind: input, shape index: {}]   ;;  %s10882_s2 = inlined_call_operand.vmem [shape: f32[3,62,128], index: 2, kind: input, shape index: {}]   ;;  %s10883_s3 = inlined_call_operand.vmem [shape: f32[3,192,248], index: 3, kind: input, shape index: {}]   ;;  %s10884_s4 = inlined_call_operand.vmem [shape: f32[248,8], index: 4, kind: input, shape index: {}]   ;;  %s10885_s5 = inlined_call_operand.vmem [shape: f32[8,248], index: 5, kind: input, shape index: {}]   ;;  %s10886_s6 = inlined_call_operand.vmem [shape: f32[1,8], index: 6, kind: input, shape index: {}]   ;;  %s10887_s7 = inlined_call_operand.vmem [shape: f32[1,8], index: 7, kind: input, shape index: {}]   ;;  %s10888_s8 = inlined_call_operand.vmem [shape: f32[3,30,62], index: 8, kind: input, shape index: {}]   ;;  %s10889_s9 = inlined_call_operand.vmem [shape: f32[3,248,240], index: 9, kind: input, shape index: {}]   ;;  %s10890_s10 = inlined_call_operand.vmem [shape: f32[240,16], index: 10, kind: input, shape index: {}]   ;;  %s10891_s11 = inlined_call_operand.vmem [shape: f32[16,240], index: 11, kind: input, shape index: {}]   ;;  %s10892_s12 = inlined_call_operand.vmem [shape: f32[1,16], index: 12, kind: input, shape index: {}]   ;;  %s10893_s13 = inlined_call_operand.vmem [shape: f32[1,16], index: 13, kind: input, shape index: {}]   ;;  %s10894_s14 = inlined_call_operand.vmem [shape: f32[3,14,30], index: 14, kind: input, shape index: {}]   ;;  %s10895_s15 = inlined_call_operand.vmem [shape: f32[3,240,224], index: 15, kind: input, shape index: {}]   ;;  %s10896_s16 = inlined_call_operand.vmem [shape: f32[224,32], index: 16, kind: input, shape index: {}]   ;;  %s10897_s17 = inlined_call_operand.vmem [shape: f32[32,224], index: 17, kind: input, shape index: {}]   ;;  %s10898_s18 = inlined_call_operand.vmem [shape: f32[1,32], index: 18, kind: input, shape index: {}]   ;;  %s10899_s19 = inlined_call_operand.vmem [shape: f32[1,32], index: 19, kind: input, shape index: {}]   ;;  %s10900_s20 = inlined_call_operand.vmem [shape: f32[3,6,14], index: 20, kind: input, shape index: {}]   ;;  %s10901_s21 = inlined_call_operand.vmem [shape: f32[3,224,192], index: 21, kind: input, shape index: {}]   ;;  %s10902_s22 = inlined_call_operand.vmem [shape: f32[1,192], index: 22, kind: input, shape index: {}]   ;;  %s10903_s23 = inlined_call_operand.vmem [shape: f32[192,128], index: 23, kind: input, shape index: {}]   ;;  %s10904_s24 = inlined_call_operand.vmem [shape: f32[1,128], index: 24, kind: input, shape index: {}]   ;;  %s10905_s25 = inlined_call_operand.vmem [shape: f32[2,6], index: 25, kind: input, shape index: {}]   ;;  %s10906_s26 = inlined_call_operand.hbm [shape: f32[2,128], index: 26, kind: output, shape index: {}]  }
   0x1   :  { %10915 = sst [smem:[#allocation8_spill]] %s10880_s0 }
   0x2   :  { %10916 = sst [smem:[#allocation9_spill]] %s10881_s1 }
   0x3   :  { %10917 = sst [smem:[#allocation10_spill]] %s10882_s2 }
   0x4   :  { %10918 = sst [smem:[#allocation11_spill]] %s10883_s3 }
   0x5   :  { %10919 = sst [smem:[#allocation12_spill]] %s10884_s4 }
   0x6   :  { %10920 = sst [smem:[#allocation13_spill]] %s10885_s5 }
   0x7   :  { %10921 = sst [smem:[#allocation14_spill]] %s10886_s6 }
   0x8   :  { %10922 = sst [smem:[#allocation15_spill]] %s10887_s7 }
   0x9   :  { %10923 = sst [smem:[#allocation16_spill]] %s10888_s8 }
   0xa   :  { %10924 = sst [smem:[#allocation17_spill]] %s10889_s9 }
   0xb   :  { %10925 = sst [smem:[#allocation18_spill]] %s10890_s10 }
   0xc   :  { %31 = vsyncpa [#allocation4], 0 }
   0xd   :  { %32 = vsyncpa [#allocation3], 0  ;;  %s10926_s7 = sld [smem:[#allocation8_spill]] }
  0x13   :  { %s39_s28 = sshll.u32 %s10926_s7, 4  ;;  %s40_s28 = int_to_ptr.vmem [resolvable:$true] %s39_s28 }
  0x14   :  { %s6980_s8 = scalar_lea.vmem %s40_s28, 16  ;;  %p6985_p1 = scmp.lt.s32.totalorder %s40_s28, %s40_s28 }
  0x15   :  { %p6981_p0 = scmp.ne.s32.totalorder %s40_s28, %s6980_s8  ;;  %p6986_p2 = scmp.lt.s32.totalorder %s6980_s8, %s6980_s8 }
  0x17   :  { %p6987_p3 = por %p6986_p2, %p6985_p1 }
  0x19   :  { %p6988_p4 = pnand %p6987_p3, %p6981_p0 }
  0x1b   :  { %6991 = shalt.err (!%p6988_p4)
}
  0x1c   :  { %s7018_s4 = smov [#allocation2]  }
  0x1d   :  { %42 = dma.vmem_to_smem %s40_s28, 16, %s7018_s4, [#allocation4]  }
  0x1e   :  { %7014 = dma.done.wait [#allocation4], 16  }
  0x1f   :  { %7015 = vsyncadd [#allocation4], 4294967280 }
  0x20   :  { %96 = sfence }
  0x21   :  { %s10927_s9 = sld [smem:[#allocation9_spill]]  ;;  %v7019_v7 = vmov 0.0   ;;  %s10928_s7 = sld [smem:[#allocation11_spill]]  ;;  %vm469_vm0 = vcmask 523264   ;;  %vm1117_vm1 = vcmask 982016   ;;  %vm1108_vm2 = vcmask 1045504  }
  0x22   :  { %371 = vmatprep.mubr.f32.mxu1 %v7019_v7  ;;  %201 = vmatprep.mubr.f32.mxu0 %v7019_v7  ;;  %s10929_s5 = sld [smem:[#allocation10_spill]]  ;;  %s10930_s3 = sld [smem:[#allocation12_spill]]  ;;  %vm1131_vm3 = vcmask 979968   ;;  %vm1214_vm4 = vcmask 64512  }
  0x23   :  { %s10931_s4 = sld [smem:[#allocation13_spill]]  ;;  %s10932_s2 = sld [smem:[#allocation14_spill]] }
  0x24   :  { %s10933_s1 = sld [smem:[#allocation15_spill]]  ;;  %s10936_s8 = sld [smem:[#allocation17_spill]] }
  0x25   :  { %s10937_s10 = sld [smem:[#allocation16_spill]]  ;;  %s7023_s30 = smov [#allocation5]  }
  0x27   :  { %v98_v0 = vld [vmem:[%s10927_s9 + $0x8] sm:$0xff]  ;;  %v100_v1 = vld [vmem:[%s10927_s9 + $0x18] sm:$0xff]  ;;  %v97_v2 = vld [vmem:[%s10927_s9] sm:$0xff] }
  0x28   :  { %v7171_v3 = vpack.c.bf16 %v100_v1, %v98_v0  ;;  %v99_v4 = vld [vmem:[%s10927_s9 + $0x10] sm:$0xff]  ;;  %v102_v5 = vld [vmem:[%s10927_s9 + $0x28] sm:$0xff]  ;;  %v104_v6 = vld [vmem:[%s10927_s9 + $0x38] sm:$0xff] }
  0x29   :  { %v7184_v8 = vpack.c.bf16 %v99_v4, %v97_v2  ;;  %v7186_v9 = vpack.c.bf16 %v104_v6, %v102_v5  ;;  %v101_v10 = vld [vmem:[%s10927_s9 + $0x20] sm:$0xff]  ;;  %v103_v11 = vld [vmem:[%s10927_s9 + $0x30] sm:$0xff]  ;;  %v106_v12 = vld [vmem:[%s10927_s9 + $0x48] sm:$0xff] }
  0x2a   :  { %5735 = vmatprep.subr.bf16.mxu1 %v7171_v3  ;;  %v108_v13 = vld [vmem:[%s10927_s9 + $0x58] sm:$0xff]  ;;  %5703 = vmatprep.subr.bf16.mxu0 %v7171_v3  ;;  %v7203_v14 = vpack.c.bf16 %v103_v11, %v101_v10  ;;  %v105_v16 = vld [vmem:[%s10927_s9 + $0x40] sm:$0xff]  ;;  %v107_v17 = vld [vmem:[%s10927_s9 + $0x50] sm:$0xff] }
  0x2b   :  { %5737 = vmatpush1.bf16.msra.mxu1 %v7184_v8  ;;  %5705 = vmatpush1.bf16.msra.mxu0 %v7184_v8  ;;  %v7207_v15 = vpack.c.bf16 %v108_v13, %v106_v12  ;;  %v110_v18 = vld [vmem:[%s10927_s9 + $0x68] sm:$0xff]  ;;  %v112_v19 = vld [vmem:[%s10927_s9 + $0x78] sm:$0xff]  ;;  %v7223_v20 = vpack.c.bf16 %v107_v17, %v105_v16  ;;  %v109_v22 = vld [vmem:[%s10927_s9 + $0x60] sm:$0xff] }
  0x2c   :  { %5739 = vmatprep.subr.bf16.mxu1 %v7186_v9  ;;  %5707 = vmatprep.subr.bf16.mxu0 %v7186_v9  ;;  %v7227_v21 = vpack.c.bf16 %v112_v19, %v110_v18  ;;  %v111_v23 = vld [vmem:[%s10927_s9 + $0x70] sm:$0xff]  ;;  %v114_v24 = vld [vmem:[%s10927_s9 + $0x88] sm:$0xff]  ;;  %v116_v25 = vld [vmem:[%s10927_s9 + $0x98] sm:$0xff] }
  0x2d   :  { %v7243_v26 = vpack.c.bf16 %v111_v23, %v109_v22  ;;  %v7247_v27 = vpack.c.bf16 %v116_v25, %v114_v24  ;;  %v113_v28 = vld [vmem:[%s10927_s9 + $0x80] sm:$0xff]  ;;  %v115_v29 = vld [vmem:[%s10927_s9 + $0x90] sm:$0xff]  ;;  %v118_v30 = vld [vmem:[%s10927_s9 + $0xa8] sm:$0xff] }
  0x2e   :  { %v120_v31 = vld [vmem:[%s10927_s9 + $0xb8] sm:$0xff]  ;;  %v7263_v32 = vpack.c.bf16 %v115_v29, %v113_v28  ;;  %v117_v34 = vld [vmem:[%s10927_s9 + $0xa0] sm:$0xff]  ;;  %v119_v35 = vld [vmem:[%s10927_s9 + $0xb0] sm:$0xff] }
  0x2f   :  { %5741 = vmatpush1.bf16.msra.mxu1 %v7203_v14  ;;  %5709 = vmatpush1.bf16.msra.mxu0 %v7203_v14  ;;  %v7267_v33 = vpack.c.bf16 %v120_v31, %v118_v30  ;;  %v122_v36 = vld [vmem:[%s10927_s9 + $0xc8] sm:$0xff]  ;;  %v124_v37 = vld [vmem:[%s10927_s9 + $0xd8] sm:$0xff]  ;;  %v7283_v38 = vpack.c.bf16 %v119_v35, %v117_v34  ;;  %v121_v40 = vld [vmem:[%s10927_s9 + $0xc0] sm:$0xff] }
  0x30   :  { %5743 = vmatprep.subr.bf16.mxu1 %v7207_v15  ;;  %5711 = vmatprep.subr.bf16.mxu0 %v7207_v15  ;;  %v7287_v39 = vpack.c.bf16 %v124_v37, %v122_v36  ;;  %v123_v41 = vld [vmem:[%s10927_s9 + $0xd0] sm:$0xff]  ;;  %v126_v42 = vld [vmem:[%s10927_s9 + $0xe8] sm:$0xff]  ;;  %v128_v43 = vld [vmem:[%s10927_s9 + $0xf8] sm:$0xff] }
  0x31   :  { %v7303_v44 = vpack.c.bf16 %v123_v41, %v121_v40  ;;  %v7307_v45 = vpack.c.bf16 %v128_v43, %v126_v42  ;;  %v125_v46 = vld [vmem:[%s10927_s9 + $0xe0] sm:$0xff]  ;;  %v127_v47 = vld [vmem:[%s10927_s9 + $0xf0] sm:$0xff]  ;;  %v5116_v48 = vld [vmem:[%s10928_s7 + $0x188] sm:$0xff] }
  0x32   :  { %v5118_v49 = vld [vmem:[%s10928_s7 + $0x198] sm:$0xff]  ;;  %v7323_v50 = vpack.c.bf16 %v127_v47, %v125_v46  ;;  %v5115_v52 = vld [vmem:[%s10928_s7 + $0x180] sm:$0xff]  ;;  %v5117_v53 = vld [vmem:[%s10928_s7 + $0x190] sm:$0xff] }
  0x33   :  { %5745 = vmatpush1.bf16.msra.mxu1 %v7223_v20  ;;  %5713 = vmatpush1.bf16.msra.mxu0 %v7223_v20  ;;  %v5766_v51 = vpack.c.bf16 %v5118_v49, %v5116_v48  ;;  %v5107_v54 = vld [vmem:[%s10929_s5 + $0x40] sm:$0xff]  ;;  %v5768_v56 = vpack.c.bf16 %v5117_v53, %v5115_v52  ;;  %v5120_v57 = vld [vmem:[%s10928_s7 + $0x1a8] sm:$0xff]  ;;  %v5122_v58 = vld [vmem:[%s10928_s7 + $0x1b8] sm:$0xff] }
  0x34   :  { %5747 = vmatprep.subr.bf16.mxu1 %v7227_v21  ;;  %5715 = vmatprep.subr.bf16.mxu0 %v7227_v21  ;;  %v129_v55 = vld [vmem:[%s10929_s5] sm:$0xff]  ;;  %v5108_v59 = vld [vmem:[%s10929_s5 + $0x48] sm:$0xff]  ;;  %v5770_v61 = vpack.c.bf16 %v5122_v58, %v5120_v57  ;;  %v5121_v63 = vld [vmem:[%s10928_s7 + $0x1b0] sm:$0xff] }
  0x35   :  { %v130_v60 = vld [vmem:[%s10929_s5 + $0x8] sm:$0xff]  ;;  %v5119_v62 = vld [vmem:[%s10928_s7 + $0x1a0] sm:$0xff]  ;;  %v5109_v0 = vld [vmem:[%s10929_s5 + $0x50] sm:$0xff] }
  0x36   :  { %v131_v1 = vld [vmem:[%s10929_s5 + $0x10] sm:$0xff]  ;;  %v5772_v2 = vpack.c.bf16 %v5121_v63, %v5119_v62  ;;  %v5126_v4 = vld [vmem:[%s10928_s7 + $0x1d8] sm:$0xff]  ;;  %v5111_v11 = vld [vmem:[%s10929_s5 + $0x60] sm:$0xff] }
  0x37   :  { %5749 = vmatpush1.bf16.msra.mxu1 %v7243_v26  ;;  %5717 = vmatpush1.bf16.msra.mxu0 %v7243_v26  ;;  %v5110_v5 = vld [vmem:[%s10929_s5 + $0x58] sm:$0xff]  ;;  %v5125_v10 = vld [vmem:[%s10928_s7 + $0x1d0] sm:$0xff]  ;;  %v133_v12 = vld [vmem:[%s10929_s5 + $0x20] sm:$0xff] }
  0x38   :  { %5751 = vmatprep.subr.bf16.mxu1 %v7247_v27  ;;  %5719 = vmatprep.subr.bf16.mxu0 %v7247_v27  ;;  %v132_v6 = vld [vmem:[%s10929_s5 + $0x18] sm:$0xff]  ;;  %v5112_v16 = vld [vmem:[%s10929_s5 + $0x68] sm:$0xff]  ;;  %v5127_v19 = vld [vmem:[%s10928_s7 + $0x1e0] sm:$0xff] }
  0x39   :  { %v134_v17 = vld [vmem:[%s10929_s5 + $0x28] sm:$0xff]  ;;  %v135_v22 = vld [vmem:[%s10929_s5 + $0x30] sm:$0xff]  ;;  %v5134_v25 = vld [vmem:[%s10928_s7 + $0x218] sm:$0xff] }
  0x3a   :  { %v5132_v24 = vld [vmem:[%s10928_s7 + $0x208] sm:$0xff]  ;;  %v5133_v28 = vld [vmem:[%s10928_s7 + $0x210] sm:$0xff]  ;;  %v136_v29 = vld [vmem:[%s10929_s5 + $0x38] sm:$0x3f] }
  0x3b   :  { %5753 = vmatpush1.bf16.msra.mxu1 %v7263_v32  ;;  %5721 = vmatpush1.bf16.msra.mxu0 %v7263_v32  ;;  %v5136_v30 = vld [vmem:[%s10928_s7 + $0x228] sm:$0xff]  ;;  %v5138_v31 = vld [vmem:[%s10928_s7 + $0x238] sm:$0xff]  ;;  %v5135_v35 = vld [vmem:[%s10928_s7 + $0x220] sm:$0xff] }
  0x3c   :  { %5755 = vmatprep.subr.bf16.mxu1 %v7267_v33  ;;  %5723 = vmatprep.subr.bf16.mxu0 %v7267_v33  ;;  %v5786_v34 = vpack.c.bf16 %v5138_v31, %v5136_v30  ;;  %v5137_v36 = vld [vmem:[%s10928_s7 + $0x230] sm:$0xff]  ;;  %v5179_v37 = vld [vmem:[%s10929_s5 + $0x80] sm:$0xff]  ;;  %v5146_v46 = vld [vmem:[%s10928_s7 + $0x278] sm:$0xff] }
  0x3d   :  { %v5788_v40 = vpack.c.bf16 %v5137_v36, %v5135_v35  ;;  %v5139_v42 = vld [vmem:[%s10928_s7 + $0x240] sm:$0xff]  ;;  %v5141_v43 = vld [vmem:[%s10928_s7 + $0x250] sm:$0xff]  ;;  %v5148_v52 = vld [vmem:[%s10928_s7 + $0x288] sm:$0xff] }
  0x3e   :  { %v5792_v47 = vpack.c.bf16 %v5141_v43, %v5139_v42  ;;  %v5143_v49 = vld [vmem:[%s10928_s7 + $0x260] sm:$0xff]  ;;  %v5150_v53 = vld [vmem:[%s10928_s7 + $0x298] sm:$0xff]  ;;  %v5149_v57 = vld [vmem:[%s10928_s7 + $0x290] sm:$0xff] }
  0x3f   :  { %5757 = vmatpush1.bf16.msra.mxu1 %v7283_v38  ;;  %5725 = vmatpush1.bf16.msra.mxu0 %v7283_v38  ;;  %v5182_v58 = vld [vmem:[%s10929_s5 + $0x98] sm:$0xff]  ;;  %v5151_v63 = vld [vmem:[%s10928_s7 + $0x2a0] sm:$0xff] }
  0x40   :  { %5759 = vmatprep.subr.bf16.mxu1 %v7287_v39  ;;  %5727 = vmatprep.subr.bf16.mxu0 %v7287_v39  ;;  %v1073_v43 = vld [vmem:[%s10930_s3 + $0x20] sm:$0xff] }
  0x43   :  { %5761 = vmatpush1.bf16.msra.mxu1 %v7303_v44  ;;  %5729 = vmatpush1.bf16.msra.mxu0 %v7303_v44 }
  0x44   :  { %5763 = vmatprep.subr.bf16.mxu1 %v7307_v45  ;;  %5731 = vmatprep.subr.bf16.mxu0 %v7307_v45 }
  0x47   :  { %5765 = vmatpush1.bf16.msra.mxu1 %v7323_v50  ;;  %5733 = vmatpush1.bf16.msra.mxu0 %v7323_v50 }
  0x48   :  { %5863 = vmatprep.subr.bf16.mxu1 %v7171_v3  ;;  %5767 = vmatprep.subr.bf16.mxu0 %v5766_v51  ;;  %v5124_v3 = vld [vmem:[%s10928_s7 + $0x1c8] sm:$0xff]  ;;  %v5181_v51 = vld [vmem:[%s10929_s5 + $0x90] sm:$0xff] }
  0x4a   :  { %372 = vmatmul.mubr.f32.vlgmr.msra.gmra.mrb[0].mxu1 %v5107_v54  ;;  %202 = vmatmul.mubr.f32.vlgmr.msra.gmra.mrb[0].mxu0 %v129_v55  ;;  %v5798_v55 = vpack.c.bf16 %v5150_v53, %v5148_v52  ;;  %v263_v53 = vld [vmem:[%s10928_s7 + $0x68] sm:$0xff] }
  0x4b   :  { %377 = vmatprep.mubr.f32.mxu1 %v7019_v7  ;;  %5865 = vmatpush1.bf16.msra.mxu1 %v7184_v8  ;;  %v5774_v8 = vpack.c.bf16 %v5126_v4, %v5124_v3  ;;  %v5158_v3 = vld [vmem:[%s10928_s7 + $0x2d8] sm:$0xff] }
  0x4c   :  { %207 = vmatprep.mubr.f32.mxu0 %v7019_v7  ;;  %5867 = vmatprep.subr.bf16.mxu1 %v7186_v9  ;;  %v5123_v9 = vld [vmem:[%s10928_s7 + $0x1c0] sm:$0xff] }
  0x4d   :  { %5769 = vmatpush1.bf16.msra.mxu0 %v5768_v56  ;;  %v5776_v13 = vpack.c.bf16 %v5125_v10, %v5123_v9  ;;  %v5147_v56 = vld [vmem:[%s10928_s7 + $0x280] sm:$0xff]  ;;  %v5184_v9 = vld [vmem:[%s10929_s5 + $0xa8] sm:$0xff] }
  0x4e   :  { %378 = vmatmul.mubr.f32.gmra.mrb[2].mxu1 %v5108_v59  ;;  %208 = vmatmul.mubr.f32.gmra.mrb[2].mxu0 %v130_v60  ;;  %v5152_v59 = vld [vmem:[%s10928_s7 + $0x2a8] sm:$0xff]  ;;  %v5154_v60 = vld [vmem:[%s10928_s7 + $0x2b8] sm:$0xff] }
  0x4f   :  { %383 = vmatprep.mubr.f32.mxu1 %v7019_v7  ;;  %5869 = vmatpush1.bf16.msra.mxu1 %v7203_v14  ;;  %v5128_v14 = vld [vmem:[%s10928_s7 + $0x1e8] sm:$0xff]  ;;  %v5802_v62 = vpack.c.bf16 %v5154_v60, %v5152_v59 }
  0x50   :  { %213 = vmatprep.mubr.f32.mxu0 %v7019_v7  ;;  %5871 = vmatprep.subr.bf16.mxu1 %v7207_v15  ;;  %v5130_v15 = vld [vmem:[%s10928_s7 + $0x1f8] sm:$0xff]  ;;  %v5160_v10 = vld [vmem:[%s10928_s7 + $0x2e8] sm:$0xff] }
  0x51   :  { %5771 = vmatprep.subr.bf16.mxu0 %v5770_v61  ;;  %v5778_v18 = vpack.c.bf16 %v5130_v15, %v5128_v14  ;;  %v5800_v61 = vpack.c.bf16 %v5149_v57, %v5147_v56  ;;  %v5159_v14 = vld [vmem:[%s10928_s7 + $0x2e0] sm:$0xff]  ;;  %v5161_v15 = vld [vmem:[%s10928_s7 + $0x2f0] sm:$0xff]  ;;  %v1076_v57 = vld [vmem:[%s10930_s3 + $0x38] sm:$0xff] }
  0x52   :  { %384 = vmatmul.mubr.f32.gmra.mrb[4].mxu1 %v5109_v0  ;;  %214 = vmatmul.mubr.f32.gmra.mrb[4].mxu0 %v131_v1  ;;  %v5153_v0 = vld [vmem:[%s10928_s7 + $0x2b0] sm:$0xff]  ;;  %v5183_v1 = vld [vmem:[%s10929_s5 + $0xa0] sm:$0xff] }
  0x53   :  { %389 = vmatprep.mubr.f32.mxu1 %v7019_v7  ;;  %5873 = vmatpush1.bf16.msra.mxu1 %v7223_v20  ;;  %v5129_v20 = vld [vmem:[%s10928_s7 + $0x1f0] sm:$0xff]  ;;  %v5804_v4 = vpack.c.bf16 %v5153_v0, %v5151_v63 }
  0x54   :  { %219 = vmatprep.mubr.f32.mxu0 %v7019_v7  ;;  %5875 = vmatprep.subr.bf16.mxu1 %v7227_v21  ;;  %v5113_v21 = vld [vmem:[%s10929_s5 + $0x70] sm:$0xff]  ;;  %v5780_v23 = vpack.c.bf16 %v5129_v20, %v5127_v19  ;;  %v251_v19 = vld [vmem:[%s10928_s7 + $0x8] sm:$0xff]  ;;  %v253_v20 = vld [vmem:[%s10928_s7 + $0x18] sm:$0xff] }
  0x55   :  { %5773 = vmatpush1.bf16.msra.mxu0 %v5772_v2  ;;  %v5156_v2 = vld [vmem:[%s10928_s7 + $0x2c8] sm:$0xff]  ;;  %v1075_v56 = vld [vmem:[%s10930_s3 + $0x30] sm:$0xff] }
  0x56   :  { %390 = vmatmul.mubr.f32.gmra.mrb[6].mxu1 %v5110_v5  ;;  %220 = vmatmul.mubr.f32.gmra.mrb[6].mxu0 %v132_v6  ;;  %v5806_v5 = vpack.c.bf16 %v5158_v3, %v5156_v2  ;;  %v5155_v6 = vld [vmem:[%s10928_s7 + $0x2c0] sm:$0xff]  ;;  %v264_v63 = vld [vmem:[%s10928_s7 + $0x70] sm:$0xff]  ;;  %v267_v2 = vld [vmem:[%s10928_s7 + $0x88] sm:$0xff] }
  0x57   :  { %395 = vmatprep.mubr.f32.mxu1 %v7019_v7  ;;  %5877 = vmatpush1.bf16.msra.mxu1 %v7243_v26  ;;  %v5114_v26 = vld [vmem:[%s10929_s5 + $0x78] sm:$0x3f] }
  0x58   :  { %225 = vmatprep.mubr.f32.mxu0 %v7019_v7  ;;  %5879 = vmatprep.subr.bf16.mxu1 %v7247_v27  ;;  %v5131_v27 = vld [vmem:[%s10928_s7 + $0x200] sm:$0xff]  ;;  %v269_v3 = vld [vmem:[%s10928_s7 + $0x98] sm:$0xff] }
  0x59   :  { %5775 = vmatprep.subr.bf16.mxu0 %v5774_v8  ;;  %v5157_v8 = vld [vmem:[%s10928_s7 + $0x2d0] sm:$0xff] }
  0x5a   :  { %396 = vmatmul.mubr.f32.gmra.mrb[8].mxu1 %v5111_v11  ;;  %226 = vmatmul.mubr.f32.gmra.mrb[8].mxu0 %v133_v12  ;;  %v5162_v11 = vld [vmem:[%s10928_s7 + $0x2f8] sm:$0xff]  ;;  %v5808_v12 = vpack.c.bf16 %v5157_v8, %v5155_v6 }
  0x5b   :  { %401 = vmatprep.mubr.f32.mxu1 %v7019_v7  ;;  %5881 = vmatpush1.bf16.msra.mxu1 %v7263_v32  ;;  %v5782_v32 = vpack.c.bf16 %v5134_v25, %v5132_v24  ;;  %v255_v24 = vld [vmem:[%s10928_s7 + $0x28] sm:$0xff]  ;;  %v257_v25 = vld [vmem:[%s10928_s7 + $0x38] sm:$0xff] }
  0x5c   :  { %231 = vmatprep.mubr.f32.mxu0 %v7019_v7  ;;  %5883 = vmatprep.subr.bf16.mxu1 %v7267_v33  ;;  %v5784_v33 = vpack.c.bf16 %v5133_v28, %v5131_v27  ;;  %v1070_v27 = vld [vmem:[%s10930_s3 + $0x8] sm:$0xff]  ;;  %v1071_v28 = vld [vmem:[%s10930_s3 + $0x10] sm:$0xff]  ;;  %v5818_v36 = vpack.c.bf16 %v257_v25, %v255_v24  ;;  %v277_v25 = vld [vmem:[%s10928_s7 + $0xd8] sm:$0xff] }
  0x5d   :  { %5777 = vmatpush1.bf16.msra.mxu0 %v5776_v13  ;;  %v5810_v13 = vpack.c.bf16 %v5162_v11, %v5160_v10  ;;  %v266_v10 = vld [vmem:[%s10928_s7 + $0x80] sm:$0xff]  ;;  %v268_v11 = vld [vmem:[%s10928_s7 + $0x90] sm:$0xff]  ;;  %v275_v24 = vld [vmem:[%s10928_s7 + $0xc8] sm:$0xff] }
  0x5e   :  { %402 = vmatmul.mubr.f32.gmra.mrb[10].mxu1 %v5112_v16  ;;  %232 = vmatmul.mubr.f32.gmra.mrb[10].mxu0 %v134_v17  ;;  %v5185_v16 = vld [vmem:[%s10929_s5 + $0xb0] sm:$0xff]  ;;  %v5812_v17 = vpack.c.bf16 %v5161_v15, %v5159_v14  ;;  %v271_v14 = vld [vmem:[%s10928_s7 + $0xa8] sm:$0xff]  ;;  %v273_v15 = vld [vmem:[%s10928_s7 + $0xb8] sm:$0xff] }
  0x5f   :  { %407 = vmatprep.mubr.f32.mxu1 %v7019_v7  ;;  %5885 = vmatpush1.bf16.msra.mxu1 %v7283_v38  ;;  %v5140_v38 = vld [vmem:[%s10928_s7 + $0x248] sm:$0xff] }
  0x60   :  { %237 = vmatprep.mubr.f32.mxu0 %v7019_v7  ;;  %5887 = vmatprep.subr.bf16.mxu1 %v7287_v39  ;;  %v5142_v39 = vld [vmem:[%s10928_s7 + $0x258] sm:$0xff] }
  0x61   :  { %5779 = vmatprep.subr.bf16.mxu0 %v5778_v18  ;;  %v5790_v41 = vpack.c.bf16 %v5142_v39, %v5140_v38  ;;  %v5186_v18 = vld [vmem:[%s10929_s5 + $0xb8] sm:$0x3f]  ;;  %v256_v38 = vld [vmem:[%s10928_s7 + $0x30] sm:$0xff] }
  0x62   :  { %408 = vmatmul.mubr.f32.gmra.mrb[12].mxu1 %v5113_v21  ;;  %238 = vmatmul.mubr.f32.gmra.mrb[12].mxu0 %v135_v22  ;;  %v5814_v21 = vpack.c.bf16 %v253_v20, %v251_v19  ;;  %v250_v22 = vld [vmem:[%s10928_s7] sm:$0xff]  ;;  %v5834_v19 = vpack.c.bf16 %v273_v15, %v271_v14 }
  0x63   :  { %413 = vmatprep.mubr.f32.mxu1 %v7019_v7  ;;  %5889 = vmatpush1.bf16.msra.mxu1 %v7303_v44  ;;  %v5180_v44 = vld [vmem:[%s10929_s5 + $0x88] sm:$0xff]  ;;  %v270_v20 = vld [vmem:[%s10928_s7 + $0xa0] sm:$0xff] }
  0x64   :  { %243 = vmatprep.mubr.f32.mxu0 %v7019_v7  ;;  %5891 = vmatprep.subr.bf16.mxu1 %v7307_v45  ;;  %v5144_v45 = vld [vmem:[%s10928_s7 + $0x268] sm:$0xff] }
  0x65   :  { %5781 = vmatpush1.bf16.msra.mxu0 %v5780_v23  ;;  %v5794_v48 = vpack.c.bf16 %v5146_v46, %v5144_v45  ;;  %v252_v23 = vld [vmem:[%s10928_s7 + $0x10] sm:$0xff] }
  0x66   :  { %414 = vmatmul.mubr.f32.gmra.mrb[14].mxu1 %v5114_v26  ;;  %244 = vmatmul.mubr.f32.gmra.mrb[14].mxu0 %v136_v29  ;;  %v1069_v26 = vld [vmem:[%s10930_s3] sm:$0xff]  ;;  %v5816_v30 = vpack.c.bf16 %v252_v23, %v250_v22 }
  0x67   :  { %5893 = vmatpush1.bf16.msra.mxu1 %v7323_v50  ;;  %817 = vmatprep.mubr.f32.mxu1 %v7019_v7  ;;  %v5145_v50 = vld [vmem:[%s10928_s7 + $0x270] sm:$0xff] }
  0x68   :  { %5783 = vmatprep.subr.bf16.mxu0 %v5782_v32  ;;  %v5796_v54 = vpack.c.bf16 %v5145_v50, %v5143_v49  ;;  %v7020_v32 = vmov 0.0|0.0   ;;  %v258_v49 = vld [vmem:[%s10928_s7 + $0x40] sm:$0xff]  ;;  %v260_v50 = vld [vmem:[%s10928_s7 + $0x50] sm:$0xff] }
  0x69   :  { %5785 = vmatpush1.bf16.msra.mxu0 %v5784_v33  ;;  %5942 = vmatprep.subr.bf16.mxu1 %v7020_v32  ;;  %v7608_v33 = vpack.c.bf16 %v1070_v27, %v1069_v26 }
  0x6a   :  { %818 = vmatmul.mubr.f32.vlgmr.msra.gmra.mrb[16].mxu1 %v5179_v37  ;;  %5787 = vmatprep.subr.bf16.mxu0 %v5786_v34  ;;  %v1072_v34 = vld [vmem:[%s10930_s3 + $0x18] sm:$0xff]  ;;  %v254_v37 = vld [vmem:[%s10928_s7 + $0x20] sm:$0xff] }
  0x6b   :  { %823 = vmatprep.mubr.f32.mxu1 %v7019_v7  ;;  %5944 = vmatpush1.bf16.msra.mxu1 %v7608_v33  ;;  %v7629_v42 = vpack.c.bf16 %v1072_v34, %v1071_v28  ;;  %v5820_v45 = vpack.c.bf16 %v256_v38, %v254_v37  ;;  %v276_v34 = vld [vmem:[%s10928_s7 + $0xd0] sm:$0xff]  ;;  %v279_v37 = vld [vmem:[%s10928_s7 + $0xe8] sm:$0xff]  ;;  %v281_v38 = vld [vmem:[%s10928_s7 + $0xf8] sm:$0xff] }
  0x6c   :  { %5945 = vmatprep.subr.bf16.mxu1 %v7020_v32 }
  0x6d   :  { %5789 = vmatpush1.bf16.msra.mxu0 %v5788_v40  ;;  %v259_v40 = vld [vmem:[%s10928_s7 + $0x48] sm:$0xff] }
  0x6e   :  { %824 = vmatmul.mubr.f32.gmra.mrb[18].mxu1 %v5180_v44  ;;  %5791 = vmatprep.subr.bf16.mxu0 %v5790_v41  ;;  %v261_v41 = vld [vmem:[%s10928_s7 + $0x58] sm:$0xff]  ;;  %v1074_v44 = vld [vmem:[%s10930_s3 + $0x28] sm:$0xff] }
  0x6f   :  { %829 = vmatprep.mubr.f32.mxu1 %v7019_v7  ;;  %5947 = vmatpush1.bf16.msra.mxu1 %v7629_v42 }
  0x70   :  { %5948 = vmatprep.subr.bf16.mxu1 %v7020_v32 }
  0x71   :  { %5793 = vmatpush1.bf16.msra.mxu0 %v5792_v47 }
  0x72   :  { %830 = vmatmul.mubr.f32.gmra.mrb[20].mxu1 %v5181_v51  ;;  %5795 = vmatprep.subr.bf16.mxu0 %v5794_v48  ;;  %v5822_v48 = vpack.c.bf16 %v261_v41, %v259_v40 }
  0x73   :  { %835 = vmatprep.mubr.f32.mxu1 %v7019_v7 }
  0x75   :  { %5797 = vmatpush1.bf16.msra.mxu0 %v5796_v54  ;;  %v265_v54 = vld [vmem:[%s10928_s7 + $0x78] sm:$0xff] }
  0x76   :  { %836 = vmatmul.mubr.f32.gmra.mrb[22].mxu1 %v5182_v58  ;;  %5799 = vmatprep.subr.bf16.mxu0 %v5798_v55  ;;  %v7656_v55 = vpack.c.bf16 %v1074_v44, %v1073_v43  ;;  %v5824_v58 = vpack.c.bf16 %v260_v50, %v258_v49  ;;  %v5842_v44 = vpack.c.bf16 %v281_v38, %v279_v37  ;;  %v283_v50 = vld [vmem:[%s10928_s7 + $0x108] sm:$0xff] }
  0x77   :  { %841 = vmatprep.mubr.f32.mxu1 %v7019_v7 }
  0x78   :  { %5950 = vmatpush1.bf16.msra.mxu1 %v7656_v55 }
  0x79   :  { %5801 = vmatpush1.bf16.msra.mxu0 %v5800_v61  ;;  %v5826_v61 = vpack.c.bf16 %v265_v54, %v263_v53  ;;  %5951 = vmatprep.subr.bf16.mxu1 %v7020_v32 }
  0x7a   :  { %842 = vmatmul.mubr.f32.gmra.mrb[24].mxu1 %v5183_v1  ;;  %5803 = vmatprep.subr.bf16.mxu0 %v5802_v62  ;;  %v262_v62 = vld [vmem:[%s10928_s7 + $0x60] sm:$0xff] }
  0x7b   :  { %847 = vmatprep.mubr.f32.mxu1 %v7019_v7 }
  0x7d   :  { %5805 = vmatpush1.bf16.msra.mxu0 %v5804_v4  ;;  %v7683_v4 = vpack.c.bf16 %v1076_v57, %v1075_v56 }
  0x7e   :  { %848 = vmatmul.mubr.f32.gmra.mrb[26].mxu1 %v5184_v9  ;;  %5807 = vmatprep.subr.bf16.mxu0 %v5806_v5  ;;  %v5828_v5 = vpack.c.bf16 %v264_v63, %v262_v62  ;;  %v5830_v9 = vpack.c.bf16 %v269_v3, %v267_v2  ;;  %v287_v63 = vld [vmem:[%s10928_s7 + $0x128] sm:$0xff] }
  0x7f   :  { %853 = vmatprep.mubr.f32.mxu1 %v7019_v7  ;;  %5953 = vmatpush1.bf16.msra.mxu1 %v7683_v4 }
  0x80   :  { %5954 = vmatprep.subr.bf16.mxu1 %v7020_v32 }
  0x81   :  { %5809 = vmatpush1.bf16.msra.mxu0 %v5808_v12 }
  0x82   :  { %854 = vmatmul.mubr.f32.gmra.mrb[28].mxu1 %v5185_v16  ;;  %5811 = vmatprep.subr.bf16.mxu0 %v5810_v13  ;;  %v5832_v16 = vpack.c.bf16 %v268_v11, %v266_v10  ;;  %v291_v11 = vld [vmem:[%s10928_s7 + $0x148] sm:$0xff] }
  0x83   :  { %859 = vmatprep.mubr.f32.mxu1 %v7019_v7 }
  0x85   :  { %5813 = vmatpush1.bf16.msra.mxu0 %v5812_v17 }
  0x86   :  { %860 = vmatmul.mubr.f32.gmra.mrb[30].mxu1 %v5186_v18  ;;  %5815 = vmatprep.subr.bf16.mxu0 %v5814_v21  ;;  %v272_v21 = vld [vmem:[%s10928_s7 + $0xb0] sm:$0xff] }
  0x87   :  { %v5836_v26 = vpack.c.bf16 %v272_v21, %v270_v20  ;;  %v295_v20 = vld [vmem:[%s10928_s7 + $0x168] sm:$0xff]  ;;  %v297_v21 = vld [vmem:[%s10928_s7 + $0x178] sm:$0xff] }
 0x11d   :  { %v373_v29 = vpop.f32.mrb[0].mxu1  ;;  %v7605_v31 = vpop.f32.mrb[0].mxu0 }
 0x11e   :  { %v375_v35 = vpop.f32.mrb[1].mxu1  ;;  %v7619_v39 = vpop.f32.mrb[1].mxu0 }
 0x11f   :  { %5163 = vmatprep.mubr.msk.f32.mxu0 %vm469_vm0, %v375_v35 }
 0x120   :  { %559 = vmatmul.mubr.f32.vlgmr.msra.gmra.mrb[16].mxu0 %v373_v29  ;;  %v5838_v29 = vpack.c.bf16 %v277_v25, %v275_v24  ;;  %v5858_v25 = vpack.c.bf16 %v297_v21, %v295_v20 }
 0x121   :  { %5817 = vmatpush1.bf16.msra.mxu0 %v5816_v30  ;;  %v379_v46 = vpop.f32.mrb[2].mxu1  ;;  %v7638_v47 = vpop.f32.mrb[2].mxu0  ;;  %v274_v30 = vld [vmem:[%s10928_s7 + $0xc0] sm:$0xff] }
 0x122   :  { %5819 = vmatprep.subr.bf16.mxu0 %v5818_v36  ;;  %v381_v51 = vpop.f32.mrb[3].mxu1  ;;  %v7646_v52 = vpop.f32.mrb[3].mxu0  ;;  %v5840_v40 = vpack.c.bf16 %v276_v34, %v274_v30  ;;  %v5188_v30 = vld [vmem:[%s10928_s7 + $0x308] sm:$0xff]  ;;  %v5190_v34 = vld [vmem:[%s10928_s7 + $0x318] sm:$0xff] }
 0x123   :  { %5164 = vmatprep.mubr.msk.f32.mxu0 %vm469_vm0, %v381_v51  ;;  %v285_v51 = vld [vmem:[%s10928_s7 + $0x118] sm:$0xff]  ;;  %v5894_v38 = vpack.c.bf16 %v5190_v34, %v5188_v30  ;;  %v5207_v34 = vld [vmem:[%s10928_s7 + $0x3a0] sm:$0xff] }
 0x124   :  { %565 = vmatmul.mubr.f32.gmra.mrb[18].mxu0 %v379_v46  ;;  %v280_v46 = vld [vmem:[%s10928_s7 + $0xf0] sm:$0xff]  ;;  %v5846_v57 = vpack.c.bf16 %v285_v51, %v283_v50 }
 0x125   :  { %5821 = vmatpush1.bf16.msra.mxu0 %v5820_v45  ;;  %v385_v59 = vpop.f32.mrb[4].mxu1  ;;  %v7665_v60 = vpop.f32.mrb[4].mxu0  ;;  %v278_v45 = vld [vmem:[%s10928_s7 + $0xe0] sm:$0xff] }
 0x126   :  { %5823 = vmatprep.subr.bf16.mxu0 %v5822_v48  ;;  %v387_v0 = vpop.f32.mrb[5].mxu1  ;;  %v7673_v1 = vpop.f32.mrb[5].mxu0  ;;  %v5844_v53 = vpack.c.bf16 %v280_v46, %v278_v45  ;;  %v5192_v45 = vld [vmem:[%s10928_s7 + $0x328] sm:$0xff]  ;;  %v5194_v46 = vld [vmem:[%s10928_s7 + $0x338] sm:$0xff] }
 0x127   :  { %5165 = vmatprep.mubr.msk.f32.mxu0 %vm469_vm0, %v387_v0  ;;  %v289_v0 = vld [vmem:[%s10928_s7 + $0x138] sm:$0xff]  ;;  %v5898_v51 = vpack.c.bf16 %v5194_v46, %v5192_v45  ;;  %v5213_v45 = vld [vmem:[%s10928_s7 + $0x3d0] sm:$0xff]  ;;  %v5216_v46 = vld [vmem:[%s10928_s7 + $0x3e8] sm:$0xff] }
 0x128   :  { %571 = vmatmul.mubr.f32.gmra.mrb[20].mxu0 %v385_v59  ;;  %v284_v59 = vld [vmem:[%s10928_s7 + $0x110] sm:$0xff] }
 0x129   :  { %5825 = vmatpush1.bf16.msra.mxu0 %v5824_v58  ;;  %v391_v6 = vpop.f32.mrb[6].mxu1  ;;  %v7686_v8 = vpop.f32.mrb[6].mxu0  ;;  %v282_v58 = vld [vmem:[%s10928_s7 + $0x100] sm:$0xff] }
 0x12a   :  { %5827 = vmatprep.subr.bf16.mxu0 %v5826_v61  ;;  %v393_v12 = vpop.f32.mrb[7].mxu1  ;;  %v7694_v13 = vpop.f32.mrb[7].mxu0  ;;  %v5848_v2 = vpack.c.bf16 %v284_v59, %v282_v58  ;;  %v5196_v58 = vld [vmem:[%s10928_s7 + $0x348] sm:$0xff]  ;;  %v5198_v59 = vld [vmem:[%s10928_s7 + $0x358] sm:$0xff] }
 0x12b   :  { %5166 = vmatprep.mubr.msk.f32.mxu0 %vm469_vm0, %v393_v12 }
 0x12c   :  { %577 = vmatmul.mubr.f32.gmra.mrb[22].mxu0 %v391_v6  ;;  %v286_v6 = vld [vmem:[%s10928_s7 + $0x120] sm:$0xff] }
 0x12d   :  { %5829 = vmatpush1.bf16.msra.mxu0 %v5828_v5  ;;  %v397_v17 = vpop.f32.mrb[8].mxu1  ;;  %v7705_v18 = vpop.f32.mrb[8].mxu0  ;;  %v5850_v5 = vpack.c.bf16 %v289_v0, %v287_v63  ;;  %v5902_v0 = vpack.c.bf16 %v5198_v59, %v5196_v58  ;;  %v5219_v59 = vld [vmem:[%s10928_s7 + $0x400] sm:$0xff] }
 0x12e   :  { %5831 = vmatprep.subr.bf16.mxu0 %v5830_v9  ;;  %v399_v22 = vpop.f32.mrb[9].mxu1  ;;  %v7713_v23 = vpop.f32.mrb[9].mxu0  ;;  %v288_v9 = vld [vmem:[%s10928_s7 + $0x130] sm:$0xff] }
 0x12f   :  { %5167 = vmatprep.mubr.msk.f32.mxu0 %vm469_vm0, %v399_v22  ;;  %v5852_v12 = vpack.c.bf16 %v288_v9, %v286_v6 }
 0x130   :  { %583 = vmatmul.mubr.f32.gmra.mrb[24].mxu0 %v397_v17  ;;  %v292_v17 = vld [vmem:[%s10928_s7 + $0x150] sm:$0xff] }
 0x131   :  { %5833 = vmatpush1.bf16.msra.mxu0 %v5832_v16  ;;  %v403_v27 = vpop.f32.mrb[10].mxu1  ;;  %v7722_v28 = vpop.f32.mrb[10].mxu0  ;;  %v290_v16 = vld [vmem:[%s10928_s7 + $0x140] sm:$0xff] }
 0x132   :  { %5835 = vmatprep.subr.bf16.mxu0 %v5834_v19  ;;  %v405_v35 = vpop.f32.mrb[11].mxu1  ;;  %v7730_v36 = vpop.f32.mrb[11].mxu0  ;;  %v5856_v22 = vpack.c.bf16 %v292_v17, %v290_v16 }
 0x133   :  { %5168 = vmatprep.mubr.msk.f32.mxu0 %vm469_vm0, %v405_v35 }
 0x134   :  { %589 = vmatmul.mubr.f32.gmra.mrb[26].mxu0 %v403_v27  ;;  %v296_v27 = vld [vmem:[%s10928_s7 + $0x170] sm:$0xff] }
 0x135   :  { %5837 = vmatpush1.bf16.msra.mxu0 %v5836_v26  ;;  %v409_v41 = vpop.f32.mrb[12].mxu1  ;;  %v7739_v43 = vpop.f32.mrb[12].mxu0  ;;  %v294_v26 = vld [vmem:[%s10928_s7 + $0x160] sm:$0xff] }
 0x136   :  { %5839 = vmatprep.subr.bf16.mxu0 %v5838_v29  ;;  %v411_v48 = vpop.f32.mrb[13].mxu1  ;;  %v7747_v49 = vpop.f32.mrb[13].mxu0  ;;  %v5860_v35 = vpack.c.bf16 %v296_v27, %v294_v26 }
 0x137   :  { %5169 = vmatprep.mubr.msk.f32.mxu0 %vm469_vm0, %v411_v48 }
 0x138   :  { %595 = vmatmul.mubr.f32.gmra.mrb[28].mxu0 %v409_v41  ;;  %v5189_v41 = vld [vmem:[%s10928_s7 + $0x310] sm:$0xff] }
 0x139   :  { %5841 = vmatpush1.bf16.msra.mxu0 %v5840_v40  ;;  %v415_v54 = vpop.f32.mrb[14].mxu1  ;;  %v7756_v56 = vpop.f32.mrb[14].mxu0  ;;  %v5187_v40 = vld [vmem:[%s10928_s7 + $0x300] sm:$0xff] }
 0x13a   :  { %5843 = vmatprep.subr.bf16.mxu0 %v5842_v44  ;;  %v417_v61 = vpop.f32.mrb[15].mxu1  ;;  %v7764_v62 = vpop.f32.mrb[15].mxu0  ;;  %v5896_v48 = vpack.c.bf16 %v5189_v41, %v5187_v40  ;;  %v5211_v41 = vld [vmem:[%s10928_s7 + $0x3c0] sm:$0xff] }
 0x13b   :  { %5170 = vmatprep.mubr.msk.f32.mxu0 %vm469_vm0, %v417_v61 }
 0x13c   :  { %601 = vmatmul.mubr.f32.gmra.mrb[30].mxu0 %v415_v54  ;;  %v5193_v54 = vld [vmem:[%s10928_s7 + $0x330] sm:$0xff] }
 0x13d   :  { %5845 = vmatpush1.bf16.msra.mxu0 %v5844_v53  ;;  %5171 = vmatprep.mubr.msk.f32.mxu0 %vm469_vm0, %v7619_v39  ;;  %v7775_v3 = vpop.f32.mrb[16].mxu1  ;;  %v293_v39 = vld [vmem:[%s10928_s7 + $0x158] sm:$0xff]  ;;  %v5191_v53 = vld [vmem:[%s10928_s7 + $0x320] sm:$0xff] }
 0x13e   :  { %5847 = vmatprep.subr.bf16.mxu0 %v5846_v57  ;;  %v7783_v10 = vpop.f32.mrb[17].mxu1  ;;  %v5854_v15 = vpack.c.bf16 %v293_v39, %v291_v11  ;;  %v5900_v61 = vpack.c.bf16 %v5193_v54, %v5191_v53  ;;  %v5217_v53 = vld [vmem:[%s10928_s7 + $0x3f0] sm:$0xff]  ;;  %v5220_v54 = vld [vmem:[%s10928_s7 + $0x408] sm:$0xff] }
 0x141   :  { %5849 = vmatpush1.bf16.msra.mxu0 %v5848_v2  ;;  %v7791_v14 = vpop.f32.mrb[18].mxu1  ;;  %v5195_v2 = vld [vmem:[%s10928_s7 + $0x340] sm:$0xff] }
 0x142   :  { %5851 = vmatprep.subr.bf16.mxu0 %v5850_v5  ;;  %v7799_v19 = vpop.f32.mrb[19].mxu1  ;;  %v5197_v5 = vld [vmem:[%s10928_s7 + $0x350] sm:$0xff] }
 0x143   :  { %v5904_v9 = vpack.c.bf16 %v5197_v5, %v5195_v2  ;;  %v5223_v5 = vld [vmem:[%s10928_s7 + $0x420] sm:$0xff] }
 0x145   :  { %5853 = vmatpush1.bf16.msra.mxu0 %v5852_v12  ;;  %v7807_v24 = vpop.f32.mrb[20].mxu1  ;;  %v5199_v12 = vld [vmem:[%s10928_s7 + $0x360] sm:$0xff] }
 0x146   :  { %5855 = vmatprep.subr.bf16.mxu0 %v5854_v15  ;;  %v7815_v29 = vpop.f32.mrb[21].mxu1  ;;  %v5201_v15 = vld [vmem:[%s10928_s7 + $0x370] sm:$0xff] }
 0x147   :  { %v5908_v17 = vpack.c.bf16 %v5201_v15, %v5199_v12  ;;  %v5229_v12 = vld [vmem:[%s10928_s7 + $0x450] sm:$0xff]  ;;  %v5232_v15 = vld [vmem:[%s10928_s7 + $0x468] sm:$0xff] }
 0x149   :  { %5857 = vmatpush1.bf16.msra.mxu0 %v5856_v22  ;;  %v7823_v37 = vpop.f32.mrb[22].mxu1  ;;  %v5203_v22 = vld [vmem:[%s10928_s7 + $0x380] sm:$0xff] }
 0x14a   :  { %5859 = vmatprep.subr.bf16.mxu0 %v5858_v25  ;;  %v7831_v44 = vpop.f32.mrb[23].mxu1  ;;  %v5205_v25 = vld [vmem:[%s10928_s7 + $0x390] sm:$0xff] }
 0x14b   :  { %v5912_v27 = vpack.c.bf16 %v5205_v25, %v5203_v22  ;;  %v5233_v22 = vld [vmem:[%s10928_s7 + $0x470] sm:$0xff] }
 0x14d   :  { %5861 = vmatpush1.bf16.msra.mxu0 %v5860_v35  ;;  %v7839_v50 = vpop.f32.mrb[24].mxu1  ;;  %v5209_v35 = vld [vmem:[%s10928_s7 + $0x3b0] sm:$0xff] }
 0x14e   :  { %5895 = vmatprep.subr.bf16.mxu0 %v5894_v38  ;;  %v7847_v57 = vpop.f32.mrb[25].mxu1  ;;  %v5212_v38 = vld [vmem:[%s10928_s7 + $0x3c8] sm:$0xff] }
 0x150   :  { %696 = vmatmul.mubr.f32.vlgmr.msra.gmra.mrb[16].mxu0 %v7605_v31  ;;  %v5200_v31 = vld [vmem:[%s10928_s7 + $0x368] sm:$0xff] }
 0x151   :  { %5897 = vmatpush1.bf16.msra.mxu0 %v5896_v48  ;;  %5172 = vmatprep.mubr.msk.f32.mxu0 %vm469_vm0, %v7646_v52  ;;  %v7858_v63 = vpop.f32.mrb[26].mxu1  ;;  %v5202_v52 = vld [vmem:[%s10928_s7 + $0x378] sm:$0xff] }
 0x152   :  { %5899 = vmatprep.subr.bf16.mxu0 %v5898_v51  ;;  %v7866_v6 = vpop.f32.mrb[27].mxu1  ;;  %v5906_v39 = vpack.c.bf16 %v5202_v52, %v5200_v31  ;;  %v5215_v51 = vld [vmem:[%s10928_s7 + $0x3e0] sm:$0xff]  ;;  %v5225_v31 = vld [vmem:[%s10928_s7 + $0x430] sm:$0xff]  ;;  %v5228_v52 = vld [vmem:[%s10928_s7 + $0x448] sm:$0xff] }
 0x154   :  { %702 = vmatmul.mubr.f32.gmra.mrb[18].mxu0 %v7638_v47  ;;  %v5204_v47 = vld [vmem:[%s10928_s7 + $0x388] sm:$0xff] }
 0x155   :  { %5901 = vmatpush1.bf16.msra.mxu0 %v5900_v61  ;;  %5173 = vmatprep.mubr.msk.f32.mxu0 %vm469_vm0, %v7673_v1  ;;  %v7877_v11 = vpop.f32.mrb[28].mxu1  ;;  %v5206_v1 = vld [vmem:[%s10928_s7 + $0x398] sm:$0xff]  ;;  %v5221_v61 = vld [vmem:[%s10928_s7 + $0x410] sm:$0xff] }
 0x156   :  { %5903 = vmatprep.subr.bf16.mxu0 %v5902_v0  ;;  %v7885_v16 = vpop.f32.mrb[29].mxu1  ;;  %v5910_v21 = vpack.c.bf16 %v5206_v1, %v5204_v47  ;;  %v5224_v0 = vld [vmem:[%s10928_s7 + $0x428] sm:$0xff]  ;;  %v5234_v47 = vld [vmem:[%s10928_s7 + $0x478] sm:$0xff] }
 0x158   :  { %708 = vmatmul.mubr.f32.gmra.mrb[20].mxu0 %v7665_v60  ;;  %v5208_v60 = vld [vmem:[%s10928_s7 + $0x3a8] sm:$0xff] }
 0x159   :  { %5905 = vmatpush1.bf16.msra.mxu0 %v5904_v9  ;;  %5174 = vmatprep.mubr.msk.f32.mxu0 %vm469_vm0, %v7694_v13  ;;  %v7896_v20 = vpop.f32.mrb[30].mxu1  ;;  %v5210_v13 = vld [vmem:[%s10928_s7 + $0x3b8] sm:$0xff] }
 0x15a   :  { %5907 = vmatprep.subr.bf16.mxu0 %v5906_v39  ;;  %v7904_v26 = vpop.f32.mrb[31].mxu1  ;;  %v5914_v30 = vpack.c.bf16 %v5210_v13, %v5208_v60  ;;  %v5227_v39 = vld [vmem:[%s10928_s7 + $0x440] sm:$0xff]  ;;  %v1087_v60 = vld [vmem:[%s10930_s3 + $0x90] sm:$0xff]  ;;  %v1088_v13 = vld [vmem:[%s10930_s3 + $0x98] sm:$0xff] }
 0x15b   :  { %v5936_v1 = vpack.c.bf16 %v5229_v12, %v5227_v39 }
 0x15c   :  { %714 = vmatmul.mubr.f32.gmra.mrb[22].mxu0 %v7686_v8  ;;  %v5214_v8 = vld [vmem:[%s10928_s7 + $0x3d8] sm:$0xff] }
 0x15d   :  { %5909 = vmatpush1.bf16.msra.mxu0 %v5908_v17  ;;  %5175 = vmatprep.mubr.msk.f32.mxu0 %vm469_vm0, %v7713_v23  ;;  %v5916_v23 = vpack.c.bf16 %v5209_v35, %v5207_v34  ;;  %v5918_v40 = vpack.c.bf16 %v5214_v8, %v5212_v38  ;;  %v5938_v17 = vpack.c.bf16 %v5234_v47, %v5232_v15  ;;  %v1090_v34 = vld [vmem:[%s10930_s3 + $0xa8] sm:$0xff]  ;;  %v1091_v38 = vld [vmem:[%s10930_s3 + $0xb0] sm:$0xff]  ;;  %v1092_v8 = vld [vmem:[%s10930_s3 + $0xb8] sm:$0xff] }
 0x15e   :  { %5911 = vmatprep.subr.bf16.mxu0 %v5910_v21  ;;  %v5231_v21 = vld [vmem:[%s10928_s7 + $0x460] sm:$0xff] }
 0x15f   :  { %v5940_v25 = vpack.c.bf16 %v5233_v22, %v5231_v21 }
 0x160   :  { %720 = vmatmul.mubr.f32.gmra.mrb[24].mxu0 %v7705_v18  ;;  %v5218_v18 = vld [vmem:[%s10928_s7 + $0x3f8] sm:$0xff] }
 0x161   :  { %5913 = vmatpush1.bf16.msra.mxu0 %v5912_v27  ;;  %5176 = vmatprep.mubr.msk.f32.mxu0 %vm469_vm0, %v7730_v36  ;;  %v5920_v36 = vpack.c.bf16 %v5213_v45, %v5211_v41  ;;  %v5922_v48 = vpack.c.bf16 %v5218_v18, %v5216_v46  ;;  %v8084_v27 = vpack.c.bf16 %v1088_v13, %v1087_v60  ;;  %v1094_v41 = vld [vmem:[%s10930_s3 + $0xc8] sm:$0xff]  ;;  %v1095_v46 = vld [vmem:[%s10930_s3 + $0xd0] sm:$0xff]  ;;  %v1096_v18 = vld [vmem:[%s10930_s3 + $0xd8] sm:$0xff] }
 0x162   :  { %5915 = vmatprep.subr.bf16.mxu0 %v5914_v30  ;;  %v1089_v30 = vld [vmem:[%s10930_s3 + $0xa0] sm:$0xff] }
 0x163   :  { %v8094_v35 = vpack.c.bf16 %v1090_v34, %v1089_v30 }
 0x164   :  { %726 = vmatmul.mubr.f32.gmra.mrb[26].mxu0 %v7722_v28  ;;  %v5222_v28 = vld [vmem:[%s10928_s7 + $0x418] sm:$0xff] }
 0x165   :  { %5917 = vmatpush1.bf16.msra.mxu0 %v5916_v23  ;;  %5177 = vmatprep.mubr.msk.f32.mxu0 %vm469_vm0, %v7747_v49  ;;  %v5924_v49 = vpack.c.bf16 %v5217_v53, %v5215_v51  ;;  %v5926_v58 = vpack.c.bf16 %v5222_v28, %v5220_v54  ;;  %v8104_v23 = vpack.c.bf16 %v1092_v8, %v1091_v38  ;;  %v1098_v51 = vld [vmem:[%s10930_s3 + $0xe8] sm:$0xff]  ;;  %v8141_v54 = vld [vmem:[%s10930_s3 + $0xf0] sm:$0xff] }
 0x166   :  { %5919 = vmatprep.subr.bf16.mxu0 %v5918_v40  ;;  %v1093_v40 = vld [vmem:[%s10930_s3 + $0xc0] sm:$0xff] }
 0x167   :  { %v8114_v45 = vpack.c.bf16 %v1094_v41, %v1093_v40 }
 0x168   :  { %732 = vmatmul.mubr.f32.gmra.mrb[28].mxu0 %v7739_v43  ;;  %v5226_v43 = vld [vmem:[%s10928_s7 + $0x438] sm:$0xff] }
 0x169   :  { %5921 = vmatpush1.bf16.msra.mxu0 %v5920_v36  ;;  %5178 = vmatprep.mubr.msk.f32.mxu0 %vm469_vm0, %v7764_v62  ;;  %v5928_v62 = vpack.c.bf16 %v5221_v61, %v5219_v59  ;;  %v5930_v2 = vpack.c.bf16 %v5226_v43, %v5224_v0  ;;  %v8124_v36 = vpack.c.bf16 %v1096_v18, %v1095_v46 }
 0x16a   :  { %5923 = vmatprep.subr.bf16.mxu0 %v5922_v48  ;;  %v1097_v48 = vld [vmem:[%s10930_s3 + $0xe0] sm:$0xff] }
 0x16b   :  { %v8134_v53 = vpack.c.bf16 %v1098_v51, %v1097_v48 }
 0x16c   :  { %738 = vmatmul.mubr.f32.gmra.mrb[30].mxu0 %v7756_v56  ;;  %v5230_v56 = vld [vmem:[%s10928_s7 + $0x458] sm:$0xff]  ;;  %s1068_s7 = sld [smem:[#allocation2]] }
 0x16d   :  { %5925 = vmatpush1.bf16.msra.mxu0 %v5924_v49  ;;  %5235 = vmatprep.mubr.msk.f32.mxu0 %vm469_vm0, %v7783_v10  ;;  %v5932_v10 = vpack.c.bf16 %v5225_v31, %v5223_v5  ;;  %v5934_v9 = vpack.c.bf16 %v5230_v56, %v5228_v52 }
 0x16e   :  { %5927 = vmatprep.subr.bf16.mxu0 %v5926_v58 }
 0x171   :  { %5929 = vmatpush1.bf16.msra.mxu0 %v5928_v62 }
 0x172   :  { %5931 = vmatprep.subr.bf16.mxu0 %v5930_v2 }
 0x175   :  { %5933 = vmatpush1.bf16.msra.mxu0 %v5932_v10 }
 0x176   :  { %5935 = vmatprep.subr.bf16.mxu0 %v5934_v9 }
 0x179   :  { %5937 = vmatpush1.bf16.msra.mxu0 %v5936_v1 }
 0x17a   :  { %5939 = vmatprep.subr.bf16.mxu0 %v5938_v17 }
 0x17d   :  { %5941 = vmatpush1.bf16.msra.mxu0 %v5940_v25 }
 0x180   :  { %1004 = vmatmul.mubr.f32.vlgmr.msra.gmra.mrb[16].mxu0 %v7775_v3  ;;  %v1077_v3 = vld [vmem:[%s10930_s3 + $0x40] sm:$0xff] }
 0x181   :  { %5236 = vmatprep.mubr.msk.f32.mxu0 %vm469_vm0, %v7799_v19 }
 0x184   :  { %1010 = vmatmul.mubr.f32.gmra.mrb[18].mxu0 %v7791_v14  ;;  %v1078_v14 = vld [vmem:[%s10930_s3 + $0x48] sm:$0xff] }
 0x185   :  { %5237 = vmatprep.mubr.msk.f32.mxu0 %vm469_vm0, %v7815_v29  ;;  %v8034_v19 = vpack.c.bf16 %v1078_v14, %v1077_v3  ;;  %v1080_v29 = vld [vmem:[%s10930_s3 + $0x58] sm:$0xff] }
 0x187   :  { %5956 = vmatpush1.bf16.msra.mxu1 %v8034_v19 }
 0x188   :  { %1016 = vmatmul.mubr.f32.gmra.mrb[20].mxu0 %v7807_v24  ;;  %5957 = vmatprep.subr.bf16.mxu1 %v7020_v32  ;;  %v1079_v24 = vld [vmem:[%s10930_s3 + $0x50] sm:$0xff] }
 0x189   :  { %5238 = vmatprep.mubr.msk.f32.mxu0 %vm469_vm0, %v7831_v44  ;;  %v1081_v44 = vld [vmem:[%s10930_s3 + $0x60] sm:$0xff] }
 0x18c   :  { %1022 = vmatmul.mubr.f32.gmra.mrb[22].mxu0 %v7823_v37  ;;  %v8044_v37 = vpack.c.bf16 %v1080_v29, %v1079_v24 }
 0x18d   :  { %5239 = vmatprep.mubr.msk.f32.mxu0 %vm469_vm0, %v7847_v57 }
 0x18e   :  { %5959 = vmatpush1.bf16.msra.mxu1 %v8044_v37 }
 0x18f   :  { %5960 = vmatprep.subr.bf16.mxu1 %v7020_v32 }
 0x190   :  { %1028 = vmatmul.mubr.f32.gmra.mrb[24].mxu0 %v7839_v50  ;;  %v1082_v50 = vld [vmem:[%s10930_s3 + $0x68] sm:$0xff] }
 0x191   :  { %5240 = vmatprep.mubr.msk.f32.mxu0 %vm469_vm0, %v7866_v6  ;;  %v8054_v57 = vpack.c.bf16 %v1082_v50, %v1081_v44  ;;  %v1084_v6 = vld [vmem:[%s10930_s3 + $0x78] sm:$0xff] }
 0x193   :  { %5962 = vmatpush1.bf16.msra.mxu1 %v8054_v57 }
 0x194   :  { %1034 = vmatmul.mubr.f32.gmra.mrb[26].mxu0 %v7858_v63  ;;  %5963 = vmatprep.subr.bf16.mxu1 %v7020_v32  ;;  %v1083_v63 = vld [vmem:[%s10930_s3 + $0x70] sm:$0xff] }
 0x195   :  { %5241 = vmatprep.mubr.msk.f32.mxu0 %vm469_vm0, %v7885_v16  ;;  %v1085_v16 = vld [vmem:[%s10930_s3 + $0x80] sm:$0xff] }
 0x198   :  { %1040 = vmatmul.mubr.f32.gmra.mrb[28].mxu0 %v7877_v11  ;;  %v8064_v11 = vpack.c.bf16 %v1084_v6, %v1083_v63 }
 0x199   :  { %5242 = vmatprep.mubr.msk.f32.mxu0 %vm469_vm0, %v7904_v26 }
 0x19a   :  { %5965 = vmatpush1.bf16.msra.mxu1 %v8064_v11 }
 0x19b   :  { %5966 = vmatprep.subr.bf16.mxu1 %v7020_v32 }
 0x19c   :  { %1046 = vmatmul.mubr.f32.gmra.mrb[30].mxu0 %v7896_v20  ;;  %v1086_v20 = vld [vmem:[%s10930_s3 + $0x88] sm:$0xff] }
 0x19d   :  { %1777 = vmatprep.mubr.f32.mxu0 %v7019_v7  ;;  %v8074_v26 = vpack.c.bf16 %v1086_v20, %v1085_v16 }
 0x19f   :  { %5968 = vmatpush1.bf16.msra.mxu1 %v8074_v26 }
 0x1a0   :  { %5969 = vmatprep.subr.bf16.mxu1 %v7020_v32 }
 0x1a3   :  { %5971 = vmatpush1.bf16.msra.mxu1 %v8084_v27 }
 0x1a4   :  { %5972 = vmatprep.subr.bf16.mxu1 %v7020_v32 }
 0x1a7   :  { %5974 = vmatpush1.bf16.msra.mxu1 %v8094_v35 }
 0x1a8   :  { %5975 = vmatprep.subr.bf16.mxu1 %v7020_v32 }
 0x1ab   :  { %5977 = vmatpush1.bf16.msra.mxu1 %v8104_v23 }
 0x1ac   :  { %5978 = vmatprep.subr.bf16.mxu1 %v7020_v32 }
 0x1af   :  { %5980 = vmatpush1.bf16.msra.mxu1 %v8114_v45 }
 0x1b0   :  { %5981 = vmatprep.subr.bf16.mxu1 %v7020_v32 }
 0x1b3   :  { %5983 = vmatpush1.bf16.msra.mxu1 %v8124_v36 }
 0x1b4   :  { %5984 = vmatprep.subr.bf16.mxu1 %v7020_v32 }
 0x1b7   :  { %5986 = vmatpush1.bf16.msra.mxu1 %v8134_v53 }
 0x1b8   :  { %1203 = vmatprep.subr.mxu1 %v7019_v7 }
 0x1bb   :  { %1204 = vmatpush1.msra.mxu1 %v8141_v54 }
 0x253   :  { %v8144_v28 = vpop.f32.mrb[16].mxu0 }
 0x254   :  { %v8146_v49 = vpop.f32.mrb[17].mxu0 }
 0x255   :  { %v1118_v0 = vsel %vm1117_vm1, %v8146_v49, 0.0 }
 0x257   :  { %v8148_v58 = vpop.f32.mrb[18].mxu0 }
 0x258   :  { %v1102_v59 = vadd.f32 %v8148_v58, %v8144_v28  ;;  %v8152_v61 = vpop.f32.mrb[19].mxu0 }
 0x259   :  { %v1119_v43 = vsel %vm1117_vm1, %v8152_v61, 0.0 }
 0x25a   :  { %v1120_v62 = vadd.f32 %v1119_v43, %v1118_v0 }
 0x25b   :  { %v8158_v2 = vpop.f32.mrb[20].mxu0 }
 0x25c   :  { %v1103_v5 = vadd.f32 %v1102_v59, %v8158_v2  ;;  %v8161_v31 = vpop.f32.mrb[21].mxu0 }
 0x25d   :  { %v1121_v52 = vsel %vm1117_vm1, %v8161_v31, 0.0 }
 0x25e   :  { %v1122_v56 = vadd.f32 %v1121_v52, %v1120_v62  ;;  %v8206_v52 = vld [vmem:[%s10931_s4 + $0x8] sm:$0xff] }
 0x25f   :  { %v8165_v10 = vpop.f32.mrb[22].mxu0  ;;  %1218 = vmatprep.subr.mxu1 %v8206_v52 }
 0x260   :  { %v1104_v9 = vadd.f32 %v1103_v5, %v8165_v10  ;;  %v8168_v39 = vpop.f32.mrb[23].mxu0 }
 0x261   :  { %v1123_v12 = vsel %vm1117_vm1, %v8168_v39, 0.0 }
 0x262   :  { %v1124_v15 = vadd.f32 %v1123_v12, %v1122_v56  ;;  %v8212_v56 = vld [vmem:[%s10931_s4] sm:$0xff] }
 0x263   :  { %v8172_v47 = vpop.f32.mrb[24].mxu0 }
 0x264   :  { %v1105_v1 = vadd.f32 %v1104_v9, %v8172_v47  ;;  %v8175_v17 = vpop.f32.mrb[25].mxu0 }
 0x265   :  { %v1125_v21 = vsel %vm1117_vm1, %v8175_v17, 0.0 }
 0x266   :  { %v1126_v22 = vadd.f32 %v1125_v21, %v1124_v15 }
 0x267   :  { %v8179_v25 = vpop.f32.mrb[26].mxu0 }
 0x268   :  { %v1106_v3 = vadd.f32 %v1105_v1, %v8179_v25  ;;  %v8182_v14 = vpop.f32.mrb[27].mxu0 }
 0x269   :  { %v1127_v24 = vsel %vm1117_vm1, %v8182_v14, 0.0 }
 0x26a   :  { %v1128_v29 = vadd.f32 %v1127_v24, %v1126_v22 }
 0x26b   :  { %v8186_v44 = vpop.f32.mrb[28].mxu0 }
 0x26c   :  { %v1107_v50 = vadd.f32 %v1106_v3, %v8186_v44  ;;  %v8189_v63 = vpop.f32.mrb[29].mxu0 }
 0x26d   :  { %v1129_v6 = vsel %vm1117_vm1, %v8189_v63, 0.0 }
 0x26e   :  { %v1130_v16 = vadd.f32 %v1129_v6, %v1128_v29 }
 0x26f   :  { %v8193_v20 = vpop.f32.mrb[30].mxu0 }
 0x270   :  { %v1109_v60 = vsel %vm1108_vm2, %v8193_v20, 0.0  ;;  %v8197_v13 = vpop.f32.mrb[31].mxu0 }
 0x271   :  { %v1110_v30 = vadd.f32 %v1109_v60, %v1107_v50  ;;  %v1132_v34 = vsel %vm1131_vm3, %v8197_v13, 0.0 }
 0x272   :  { %v1133_v38 = vadd.f32 %v1132_v34, %v1130_v16 }
 0x273   :  { %v1111_v8 = vrot.slane %v1110_v30, 4 }
 0x274   :  { %v1134_v40 = vrot.slane %v1133_v38, 4 }
 0x275   :  { %v1112_v41 = vadd.f32 %v1111_v8, %v1110_v30 }
 0x276   :  { %v1135_v46 = vadd.f32 %v1134_v40, %v1133_v38 }
 0x277   :  { %v1113_v18 = vrot.slane %v1112_v41, 2 }
 0x278   :  { %v1136_v48 = vrot.slane %v1135_v46, 2 }
 0x279   :  { %v1114_v51 = vadd.f32 %v1113_v18, %v1112_v41 }
 0x27a   :  { %v1137_v59 = vadd.f32 %v1136_v48, %v1135_v46 }
 0x27b   :  { %v1115_v0 = vrot.slane %v1114_v51, 1 }
 0x27c   :  { %v1138_v43 = vrot.slane %v1137_v59, 1 }
 0x27d   :  { %v1116_v5 = vadd.f32 %v1115_v0, %v1114_v51 }
 0x27e   :  { %v1139_v62 = vadd.f32 %v1138_v43, %v1137_v59 }
 0x280   :  { %5243 = vmatprep.mubr.msk.f32.mxu1 %vm1117_vm1, %v1139_v62 }
 0x281   :  { %1208 = vmatmul.mubr.f32.vlgmr.msra.gmra.mrb[32].mxu1 %v1116_v5 }
 0x282   :  { %1282 = vmatprep.mubr.f32.mxu1 %v7019_v7  ;;  %1219 = vmatpush1.msra.mxu1 %v8212_v56 }
 0x283   :  { %5987 = vmatprep.subr.bf16.mxu1 %v7020_v32 }
 0x354   :  { %v1209_v9 = vpop.f32.mrb[32].mxu1 }
 0x355   :  { %v8216_v12 = vmul.f32 0.0005202914, %v1209_v9  ;;  %v1211_v15 = vpop.f32.mrb[33].mxu1 }
 0x357   :  { %5244 = vmatmul.mubr.msk.f32.vlgmr.msra.gmra.mrb[34].mxu1 %vm1214_vm4, %v8216_v12 }
 0x358   :  { %5989 = vmatpush1.bf16.msra.mxu1 %v7608_v33  ;;  %v1289_v33 = vlaneseq }
 0x359   :  { %5990 = vmatprep.subr.bf16.mxu1 %v7020_v32 }
 0x35c   :  { %5992 = vmatpush1.bf16.msra.mxu1 %v7629_v42  ;;  %v8252_v42 = vshrl.u32 %v1289_v33, 7 }
 0x35d   :  { %5993 = vmatprep.subr.bf16.mxu1 %v7020_v32 }
 0x360   :  { %5995 = vmatpush1.bf16.msra.mxu1 %v7656_v55  ;;  %v8255_v55 = vsub.s32 0, %v8252_v42 }
 0x361   :  { %5996 = vmatprep.subr.bf16.mxu1 %v7020_v32 }
 0x364   :  { %5998 = vmatpush1.bf16.msra.mxu1 %v7683_v4 }
 0x365   :  { %5999 = vmatprep.subr.bf16.mxu1 %v7020_v32 }
 0x368   :  { %6001 = vmatpush1.bf16.msra.mxu1 %v8034_v19 }
 0x369   :  { %6002 = vmatprep.subr.bf16.mxu1 %v7020_v32 }
 0x36c   :  { %6004 = vmatpush1.bf16.msra.mxu1 %v8044_v37 }
 0x36d   :  { %6005 = vmatprep.subr.bf16.mxu1 %v7020_v32 }
 0x370   :  { %6007 = vmatpush1.bf16.msra.mxu1 %v8054_v57 }
 0x371   :  { %6008 = vmatprep.subr.bf16.mxu1 %v7020_v32 }
 0x374   :  { %6010 = vmatpush1.bf16.msra.mxu1 %v8064_v11 }
 0x375   :  { %6011 = vmatprep.subr.bf16.mxu1 %v7020_v32 }
 0x378   :  { %6013 = vmatpush1.bf16.msra.mxu1 %v8074_v26 }
 0x379   :  { %6014 = vmatprep.subr.bf16.mxu1 %v7020_v32 }
 0x37c   :  { %6016 = vmatpush1.bf16.msra.mxu1 %v8084_v27 }
 0x37d   :  { %6017 = vmatprep.subr.bf16.mxu1 %v7020_v32 }
 0x380   :  { %6019 = vmatpush1.bf16.msra.mxu1 %v8094_v35 }
 0x381   :  { %6020 = vmatprep.subr.bf16.mxu1 %v7020_v32 }
 0x384   :  { %6022 = vmatpush1.bf16.msra.mxu1 %v8104_v23 }
 0x385   :  { %6023 = vmatprep.subr.bf16.mxu1 %v7020_v32 }
 0x388   :  { %6025 = vmatpush1.bf16.msra.mxu1 %v8114_v45 }
 0x389   :  { %6026 = vmatprep.subr.bf16.mxu1 %v7020_v32 }
 0x38c   :  { %6028 = vmatpush1.bf16.msra.mxu1 %v8124_v36 }
 0x38d   :  { %6029 = vmatprep.subr.bf16.mxu1 %v7020_v32 }
 0x390   :  { %6031 = vmatpush1.bf16.msra.mxu1 %v8134_v53 }
 0x391   :  { %1427 = vmatprep.subr.mxu1 %v7019_v7 }
 0x394   :  { %1428 = vmatpush1.msra.mxu1 %v8141_v54 }
 0x395   :  { %1448 = vmatprep.subr.mxu1 %v8206_v52 }
 0x42a   :  { %v1284_v4 = vpop.f32.mrb[34].mxu1 }
 0x42b   :  { %v1292_v19 = vrot.slane %v1284_v4, %v8255_v55  ;;  %v1286_v37 = vpop.f32.mrb[35].mxu1 }
 0x42c   :  { %v1296_v57 = vrot.slane %v1286_v37, %v8255_v55 }
 0x42d   :  { %v1297_v11 = vsub.f32 %v8144_v28, %v1292_v19  ;;  %v1299_v26 = vsub.f32 %v8148_v58, %v1292_v19  ;;  %v1301_v27 = vsub.f32 %v8158_v2, %v1292_v19  ;;  %v1303_v35 = vsub.f32 %v8165_v10, %v1292_v19 }
 0x42e   :  { %v1298_v23 = vsub.f32 %v8146_v49, %v1296_v57  ;;  %v1300_v45 = vsub.f32 %v8152_v61, %v1296_v57  ;;  %v1302_v36 = vsub.f32 %v8161_v31, %v1296_v57  ;;  %v1304_v53 = vsub.f32 %v8168_v39, %v1296_v57 }
 0x42f   :  { %v1306_v54 = vsub.f32 %v8175_v17, %v1296_v57  ;;  %v1308_v1 = vsub.f32 %v8182_v14, %v1296_v57  ;;  %v1310_v21 = vsub.f32 %v8189_v63, %v1296_v57  ;;  %v1312_v22 = vsub.f32 %v8197_v13, %v1296_v57 }
 0x430   :  { %v1314_v3 = vmul.f32 %v1298_v23, %v1298_v23  ;;  %v1316_v24 = vmul.f32 %v1300_v45, %v1300_v45  ;;  %v1318_v29 = vmul.f32 %v1302_v36, %v1302_v36  ;;  %v1320_v50 = vmul.f32 %v1304_v53, %v1304_v53 }
 0x431   :  { %v1322_v60 = vmul.f32 %v1306_v54, %v1306_v54  ;;  %v1305_v38 = vsub.f32 %v8172_v47, %v1292_v19  ;;  %v1307_v8 = vsub.f32 %v8179_v25, %v1292_v19  ;;  %v1309_v40 = vsub.f32 %v8186_v44, %v1292_v19 }
 0x432   :  { %v1343_v6 = vsel %vm1117_vm1, %v1314_v3, 0.0  ;;  %v1344_v16 = vsel %vm1117_vm1, %v1316_v24, 0.0  ;;  %v1346_v34 = vsel %vm1117_vm1, %v1318_v29, 0.0  ;;  %v1311_v46 = vsub.f32 %v8193_v20, %v1292_v19 }
 0x433   :  { %v1345_v30 = vadd.f32 %v1344_v16, %v1343_v6  ;;  %v1313_v18 = vmul.f32 %v1297_v11, %v1297_v11  ;;  %v1315_v48 = vmul.f32 %v1299_v26, %v1299_v26  ;;  %v1324_v51 = vmul.f32 %v1308_v1, %v1308_v1 }
 0x434   :  { %v1348_v59 = vsel %vm1117_vm1, %v1320_v50, 0.0  ;;  %v1317_v43 = vmul.f32 %v1301_v27, %v1301_v27  ;;  %v1326_v5 = vmul.f32 %v1310_v21, %v1310_v21  ;;  %v1350_v9 = vsel %vm1117_vm1, %v1322_v60, 0.0 }
 0x435   :  { %v1347_v41 = vadd.f32 %v1346_v34, %v1345_v30  ;;  %v1329_v62 = vadd.f32 %v1315_v48, %v1313_v18  ;;  %v1319_v33 = vmul.f32 %v1303_v35, %v1303_v35  ;;  %v1328_v37 = vmul.f32 %v1312_v22, %v1312_v22 }
 0x436   :  { %v1352_v57 = vsel %vm1117_vm1, %v1324_v51, 0.0  ;;  %v1321_v45 = vmul.f32 %v1305_v38, %v1305_v38  ;;  %v1354_v11 = vsel %vm1117_vm1, %v1326_v5, 0.0  ;;  %v1323_v36 = vmul.f32 %v1307_v8, %v1307_v8  ;;  %v1442_v5 = vld [vmem:[%s10933_s1] sm:$0x1] }
 0x437   :  { %v1349_v0 = vadd.f32 %v1348_v59, %v1347_v41  ;;  %v1330_v4 = vadd.f32 %v1329_v62, %v1317_v43  ;;  %v1356_v27 = vsel %vm1131_vm3, %v1328_v37, 0.0  ;;  %v1327_v54 = vmul.f32 %v1311_v46, %v1311_v46 }
 0x438   :  { %v1325_v21 = vmul.f32 %v1309_v40, %v1309_v40 }
 0x439   :  { %v1351_v15 = vadd.f32 %v1350_v9, %v1349_v0  ;;  %v1331_v19 = vadd.f32 %v1330_v4, %v1319_v33  ;;  %v1335_v22 = vsel %vm1108_vm2, %v1327_v54, 0.0  ;;  %v1438_v0 = vld [vmem:[%s10932_s2] sm:$0x1]  ;;  %s10938_s2 = sld [smem:[#allocation18_spill]] }
 0x43b   :  { %v1353_v23 = vadd.f32 %v1352_v57, %v1351_v15  ;;  %v1332_v53 = vadd.f32 %v1331_v19, %v1321_v45  ;;  %v8304_v57 = vstv %s1068_s7 }
 0x43d   :  { %v1355_v26 = vadd.f32 %v1354_v11, %v1353_v23  ;;  %v1333_v3 = vadd.f32 %v1332_v53, %v1323_v36 }
 0x43f   :  { %v1357_v1 = vadd.f32 %v1356_v27, %v1355_v26  ;;  %v1334_v35 = vadd.f32 %v1333_v3, %v1325_v21 }
 0x441   :  { %v1358_v24 = vrot.slane %v1357_v1, 4  ;;  %v1336_v50 = vadd.f32 %v1335_v22, %v1334_v35 }
 0x443   :  { %v1359_v29 = vadd.f32 %v1358_v24, %v1357_v1  ;;  %v1337_v16 = vrot.slane %v1336_v50, 4 }
 0x445   :  { %v1360_v6 = vrot.slane %v1359_v29, 2  ;;  %v1338_v30 = vadd.f32 %v1337_v16, %v1336_v50 }
 0x447   :  { %v1361_v60 = vadd.f32 %v1360_v6, %v1359_v29  ;;  %v1339_v38 = vrot.slane %v1338_v30, 2 }
 0x449   :  { %v1362_v34 = vrot.slane %v1361_v60, 1  ;;  %v1340_v41 = vadd.f32 %v1339_v38, %v1338_v30 }
 0x44b   :  { %v1363_v8 = vadd.f32 %v1362_v34, %v1361_v60  ;;  %v1341_v46 = vrot.slane %v1340_v41, 1 }
 0x44d   :  { %5245 = vmatprep.mubr.msk.f32.mxu1 %vm1117_vm1, %v1363_v8  ;;  %v1342_v18 = vadd.f32 %v1341_v46, %v1340_v41 }
 0x44f   :  { %1432 = vmatmul.mubr.f32.vlgmr.msra.gmra.mrb[36].mxu1 %v1342_v18 }
 0x450   :  { %1449 = vmatpush1.msra.mxu1 %v8212_v56  ;;  %1512 = vmatprep.mubr.f32.mxu1 %v7019_v7 }
 0x451   :  { %1522 = vmatprep.subr.mxu1 %v8206_v52 }
 0x522   :  { %v1433_v40 = vpop.f32.mrb[36].mxu1 }
 0x523   :  { %v1437_v48 = vmul.f32 0.0005202914, %v1433_v40  ;;  %v1435_v51 = vpop.f32.mrb[37].mxu1 }
 0x525   :  { %v1439_v59 = vadd.f32 1e-05, %v1437_v48 }
 0x527   :  { %6974 = vrsqrt.f32 %v1439_v59 }
 0x531   :  { %v6975_v43 = vpop.eup %6974 }
 0x532   :  { %v1441_v62 = vmul.f32 %v6975_v43, %v1438_v0 }
 0x534   :  { %5246 = vmatmul.mubr.msk.f32.vlgmr.msra.gmra.mrb[38].mxu1 %vm1214_vm4, %v1441_v62  ;;  %v1443_v9 = vmul.f32 %v1441_v62, %v8216_v12 }
 0x535   :  { %1523 = vmatpush1.msra.mxu1 %v8212_v56  ;;  %1586 = vmatprep.mubr.f32.mxu1 %v7019_v7 }
 0x536   :  { %v1444_v52 = vsub.f32 %v1442_v5, %v1443_v9 }
 0x538   :  { %5247 = vmatmul.mubr.msk.f32.vlgmr.msra.gmra.mrb[40].mxu1 %vm1214_vm4, %v1444_v52 }
 0x539   :  { %1945 = vmatprep.mubr.f32.mxu1 %v7019_v7 }
 0x607   :  { %v1514_v15 = vpop.f32.mrb[38].mxu1 }
 0x608   :  { %v8301_v33 = vrot.slane %v1514_v15, %v8255_v55  ;;  %v1516_v4 = vpop.f32.mrb[39].mxu1 }
 0x609   :  { %v1600_v37 = vrot.slane %v1516_v4, %v8255_v55 }
 0x60a   :  { %v1601_v56 = vmul.f32 %v8301_v33, %v8144_v28  ;;  %v1603_v12 = vmul.f32 %v8301_v33, %v8148_v58  ;;  %v1605_v23 = vmul.f32 %v8301_v33, %v8158_v2  ;;  %v1607_v45 = vmul.f32 %v8301_v33, %v8165_v10 }
 0x60b   :  { %v1588_v19 = vpop.f32.mrb[40].mxu1  ;;  %v1602_v11 = vmul.f32 %v1600_v37, %v8146_v49  ;;  %v1604_v26 = vmul.f32 %v1600_v37, %v8152_v61  ;;  %v1606_v36 = vmul.f32 %v1600_v37, %v8161_v31  ;;  %v1608_v53 = vmul.f32 %v1600_v37, %v8168_v39 }
 0x60c   :  { %v8319_v28 = vrot.slane %v1588_v19, %v8255_v55  ;;  %v1590_v27 = vpop.f32.mrb[41].mxu1  ;;  %v1610_v58 = vmul.f32 %v1600_v37, %v8175_v17  ;;  %v1612_v2 = vmul.f32 %v1600_v37, %v8182_v14  ;;  %v1609_v10 = vmul.f32 %v8301_v33, %v8172_v47 }
 0x60d   :  { %v1624_v54 = vrot.slane %v1590_v27, %v8255_v55  ;;  %v1611_v49 = vmul.f32 %v8301_v33, %v8179_v25  ;;  %v1614_v61 = vmul.f32 %v1600_v37, %v8189_v63  ;;  %v1616_v31 = vmul.f32 %v1600_v37, %v8197_v13  ;;  %v5642_v27 = vld [vmem:[%s10901_s21 + $0x3c8] sm:$0xff] }
 0x60e   :  { %v1625_v39 = vadd.f32 %v8319_v28, %v1601_v56  ;;  %v1627_v1 = vadd.f32 %v8319_v28, %v1603_v12  ;;  %v1629_v17 = vadd.f32 %v8319_v28, %v1605_v23  ;;  %v1631_v14 = vadd.f32 %v8319_v28, %v1607_v45 }
 0x60f   :  { %v1626_v21 = vadd.f32 %v1624_v54, %v1602_v11  ;;  %v1628_v3 = vadd.f32 %v1624_v54, %v1604_v26  ;;  %v1630_v47 = vadd.f32 %v1624_v54, %v1606_v36  ;;  %v1632_v24 = vadd.f32 %v1624_v54, %v1608_v53 }
 0x610   :  { %vm1641_vm5 = vcmp.gt.f32.partialorder %v1625_v39, 0.0  ;;  %vm1643_vm6 = vcmp.gt.f32.partialorder %v1627_v1, 0.0  ;;  %v1658_v25 = vmul.f32 %v8304_v57, %v1625_v39  ;;  %v1660_v63 = vmul.f32 %v8304_v57, %v1627_v1 }
 0x611   :  { %vm1642_vm7 = vcmp.gt.f32.partialorder %v1626_v21, 0.0  ;;  %vm1644_vm8 = vcmp.gt.f32.partialorder %v1628_v3, 0.0  ;;  %v1659_v13 = vmul.f32 %v8304_v57, %v1626_v21  ;;  %v1661_v35 = vmul.f32 %v8304_v57, %v1628_v3 }
 0x612   :  { %v1674_v22 = vsel %vm1641_vm5, %v1625_v39, %v1658_v25  ;;  %v1676_v29 = vsel %vm1643_vm6, %v1627_v1, %v1660_v63  ;;  %vm1646_vm9 = vcmp.gt.f32.partialorder %v1630_v47, 0.0  ;;  %vm1648_vm10 = vcmp.gt.f32.partialorder %v1632_v24, 0.0  ;;  %v5271_v25 = vld [vmem:[%s10936_s8 + $0x228] sm:$0xff] }
 0x613   :  { %v1675_v50 = vsel %vm1642_vm7, %v1626_v21, %v1659_v13  ;;  %v1677_v6 = vsel %vm1644_vm8, %v1628_v3, %v1661_v35  ;;  %v8338_v16 = vpack.c.bf16 %v1676_v29, %v1674_v22  ;;  %v1663_v60 = vmul.f32 %v8304_v57, %v1630_v47  ;;  %v5266_v21 = vld [vmem:[%s10936_s8 + $0x200] sm:$0xff]  ;;  %v5255_v63 = vld [vmem:[%s10937_s10 + $0x28] sm:$0xff]  ;;  %v5268_v22 = vld [vmem:[%s10936_s8 + $0x210] sm:$0xff] }
 0x614   :  { %v8341_v30 = vpack.c.bf16 %v1677_v6, %v1675_v50  ;;  %v1665_v34 = vmul.f32 %v8304_v57, %v1632_v24  ;;  %vm1645_vm11 = vcmp.gt.f32.partialorder %v1629_v17, 0.0  ;;  %vm1647_vm12 = vcmp.gt.f32.partialorder %v1631_v14, 0.0  ;;  %v1690_v3 = vld [vmem:[%s10937_s10] sm:$0xff]  ;;  %v1691_v13 = vld [vmem:[%s10937_s10 + $0x8] sm:$0xff]  ;;  %v5256_v50 = vld [vmem:[%s10937_s10 + $0x30] sm:$0xff] }
 0x615   :  { %v1679_v38 = vsel %vm1646_vm9, %v1630_v47, %v1663_v60  ;;  %v1662_v8 = vmul.f32 %v8304_v57, %v1629_v17  ;;  %v1664_v41 = vmul.f32 %v8304_v57, %v1631_v14  ;;  %v1634_v46 = vadd.f32 %v1624_v54, %v1610_v58  ;;  %v5270_v29 = vld [vmem:[%s10936_s8 + $0x220] sm:$0xff]  ;;  %v1692_v6 = vld [vmem:[%s10937_s10 + $0x10] sm:$0xff]  ;;  %v5273_v60 = vld [vmem:[%s10936_s8 + $0x238] sm:$0xff] }
 0x616   :  { %6033 = vmatprep.subr.bf16.mxu0 %v8341_v30  ;;  %6051 = vmatprep.subr.bf16.mxu1 %v8341_v30  ;;  %v1681_v18 = vsel %vm1648_vm10, %v1632_v24, %v1665_v34  ;;  %v1636_v40 = vadd.f32 %v1624_v54, %v1612_v2  ;;  %v1633_v48 = vadd.f32 %v8319_v28, %v1609_v10  ;;  %vm7021_vm6 = vmmov 1   ;;  %v5269_v24 = vld [vmem:[%s10936_s8 + $0x218] sm:$0xff] }
 0x617   :  { %6035 = vmatpush1.bf16.msra.mxu0 %v8338_v16  ;;  %6053 = vmatpush1.bf16.msra.mxu1 %v8338_v16  ;;  %v8351_v51 = vpack.c.bf16 %v1681_v18, %v1679_v38  ;;  %v1678_v59 = vsel %vm1645_vm11, %v1629_v17, %v1662_v8  ;;  %v1680_v0 = vsel %vm1647_vm12, %v1631_v14, %v1664_v41  ;;  %vm1650_vm13 = vcmp.gt.f32.partialorder %v1634_v46, 0.0  ;;  %vm8376_vm7 = vmpackc.low %vm1108_vm2, %vm7021_vm6  ;;  %v5264_v14 = vld [vmem:[%s10936_s8 + $0x1f0] sm:$0xff]  ;;  %v5257_v34 = vld [vmem:[%s10937_s10 + $0x38] sm:$0x3f] }
 0x618   :  { %v8353_v43 = vpack.c.bf16 %v1680_v0, %v1678_v59  ;;  %vm1652_vm14 = vcmp.gt.f32.partialorder %v1636_v40, 0.0  ;;  %v1667_v62 = vmul.f32 %v8304_v57, %v1634_v46  ;;  %v1669_v5 = vmul.f32 %v8304_v57, %v1636_v40  ;;  %v5272_v38 = vld [vmem:[%s10936_s8 + $0x230] sm:$0xff]  ;;  %v5274_v8 = vld [vmem:[%s10936_s8 + $0x240] sm:$0xff]  ;;  %v1693_v41 = vld [vmem:[%s10937_s10 + $0x18] sm:$0x3f] }
 0x619   :  { %6037 = vmatprep.subr.bf16.mxu0 %v8351_v51  ;;  %6055 = vmatprep.subr.bf16.mxu1 %v8351_v51  ;;  %v1635_v9 = vadd.f32 %v8319_v28, %v1611_v49  ;;  %vm1649_vm15 = vcmp.gt.f32.partialorder %v1633_v48, 0.0  ;;  %v1666_v52 = vmul.f32 %v8304_v57, %v1633_v48  ;;  %v1638_v15 = vadd.f32 %v1624_v54, %v1614_v61  ;;  %v5279_v18 = vld [vmem:[%s10936_s8 + $0x268] sm:$0xff]  ;;  %v5276_v59 = vld [vmem:[%s10936_s8 + $0x250] sm:$0xff]  ;;  %v5278_v0 = vld [vmem:[%s10936_s8 + $0x260] sm:$0xff] }
 0x61a   :  { %v1683_v4 = vsel %vm1650_vm13, %v1634_v46, %v1667_v62  ;;  %v1685_v37 = vsel %vm1652_vm14, %v1636_v40, %v1669_v5  ;;  %v1640_v56 = vadd.f32 %v1624_v54, %v1616_v31  ;;  %v1613_v12 = vmul.f32 %v8301_v33, %v8186_v44  ;;  %v5277_v46 = vld [vmem:[%s10936_s8 + $0x258] sm:$0xff]  ;;  %v5283_v5 = vld [vmem:[%s10936_s8 + $0x288] sm:$0xff] }
 0x61b   :  { %6039 = vmatpush1.bf16.msra.mxu0 %v8353_v43  ;;  %6057 = vmatpush1.bf16.msra.mxu1 %v8353_v43  ;;  %v8365_v23 = vpack.c.bf16 %v1685_v37, %v1683_v4  ;;  %vm1651_vm3 = vcmp.gt.f32.partialorder %v1635_v9, 0.0  ;;  %v1668_v45 = vmul.f32 %v8304_v57, %v1635_v9  ;;  %v1682_v19 = vsel %vm1649_vm15, %v1633_v48, %v1666_v52  ;;  %v5281_v62 = vld [vmem:[%s10936_s8 + $0x278] sm:$0xff]  ;;  %v5282_v4 = vld [vmem:[%s10936_s8 + $0x280] sm:$0xff]  ;;  %v5335_v37 = vld [vmem:[%s10937_s10 + $0x48] sm:$0xff] }
 0x61c   :  { %vm1654_vm4 = vcmp.gt.f32.partialorder %v1638_v15, 0.0  ;;  %vm1656_vm5 = vcmp.gt.f32.partialorder %v1640_v56, 0.0  ;;  %v1671_v11 = vmul.f32 %v8304_v57, %v1638_v15  ;;  %v1673_v26 = vmul.f32 %v8304_v57, %v1640_v56 }
 0x61d   :  { %6041 = vmatprep.subr.bf16.mxu0 %v8365_v23  ;;  %6059 = vmatprep.subr.bf16.mxu1 %v8365_v23  ;;  %v1684_v44 = vsel %vm1651_vm3, %v1635_v9, %v1668_v45  ;;  %v1615_v36 = vmul.f32 %v8301_v33, %v8193_v20  ;;  %v1637_v53 = vadd.f32 %v8319_v28, %v1613_v12  ;;  %v5265_v20 = vld [vmem:[%s10936_s8 + $0x1f8] sm:$0xff]  ;;  %v5267_v33 = vld [vmem:[%s10936_s8 + $0x208] sm:$0xff]  ;;  %vm1694_vm10 = vcmask 506880  }
 0x61e   :  { %v6042_v58 = vpack.c.bf16 %v1684_v44, %v1682_v19  ;;  %v1687_v2 = vsel %vm1654_vm4, %v1638_v15, %v1671_v11  ;;  %v1689_v10 = vsel %vm1656_vm5, %v1640_v56, %v1673_v26  ;;  %v6068_v1 = vpack.c.bf16 %v5267_v33, %v5265_v20  ;;  %v5280_v15 = vld [vmem:[%s10936_s8 + $0x270] sm:$0xff]  ;;  %v5285_v56 = vld [vmem:[%s10936_s8 + $0x298] sm:$0xff]  ;;  %v5287_v12 = vld [vmem:[%s10936_s8 + $0x2a8] sm:$0xff] }
 0x61f   :  { %v6044_v54 = vpack.c.bf16 %v1689_v10, %v1687_v2  ;;  %v1639_v49 = vadd.f32 %v8319_v28, %v1615_v36  ;;  %vm1653_vm8 = vcmp.gt.f32.partialorder %v1637_v53, 0.0  ;;  %v1670_v61 = vmul.f32 %v8304_v57, %v1637_v53  ;;  %v5284_v19 = vld [vmem:[%s10936_s8 + $0x290] sm:$0xff]  ;;  %v5286_v11 = vld [vmem:[%s10936_s8 + $0x2a0] sm:$0xff]  ;;  %v5289_v44 = vld [vmem:[%s10936_s8 + $0x2b8] sm:$0xff] }
 0x620   :  { %6043 = vmatpush1.bf16.msra.mxu0 %v6042_v58  ;;  %6061 = vmatpush1.bf16.msra.mxu1 %v6042_v58  ;;  %v6070_v47 = vpack.c.bf16 %v5266_v21, %v5264_v14  ;;  %v6072_v35 = vpack.c.bf16 %v5271_v25, %v5269_v24  ;;  %v6078_v48 = vpack.c.bf16 %v5274_v8, %v5272_v38  ;;  %v5336_v26 = vld [vmem:[%s10937_s10 + $0x50] sm:$0xff]  ;;  %v5291_v36 = vld [vmem:[%s10936_s8 + $0x2c8] sm:$0xff]  ;;  %v5290_v10 = vld [vmem:[%s10936_s8 + $0x2c0] sm:$0xff]  ;;  %vm2564_vm11 = vcmask 914432  }
 0x621   :  { %6046 = vmatprep.subr.msk.bf16.mxu0 %vm8376_vm7, %v6044_v54  ;;  %6064 = vmatprep.subr.msk.bf16.mxu1 %vm8376_vm7, %v6044_v54  ;;  %vm1655_vm9 = vcmp.gt.f32.partialorder %v1639_v49, 0.0  ;;  %v1672_v28 = vmul.f32 %v8304_v57, %v1639_v49  ;;  %v1686_v31 = vsel %vm1653_vm8, %v1637_v53, %v1670_v61  ;;  %v5254_v57 = vld [vmem:[%s10937_s10 + $0x20] sm:$0xff]  ;;  %v6082_v9 = vpack.c.bf16 %v5278_v0, %v5276_v59  ;;  %v5288_v2 = vld [vmem:[%s10936_s8 + $0x2b0] sm:$0xff]  ;;  %v5295_v61 = vld [vmem:[%s10936_s8 + $0x2e8] sm:$0xff] }
 0x622   :  { %v6084_v52 = vpack.c.bf16 %v5283_v5, %v5281_v62  ;;  %v6088_v45 = vpack.c.bf16 %v5287_v12, %v5285_v56  ;;  %v6090_v53 = vpack.c.bf16 %v5286_v11, %v5284_v19  ;;  %v6094_v20 = vpack.c.bf16 %v5290_v10, %v5288_v2  ;;  %v5296_v21 = vld [vmem:[%s10936_s8 + $0x2f0] sm:$0xff]  ;;  %v5314_v59 = vld [vmem:[%s10936_s8 + $0x380] sm:$0xff]  ;;  %v5317_v0 = vld [vmem:[%s10936_s8 + $0x398] sm:$0xff] }
 0x623   :  { %v1688_v39 = vsel %vm1655_vm9, %v1639_v49, %v1672_v28  ;;  %v5293_v49 = vld [vmem:[%s10936_s8 + $0x2d8] sm:$0xff]  ;;  %v5292_v28 = vld [vmem:[%s10936_s8 + $0x2d0] sm:$0xff]  ;;  %v1807_v2 = vld [vmem:[%s10936_s8 + $0x28] sm:$0xff]  ;;  %vm2647_vm12 = vcmask 130048   ;;  %vm3057_vm9 = vcmask 244736  }
 0x624   :  { %v6047_v17 = vpack.c.bf16 %v1688_v39, %v1686_v31  ;;  %v6096_v33 = vpack.c.bf16 %v5295_v61, %v5293_v49  ;;  %v5294_v31 = vld [vmem:[%s10936_s8 + $0x2e0] sm:$0xff]  ;;  %v5297_v39 = vld [vmem:[%s10936_s8 + $0x2f8] sm:$0xff]  ;;  %v5308_v8 = vld [vmem:[%s10936_s8 + $0x350] sm:$0xff] }
 0x625   :  { %v5320_v12 = vld [vmem:[%s10936_s8 + $0x3b0] sm:$0xff]  ;;  %v5325_v19 = vld [vmem:[%s10936_s8 + $0x3d8] sm:$0xff] }
 0x626   :  { %6049 = vmatpush1.bf16.msk.msra.mxu0 %vm8376_vm7, %v6047_v17  ;;  %6067 = vmatpush1.bf16.msk.msra.mxu1 %vm8376_vm7, %v6047_v17  ;;  %v5324_v11 = vld [vmem:[%s10936_s8 + $0x3d0] sm:$0xff]  ;;  %v1809_v10 = vld [vmem:[%s10936_s8 + $0x38] sm:$0xff] }
 0x627   :  { %6189 = vmatprep.subr.bf16.mxu1 %v8341_v30  ;;  %6069 = vmatprep.subr.bf16.mxu0 %v6068_v1  ;;  %v5275_v30 = vld [vmem:[%s10936_s8 + $0x248] sm:$0xff] }
 0x628   :  { %v6076_v40 = vpack.c.bf16 %v5275_v30, %v5273_v60  ;;  %v5299_v1 = vld [vmem:[%s10936_s8 + $0x308] sm:$0xff]  ;;  %v5309_v60 = vld [vmem:[%s10936_s8 + $0x358] sm:$0xff] }
 0x629   :  { %5260 = vmatmul.mubr.msk.f32.vlgmr.msra.gmra.mrb[42].mxu1 %vm1694_vm10, %v5254_v57  ;;  %5250 = vmatmul.mubr.msk.f32.vlgmr.msra.gmra.mrb[32].mxu0 %vm1694_vm10, %v1690_v3  ;;  %v6100_v14 = vpack.c.bf16 %v5299_v1, %v5297_v39  ;;  %v5298_v57 = vld [vmem:[%s10936_s8 + $0x300] sm:$0xff]  ;;  %v5301_v3 = vld [vmem:[%s10936_s8 + $0x318] sm:$0xff]  ;;  %v5311_v30 = vld [vmem:[%s10936_s8 + $0x368] sm:$0xff] }
 0x62a   :  { %6191 = vmatpush1.bf16.msra.mxu1 %v8338_v16  ;;  %1951 = vmatprep.mubr.f32.mxu1 %v7019_v7  ;;  %v6074_v16 = vpack.c.bf16 %v5270_v29, %v5268_v22  ;;  %v6102_v24 = vpack.c.bf16 %v5298_v57, %v5296_v21  ;;  %v5307_v22 = vld [vmem:[%s10936_s8 + $0x348] sm:$0xff]  ;;  %v6112_v38 = vpack.c.bf16 %v5311_v30, %v5309_v60  ;;  %v1816_v60 = vld [vmem:[%s10936_s8 + $0x70] sm:$0xff] }
 0x62b   :  { %6193 = vmatprep.subr.bf16.mxu1 %v8351_v51  ;;  %1783 = vmatprep.mubr.f32.mxu0 %v7019_v7  ;;  %v6080_v51 = vpack.c.bf16 %v5279_v18, %v5277_v46  ;;  %v5313_v46 = vld [vmem:[%s10936_s8 + $0x378] sm:$0xff]  ;;  %v5315_v18 = vld [vmem:[%s10936_s8 + $0x388] sm:$0xff] }
 0x62c   :  { %6071 = vmatpush1.bf16.msra.mxu0 %v6070_v47  ;;  %v5303_v47 = vld [vmem:[%s10936_s8 + $0x328] sm:$0xff] }
 0x62d   :  { %5261 = vmatmul.mubr.msk.f32.gmra.mrb[44].mxu1 %vm1694_vm10, %v5255_v63  ;;  %5251 = vmatmul.mubr.msk.f32.gmra.mrb[34].mxu0 %vm1694_vm10, %v1691_v13  ;;  %v6104_v25 = vpack.c.bf16 %v5303_v47, %v5301_v3  ;;  %v5300_v63 = vld [vmem:[%s10936_s8 + $0x310] sm:$0xff]  ;;  %v5302_v13 = vld [vmem:[%s10936_s8 + $0x320] sm:$0xff]  ;;  %v1811_v1 = vld [vmem:[%s10936_s8 + $0x48] sm:$0xff] }
 0x62e   :  { %6195 = vmatpush1.bf16.msra.mxu1 %v8353_v43  ;;  %1957 = vmatprep.mubr.f32.mxu1 %v7019_v7  ;;  %v5334_v43 = vld [vmem:[%s10937_s10 + $0x40] sm:$0xff]  ;;  %v6106_v29 = vpack.c.bf16 %v5302_v13, %v5300_v63  ;;  %v1815_v13 = vld [vmem:[%s10936_s8 + $0x68] sm:$0xff] }
 0x62f   :  { %6197 = vmatprep.subr.bf16.mxu1 %v8365_v23  ;;  %1789 = vmatprep.mubr.f32.mxu0 %v7019_v7  ;;  %v6086_v23 = vpack.c.bf16 %v5282_v4, %v5280_v15  ;;  %v5321_v15 = vld [vmem:[%s10936_s8 + $0x3b8] sm:$0xff]  ;;  %v5323_v4 = vld [vmem:[%s10936_s8 + $0x3c8] sm:$0xff]  ;;  %v1810_v47 = vld [vmem:[%s10936_s8 + $0x40] sm:$0xff] }
 0x630   :  { %6073 = vmatprep.subr.bf16.mxu0 %v6072_v35  ;;  %v5305_v35 = vld [vmem:[%s10936_s8 + $0x338] sm:$0xff]  ;;  %v6124_v56 = vpack.c.bf16 %v5323_v4, %v5321_v15  ;;  %v1823_v15 = vld [vmem:[%s10936_s8 + $0xa8] sm:$0xff] }
 0x631   :  { %5262 = vmatmul.mubr.msk.f32.gmra.mrb[46].mxu1 %vm1694_vm10, %v5256_v50  ;;  %5252 = vmatmul.mubr.msk.f32.gmra.mrb[36].mxu0 %vm1694_vm10, %v1692_v6  ;;  %v6108_v50 = vpack.c.bf16 %v5307_v22, %v5305_v35  ;;  %v5304_v6 = vld [vmem:[%s10936_s8 + $0x330] sm:$0xff]  ;;  %v1817_v35 = vld [vmem:[%s10936_s8 + $0x78] sm:$0xff] }
 0x632   :  { %6199 = vmatpush1.bf16.msra.mxu1 %v6042_v58  ;;  %1963 = vmatprep.mubr.f32.mxu1 %v7019_v7  ;;  %v6092_v58 = vpack.c.bf16 %v5291_v36, %v5289_v44  ;;  %v1805_v44 = vld [vmem:[%s10936_s8 + $0x18] sm:$0xff] }
 0x633   :  { %6202 = vmatprep.subr.msk.bf16.mxu1 %vm8376_vm7, %v6044_v54  ;;  %1795 = vmatprep.mubr.f32.mxu0 %v7019_v7  ;;  %v5337_v54 = vld [vmem:[%s10937_s10 + $0x58] sm:$0x3f] }
 0x634   :  { %6075 = vmatpush1.bf16.msra.mxu0 %v6074_v16  ;;  %v5306_v16 = vld [vmem:[%s10936_s8 + $0x340] sm:$0xff]  ;;  %v1825_v4 = vld [vmem:[%s10936_s8 + $0xb8] sm:$0xff] }
 0x635   :  { %5263 = vmatmul.mubr.msk.f32.gmra.mrb[48].mxu1 %vm1694_vm10, %v5257_v34  ;;  %5253 = vmatmul.mubr.msk.f32.gmra.mrb[38].mxu0 %vm1694_vm10, %v1693_v41  ;;  %v6110_v34 = vpack.c.bf16 %v5306_v16, %v5304_v6  ;;  %v5310_v41 = vld [vmem:[%s10936_s8 + $0x360] sm:$0xff]  ;;  %v6140_v6 = vpack.c.bf16 %v1817_v35, %v1815_v13  ;;  %v1832_v13 = vld [vmem:[%s10936_s8 + $0xf0] sm:$0xff] }
 0x636   :  { %6205 = vmatpush1.bf16.msk.msra.mxu1 %vm8376_vm7, %v6047_v17  ;;  %2316 = vmatprep.mubr.f32.mxu1 %v7019_v7  ;;  %v6098_v17 = vpack.c.bf16 %v5294_v31, %v5292_v28  ;;  %v1806_v28 = vld [vmem:[%s10936_s8 + $0x20] sm:$0xff]  ;;  %v1808_v31 = vld [vmem:[%s10936_s8 + $0x30] sm:$0xff] }
 0x637   :  { %6077 = vmatprep.subr.bf16.mxu0 %v6076_v40  ;;  %6266 = vmatprep.subr.bf16.mxu1 %v7020_v32  ;;  %v6114_v40 = vpack.c.bf16 %v5310_v41, %v5308_v8  ;;  %v1814_v16 = vld [vmem:[%s10936_s8 + $0x60] sm:$0xff]  ;;  %v1821_v8 = vld [vmem:[%s10936_s8 + $0x98] sm:$0xff] }
 0x638   :  { %6079 = vmatpush1.bf16.msra.mxu0 %v6078_v48  ;;  %v6116_v48 = vpack.c.bf16 %v5315_v18, %v5313_v46  ;;  %v2514_v41 = vld [vmem:[%s10938_s2] sm:$0xff]  ;;  %v2515_v46 = vld [vmem:[%s10938_s2 + $0x8] sm:$0xff]  ;;  %v2516_v18 = vld [vmem:[%s10938_s2 + $0x10] sm:$0xff] }
 0x639   :  { %5340 = vmatmul.mubr.msk.f32.vlgmr.msra.gmra.mrb[50].mxu1 %vm1694_vm10, %v5334_v43  ;;  %6081 = vmatprep.subr.bf16.mxu0 %v6080_v51  ;;  %v5312_v51 = vld [vmem:[%s10936_s8 + $0x370] sm:$0xff]  ;;  %v5319_v43 = vld [vmem:[%s10936_s8 + $0x3a8] sm:$0xff] }
 0x63a   :  { %2322 = vmatprep.mubr.f32.mxu1 %v7019_v7  ;;  %v6118_v62 = vpack.c.bf16 %v5314_v59, %v5312_v51  ;;  %v6120_v5 = vpack.c.bf16 %v5319_v43, %v5317_v0  ;;  %v8723_v59 = vpack.c.bf16 %v2515_v46, %v2514_v41  ;;  %v2517_v0 = vld [vmem:[%s10938_s2 + $0x18] sm:$0xff]  ;;  %v1834_v41 = vld [vmem:[%s10936_s8 + $0x100] sm:$0xff]  ;;  %v1836_v46 = vld [vmem:[%s10936_s8 + $0x110] sm:$0xff] }
 0x63c   :  { %6083 = vmatpush1.bf16.msra.mxu0 %v6082_v9  ;;  %v5316_v9 = vld [vmem:[%s10936_s8 + $0x390] sm:$0xff]  ;;  %6268 = vmatpush1.bf16.msra.mxu1 %v8723_v59 }
 0x63d   :  { %5341 = vmatmul.mubr.msk.f32.gmra.mrb[52].mxu1 %vm1694_vm10, %v5335_v37  ;;  %6085 = vmatprep.subr.bf16.mxu0 %v6084_v52  ;;  %v5318_v52 = vld [vmem:[%s10936_s8 + $0x3a0] sm:$0xff] }
 0x63e   :  { %2328 = vmatprep.mubr.f32.mxu1 %v7019_v7  ;;  %v6122_v37 = vpack.c.bf16 %v5318_v52, %v5316_v9  ;;  %6269 = vmatprep.subr.bf16.mxu1 %v7020_v32 }
 0x640   :  { %6087 = vmatpush1.bf16.msra.mxu0 %v6086_v23  ;;  %v5322_v23 = vld [vmem:[%s10936_s8 + $0x3c0] sm:$0xff] }
 0x641   :  { %5342 = vmatmul.mubr.msk.f32.gmra.mrb[54].mxu1 %vm1694_vm10, %v5336_v26  ;;  %6089 = vmatprep.subr.bf16.mxu0 %v6088_v45  ;;  %v6126_v45 = vpack.c.bf16 %v5322_v23, %v5320_v12  ;;  %v1803_v26 = vld [vmem:[%s10936_s8 + $0x8] sm:$0xff] }
 0x642   :  { %2334 = vmatprep.mubr.f32.mxu1 %v7019_v7  ;;  %v6128_v36 = vpack.c.bf16 %v1805_v44, %v1803_v26  ;;  %v2519_v12 = vld [vmem:[%s10938_s2 + $0x28] sm:$0xff]  ;;  %v1824_v26 = vld [vmem:[%s10936_s8 + $0xb0] sm:$0xff] }
 0x644   :  { %6091 = vmatpush1.bf16.msra.mxu0 %v6090_v53  ;;  %v1802_v53 = vld [vmem:[%s10936_s8] sm:$0xff] }
 0x645   :  { %5343 = vmatmul.mubr.msk.f32.gmra.mrb[56].mxu1 %vm1694_vm10, %v5337_v54  ;;  %6093 = vmatprep.subr.bf16.mxu0 %v6092_v58  ;;  %v1804_v58 = vld [vmem:[%s10936_s8 + $0x10] sm:$0xff]  ;;  %vm3799_vm10 = vcmask 785408  }
 0x646   :  { %v6130_v49 = vpack.c.bf16 %v1804_v58, %v1802_v53  ;;  %v1829_v53 = vld [vmem:[%s10936_s8 + $0xd8] sm:$0xff] }
 0x648   :  { %6095 = vmatpush1.bf16.msra.mxu0 %v6094_v20 }
 0x649   :  { %6097 = vmatprep.subr.bf16.mxu0 %v6096_v33  ;;  %v6132_v33 = vpack.c.bf16 %v1809_v10, %v1807_v2  ;;  %v2520_v2 = vld [vmem:[%s10938_s2 + $0x30] sm:$0xff]  ;;  %v2521_v10 = vld [vmem:[%s10938_s2 + $0x38] sm:$0xff] }
 0x64c   :  { %6099 = vmatpush1.bf16.msra.mxu0 %v6098_v17  ;;  %v1813_v17 = vld [vmem:[%s10936_s8 + $0x58] sm:$0xff] }
 0x64d   :  { %6101 = vmatprep.subr.bf16.mxu0 %v6100_v14  ;;  %v6134_v14 = vpack.c.bf16 %v1808_v31, %v1806_v28  ;;  %v6136_v3 = vpack.c.bf16 %v1813_v17, %v1811_v1  ;;  %v1828_v28 = vld [vmem:[%s10936_s8 + $0xd0] sm:$0xff]  ;;  %v1833_v1 = vld [vmem:[%s10936_s8 + $0xf8] sm:$0xff]  ;;  %v8797_v17 = vpack.c.bf16 %v2521_v10, %v2520_v2  ;;  %v1847_v10 = vld [vmem:[%s10936_s8 + $0x168] sm:$0xff] }
 0x64e   :  { %v1844_v2 = vld [vmem:[%s10936_s8 + $0x150] sm:$0xff] }
 0x650   :  { %6103 = vmatpush1.bf16.msra.mxu0 %v6102_v24  ;;  %v1812_v24 = vld [vmem:[%s10936_s8 + $0x50] sm:$0xff] }
 0x651   :  { %6105 = vmatprep.subr.bf16.mxu0 %v6104_v25  ;;  %v6138_v22 = vpack.c.bf16 %v1812_v24, %v1810_v47 }
 0x654   :  { %6107 = vmatpush1.bf16.msra.mxu0 %v6106_v29 }
 0x655   :  { %6109 = vmatprep.subr.bf16.mxu0 %v6108_v50 }
 0x658   :  { %6111 = vmatpush1.bf16.msra.mxu0 %v6110_v34 }
 0x659   :  { %6113 = vmatprep.subr.bf16.mxu0 %v6112_v38  ;;  %v1819_v38 = vld [vmem:[%s10936_s8 + $0x88] sm:$0xff] }
 0x65a   :  { %v6144_v43 = vpack.c.bf16 %v1821_v8, %v1819_v38 }
 0x65c   :  { %6115 = vmatpush1.bf16.msra.mxu0 %v6114_v40  ;;  %v6142_v40 = vpack.c.bf16 %v1816_v60, %v1814_v16  ;;  %v2524_v16 = vld [vmem:[%s10938_s2 + $0x50] sm:$0xff]  ;;  %v2525_v60 = vld [vmem:[%s10938_s2 + $0x58] sm:$0xff] }
 0x65d   :  { %6117 = vmatprep.subr.bf16.mxu0 %v6116_v48 }
 0x660   :  { %6119 = vmatpush1.bf16.msra.mxu0 %v6118_v62  ;;  %v1818_v62 = vld [vmem:[%s10936_s8 + $0x80] sm:$0xff] }
 0x661   :  { %6121 = vmatprep.subr.bf16.mxu0 %v6120_v5  ;;  %v1820_v5 = vld [vmem:[%s10936_s8 + $0x90] sm:$0xff] }
 0x662   :  { %v6146_v23 = vpack.c.bf16 %v1820_v5, %v1818_v62  ;;  %v2527_v62 = vld [vmem:[%s10938_s2 + $0x68] sm:$0xff]  ;;  %v6162_v5 = vpack.c.bf16 %v1836_v46, %v1834_v41  ;;  %v1861_v46 = vld [vmem:[%s10936_s8 + $0x1d8] sm:$0xff] }
 0x663   :  { %v1859_v41 = vld [vmem:[%s10936_s8 + $0x1c8] sm:$0xff] }
 0x664   :  { %6123 = vmatpush1.bf16.msra.mxu0 %v6122_v37  ;;  %v8744_v37 = vpack.c.bf16 %v2517_v0, %v2516_v18  ;;  %v8849_v0 = vpack.c.bf16 %v2525_v60, %v2524_v16 }
 0x665   :  { %6125 = vmatprep.subr.bf16.mxu0 %v6124_v56  ;;  %v2518_v56 = vld [vmem:[%s10938_s2 + $0x20] sm:$0xff] }
 0x666   :  { %6271 = vmatpush1.bf16.msra.mxu1 %v8744_v37  ;;  %v8771_v58 = vpack.c.bf16 %v2519_v12, %v2518_v56  ;;  %v1843_v56 = vld [vmem:[%s10936_s8 + $0x148] sm:$0xff]  ;;  %v1845_v12 = vld [vmem:[%s10936_s8 + $0x158] sm:$0xff] }
 0x667   :  { %6272 = vmatprep.subr.bf16.mxu1 %v7020_v32 }
 0x668   :  { %6127 = vmatpush1.bf16.msra.mxu0 %v6126_v45 }
 0x669   :  { %2105 = vmatprep.subr.mxu0 %v5325_v19  ;;  %v6148_v19 = vpack.c.bf16 %v1825_v4, %v1823_v15  ;;  %v1838_v15 = vld [vmem:[%s10936_s8 + $0x120] sm:$0xff]  ;;  %v1840_v4 = vld [vmem:[%s10936_s8 + $0x130] sm:$0xff] }
 0x66a   :  { %6274 = vmatpush1.bf16.msra.mxu1 %v8771_v58 }
 0x66b   :  { %6275 = vmatprep.subr.bf16.mxu1 %v7020_v32 }
 0x66c   :  { %2106 = vmatpush1.msra.mxu0 %v5324_v11  ;;  %v1822_v11 = vld [vmem:[%s10936_s8 + $0xa0] sm:$0xff] }
 0x66d   :  { %6129 = vmatprep.subr.bf16.mxu0 %v6128_v36  ;;  %v1827_v36 = vld [vmem:[%s10936_s8 + $0xc8] sm:$0xff] }
 0x66e   :  { %6277 = vmatpush1.bf16.msra.mxu1 %v8797_v17 }
 0x66f   :  { %6278 = vmatprep.subr.bf16.mxu1 %v7020_v32 }
 0x6fc   :  { %v1947_v54 = vpop.f32.mrb[42].mxu1  ;;  %v8663_v61 = vpop.f32.mrb[32].mxu0 }
 0x6fd   :  { %v1949_v20 = vpop.f32.mrb[43].mxu1  ;;  %v1781_v39 = vpop.f32.mrb[33].mxu0 }
 0x6fe   :  { %5326 = vmatprep.mubr.msk.f32.mxu0 %vm1117_vm1, %v1949_v20  ;;  %v6152_v20 = vpack.c.bf16 %v1829_v53, %v1827_v36  ;;  %v6168_v36 = vpack.c.bf16 %v1845_v12, %v1843_v56  ;;  %v1842_v53 = vld [vmem:[%s10936_s8 + $0x140] sm:$0xff]  ;;  %v5346_v12 = vld [vmem:[%s10936_s8 + $0x3f0] sm:$0xff] }
 0x6ff   :  { %2110 = vmatmul.mubr.f32.vlgmr.msra.gmra.mrb[40].mxu0 %v1947_v54  ;;  %v6150_v54 = vpack.c.bf16 %v1824_v26, %v1822_v11  ;;  %v2529_v11 = vld [vmem:[%s10938_s2 + $0x78] sm:$0xff]  ;;  %v6166_v26 = vpack.c.bf16 %v1840_v4, %v1838_v15  ;;  %v5345_v15 = vld [vmem:[%s10936_s8 + $0x3e8] sm:$0xff]  ;;  %v5344_v56 = vld [vmem:[%s10936_s8 + $0x3e0] sm:$0xff] }
 0x700   :  { %6131 = vmatpush1.bf16.msra.mxu0 %v6130_v49  ;;  %v1953_v21 = vpop.f32.mrb[44].mxu1  ;;  %v8678_v57 = vpop.f32.mrb[34].mxu0  ;;  %v5347_v4 = vld [vmem:[%s10936_s8 + $0x3f8] sm:$0xff] }
 0x701   :  { %6133 = vmatprep.subr.bf16.mxu0 %v6132_v33  ;;  %v1955_v25 = vpop.f32.mrb[45].mxu1  ;;  %v8686_v63 = vpop.f32.mrb[35].mxu0  ;;  %v1826_v33 = vld [vmem:[%s10936_s8 + $0xc0] sm:$0xff] }
 0x702   :  { %5327 = vmatprep.mubr.msk.f32.mxu0 %vm1117_vm1, %v1955_v25  ;;  %v1830_v25 = vld [vmem:[%s10936_s8 + $0xe0] sm:$0xff] }
 0x703   :  { %2116 = vmatmul.mubr.f32.gmra.mrb[42].mxu0 %v1953_v21  ;;  %v2523_v21 = vld [vmem:[%s10938_s2 + $0x48] sm:$0xff] }
 0x704   :  { %6135 = vmatpush1.bf16.msra.mxu0 %v6134_v14  ;;  %v1959_v29 = vpop.f32.mrb[46].mxu1  ;;  %v8695_v50 = vpop.f32.mrb[36].mxu0  ;;  %v2522_v14 = vld [vmem:[%s10938_s2 + $0x40] sm:$0xff] }
 0x705   :  { %6137 = vmatprep.subr.bf16.mxu0 %v6136_v3  ;;  %v1961_v30 = vpop.f32.mrb[47].mxu1  ;;  %v8703_v34 = vpop.f32.mrb[37].mxu0  ;;  %v6154_v3 = vpack.c.bf16 %v1828_v28, %v1826_v33  ;;  %v6170_v33 = vpack.c.bf16 %v1844_v2, %v1842_v53  ;;  %v6208_v53 = vpack.c.bf16 %v5346_v12, %v5344_v56  ;;  %v5372_v56 = vld [vmem:[%s10936_s8 + $0x4c0] sm:$0xff]  ;;  %v5374_v12 = vld [vmem:[%s10936_s8 + $0x4d0] sm:$0xff] }
 0x706   :  { %5328 = vmatprep.mubr.msk.f32.mxu0 %vm1117_vm1, %v1961_v30  ;;  %v6158_v30 = vpack.c.bf16 %v1832_v13, %v1830_v25  ;;  %v1850_v25 = vld [vmem:[%s10936_s8 + $0x180] sm:$0xff]  ;;  %v1852_v13 = vld [vmem:[%s10936_s8 + $0x190] sm:$0xff] }
 0x707   :  { %2122 = vmatmul.mubr.f32.gmra.mrb[44].mxu0 %v1959_v29  ;;  %v1837_v29 = vld [vmem:[%s10936_s8 + $0x118] sm:$0xff]  ;;  %v6178_v16 = vpack.c.bf16 %v1852_v13, %v1850_v25  ;;  %v5356_v25 = vld [vmem:[%s10936_s8 + $0x440] sm:$0xff]  ;;  %v5358_v13 = vld [vmem:[%s10936_s8 + $0x450] sm:$0xff] }
 0x708   :  { %6139 = vmatpush1.bf16.msra.mxu0 %v6138_v22  ;;  %v1965_v48 = vpop.f32.mrb[48].mxu1  ;;  %v8721_v51 = vpop.f32.mrb[38].mxu0  ;;  %v1835_v22 = vld [vmem:[%s10936_s8 + $0x108] sm:$0xff] }
 0x709   :  { %6141 = vmatprep.subr.bf16.mxu0 %v6140_v6  ;;  %v1967_v9 = vpop.f32.mrb[49].mxu1  ;;  %v8734_v52 = vpop.f32.mrb[39].mxu0  ;;  %v8823_v6 = vpack.c.bf16 %v2523_v21, %v2522_v14  ;;  %v6160_v8 = vpack.c.bf16 %v1837_v29, %v1835_v22  ;;  %v1851_v14 = vld [vmem:[%s10936_s8 + $0x188] sm:$0xff]  ;;  %v1853_v21 = vld [vmem:[%s10936_s8 + $0x198] sm:$0xff] }
 0x70a   :  { %5329 = vmatprep.mubr.msk.f32.mxu0 %vm1117_vm1, %v1967_v9  ;;  %v1855_v22 = vld [vmem:[%s10936_s8 + $0x1a8] sm:$0xff]  ;;  %v1857_v29 = vld [vmem:[%s10936_s8 + $0x1b8] sm:$0xff] }
 0x70b   :  { %2128 = vmatmul.mubr.f32.gmra.mrb[46].mxu0 %v1965_v48  ;;  %v1841_v48 = vld [vmem:[%s10936_s8 + $0x138] sm:$0xff]  ;;  %6280 = vmatpush1.bf16.msra.mxu1 %v8823_v6  ;;  %v6180_v60 = vpack.c.bf16 %v1857_v29, %v1855_v22  ;;  %v5361_v22 = vld [vmem:[%s10936_s8 + $0x468] sm:$0xff] }
 0x70c   :  { %6143 = vmatpush1.bf16.msra.mxu0 %v6142_v40  ;;  %5330 = vmatprep.mubr.msk.f32.mxu0 %vm1117_vm1, %v1781_v39  ;;  %v8754_v45 = vpop.f32.mrb[50].mxu1  ;;  %v1831_v39 = vld [vmem:[%s10936_s8 + $0xe8] sm:$0xff] }
 0x70d   :  { %6145 = vmatprep.subr.bf16.mxu0 %v6144_v43  ;;  %v8762_v44 = vpop.f32.mrb[51].mxu1  ;;  %v6156_v24 = vpack.c.bf16 %v1833_v1, %v1831_v39  ;;  %v1839_v40 = vld [vmem:[%s10936_s8 + $0x128] sm:$0xff]  ;;  %6281 = vmatprep.subr.bf16.mxu1 %v7020_v32  ;;  %v2526_v43 = vld [vmem:[%s10938_s2 + $0x60] sm:$0xff]  ;;  %v1848_v1 = vld [vmem:[%s10936_s8 + $0x170] sm:$0xff] }
 0x70e   :  { %v6164_v9 = vpack.c.bf16 %v1841_v48, %v1839_v40  ;;  %v1846_v39 = vld [vmem:[%s10936_s8 + $0x160] sm:$0xff]  ;;  %v6184_v48 = vpack.c.bf16 %v1861_v46, %v1859_v41  ;;  %v5366_v46 = vld [vmem:[%s10936_s8 + $0x490] sm:$0xff] }
 0x70f   :  { %6283 = vmatpush1.bf16.msra.mxu1 %v8849_v0  ;;  %v5364_v41 = vld [vmem:[%s10936_s8 + $0x480] sm:$0xff] }
 0x710   :  { %6147 = vmatpush1.bf16.msra.mxu0 %v6146_v23  ;;  %v8780_v49 = vpop.f32.mrb[52].mxu1  ;;  %v8871_v23 = vpack.c.bf16 %v2527_v62, %v2526_v43  ;;  %6284 = vmatprep.subr.bf16.mxu1 %v7020_v32  ;;  %v1858_v43 = vld [vmem:[%s10936_s8 + $0x1c0] sm:$0xff]  ;;  %v1860_v62 = vld [vmem:[%s10936_s8 + $0x1d0] sm:$0xff] }
 0x711   :  { %6149 = vmatprep.subr.bf16.mxu0 %v6148_v19  ;;  %v8788_v31 = vpop.f32.mrb[53].mxu1  ;;  %v2528_v19 = vld [vmem:[%s10938_s2 + $0x70] sm:$0xff] }
 0x713   :  { %6286 = vmatpush1.bf16.msra.mxu1 %v8871_v23 }
 0x714   :  { %6151 = vmatpush1.bf16.msra.mxu0 %v6150_v54  ;;  %v8806_v47 = vpop.f32.mrb[54].mxu1  ;;  %v1849_v54 = vld [vmem:[%s10936_s8 + $0x178] sm:$0xff]  ;;  %6287 = vmatprep.subr.bf16.mxu1 %v7020_v32 }
 0x715   :  { %6153 = vmatprep.subr.bf16.mxu0 %v6152_v20  ;;  %v8814_v35 = vpop.f32.mrb[55].mxu1  ;;  %v8893_v20 = vpack.c.bf16 %v2529_v11, %v2528_v19  ;;  %v6172_v28 = vpack.c.bf16 %v1849_v54, %v1847_v10  ;;  %v5349_v19 = vld [vmem:[%s10936_s8 + $0x408] sm:$0xff]  ;;  %v5351_v11 = vld [vmem:[%s10936_s8 + $0x418] sm:$0xff]  ;;  %v5348_v10 = vld [vmem:[%s10936_s8 + $0x400] sm:$0xff] }
 0x716   :  { %v6210_v2 = vpack.c.bf16 %v5351_v11, %v5349_v19  ;;  %v5350_v54 = vld [vmem:[%s10936_s8 + $0x410] sm:$0xff]  ;;  %v5377_v19 = vld [vmem:[%s10936_s8 + $0x4e8] sm:$0xff]  ;;  %v5379_v11 = vld [vmem:[%s10936_s8 + $0x4f8] sm:$0xff] }
 0x717   :  { %6289 = vmatpush1.bf16.msra.mxu1 %v8893_v20 }
 0x718   :  { %6155 = vmatpush1.bf16.msra.mxu0 %v6154_v3  ;;  %v8832_v38 = vpop.f32.mrb[56].mxu1  ;;  %6290 = vmatprep.subr.bf16.mxu1 %v7020_v32  ;;  %v6174_v3 = vpack.c.bf16 %v1848_v1, %v1846_v39  ;;  %v6212_v39 = vpack.c.bf16 %v5350_v54, %v5348_v10  ;;  %v5381_v10 = vld [vmem:[%s10936_s8 + $0x508] sm:$0xff]  ;;  %v5383_v54 = vld [vmem:[%s10936_s8 + $0x518] sm:$0xff] }
 0x719   :  { %6157 = vmatprep.subr.bf16.mxu0 %v6156_v24  ;;  %v8840_v18 = vpop.f32.mrb[57].mxu1  ;;  %v6176_v24 = vpack.c.bf16 %v1853_v21, %v1851_v14  ;;  %v5352_v14 = vld [vmem:[%s10936_s8 + $0x420] sm:$0xff]  ;;  %v5354_v21 = vld [vmem:[%s10936_s8 + $0x430] sm:$0xff] }
 0x71c   :  { %6159 = vmatpush1.bf16.msra.mxu0 %v6158_v30  ;;  %v1854_v30 = vld [vmem:[%s10936_s8 + $0x1a0] sm:$0xff] }
 0x71d   :  { %6161 = vmatprep.subr.bf16.mxu0 %v6160_v8  ;;  %v1856_v8 = vld [vmem:[%s10936_s8 + $0x1b0] sm:$0xff] }
 0x71e   :  { %v6182_v40 = vpack.c.bf16 %v1856_v8, %v1854_v30  ;;  %v5365_v30 = vld [vmem:[%s10936_s8 + $0x488] sm:$0xff] }
 0x720   :  { %6163 = vmatpush1.bf16.msra.mxu0 %v6162_v5  ;;  %v6186_v5 = vpack.c.bf16 %v1860_v62, %v1858_v43  ;;  %v5368_v43 = vld [vmem:[%s10936_s8 + $0x4a0] sm:$0xff]  ;;  %v5370_v62 = vld [vmem:[%s10936_s8 + $0x4b0] sm:$0xff] }
 0x721   :  { %6165 = vmatprep.subr.bf16.mxu0 %v6164_v9  ;;  %v1863_v9 = vld [vmem:[%s10936_s8 + $0x1e8] sm:$0xff] }
 0x724   :  { %6167 = vmatpush1.bf16.msra.mxu0 %v6166_v26  ;;  %v1862_v26 = vld [vmem:[%s10936_s8 + $0x1e0] sm:$0xff] }
 0x725   :  { %6169 = vmatprep.subr.bf16.mxu0 %v6168_v36  ;;  %v6206_v36 = vpack.c.bf16 %v5347_v4, %v5345_v15  ;;  %v6232_v15 = vpack.c.bf16 %v5370_v62, %v5368_v43  ;;  %v5401_v43 = vld [vmem:[%s10936_s8 + $0x5a8] sm:$0xff]  ;;  %v5403_v62 = vld [vmem:[%s10936_s8 + $0x5b8] sm:$0xff] }
 0x728   :  { %6171 = vmatpush1.bf16.msra.mxu0 %v6170_v33  ;;  %v5353_v33 = vld [vmem:[%s10936_s8 + $0x428] sm:$0xff] }
 0x729   :  { %6173 = vmatprep.subr.bf16.mxu0 %v6172_v28  ;;  %v5355_v28 = vld [vmem:[%s10936_s8 + $0x438] sm:$0xff] }
 0x72a   :  { %v6214_v1 = vpack.c.bf16 %v5355_v28, %v5353_v33  ;;  %v6242_v28 = vpack.c.bf16 %v5383_v54, %v5381_v10  ;;  %v2539_v54 = vld [vmem:[%s10938_s2 + $0xc8] sm:$0xff] }
 0x72c   :  { %6175 = vmatpush1.bf16.msra.mxu0 %v6174_v3  ;;  %v5359_v3 = vld [vmem:[%s10936_s8 + $0x458] sm:$0xff] }
 0x72d   :  { %6177 = vmatprep.subr.bf16.mxu0 %v6176_v24 }
 0x730   :  { %6179 = vmatpush1.bf16.msra.mxu0 %v6178_v16  ;;  %v5360_v16 = vld [vmem:[%s10936_s8 + $0x460] sm:$0xff] }
 0x731   :  { %6181 = vmatprep.subr.bf16.mxu0 %v6180_v60  ;;  %v5362_v60 = vld [vmem:[%s10936_s8 + $0x470] sm:$0xff] }
 0x734   :  { %6183 = vmatpush1.bf16.msra.mxu0 %v6182_v40  ;;  %v5369_v40 = vld [vmem:[%s10936_s8 + $0x4a8] sm:$0xff] }
 0x735   :  { %6185 = vmatprep.subr.bf16.mxu0 %v6184_v48 }
 0x738   :  { %6187 = vmatpush1.bf16.msra.mxu0 %v6186_v5  ;;  %v5373_v5 = vld [vmem:[%s10936_s8 + $0x4c8] sm:$0xff] }
 0x739   :  { %2206 = vmatprep.subr.mxu0 %v1863_v9  ;;  %v5375_v9 = vld [vmem:[%s10936_s8 + $0x4d8] sm:$0xff] }
 0x73a   :  { %v6234_v4 = vpack.c.bf16 %v5375_v9, %v5373_v5  ;;  %v6262_v9 = vpack.c.bf16 %v5403_v62, %v5401_v43 }
 0x73c   :  { %2207 = vmatpush1.msra.mxu0 %v1862_v26  ;;  %v6236_v26 = vpack.c.bf16 %v5374_v12, %v5372_v56  ;;  %v5405_v12 = vld [vmem:[%s10936_s8 + $0x5c8] sm:$0xff] }
 0x73d   :  { %2211 = vmatmul.mubr.f32.vlgmr.msra.gmra.mrb[40].mxu0 %v8663_v61  ;;  %6207 = vmatprep.subr.bf16.mxu0 %v6206_v36  ;;  %v5357_v61 = vld [vmem:[%s10936_s8 + $0x448] sm:$0xff]  ;;  %v6238_v36 = vpack.c.bf16 %v5379_v11, %v5377_v19  ;;  %v5404_v19 = vld [vmem:[%s10936_s8 + $0x5c0] sm:$0xff] }
 0x73e   :  { %6209 = vmatpush1.bf16.msra.mxu0 %v6208_v53  ;;  %5331 = vmatprep.mubr.msk.f32.mxu0 %vm1117_vm1, %v8686_v63  ;;  %v6216_v63 = vpack.c.bf16 %v5354_v21, %v5352_v14  ;;  %v6218_v24 = vpack.c.bf16 %v5359_v3, %v5357_v61  ;;  %v5376_v53 = vld [vmem:[%s10936_s8 + $0x4e0] sm:$0xff]  ;;  %v5385_v14 = vld [vmem:[%s10936_s8 + $0x528] sm:$0xff]  ;;  %v5387_v21 = vld [vmem:[%s10936_s8 + $0x538] sm:$0xff] }
 0x73f   :  { %6211 = vmatprep.subr.bf16.mxu0 %v6210_v2  ;;  %v5378_v2 = vld [vmem:[%s10936_s8 + $0x4f0] sm:$0xff]  ;;  %v6246_v3 = vpack.c.bf16 %v5387_v21, %v5385_v14  ;;  %v2535_v11 = vld [vmem:[%s10938_s2 + $0xa8] sm:$0xff]  ;;  %v2542_v14 = vld [vmem:[%s10938_s2 + $0xe0] sm:$0xff] }
 0x740   :  { %v6240_v33 = vpack.c.bf16 %v5378_v2, %v5376_v53  ;;  %v2537_v53 = vld [vmem:[%s10938_s2 + $0xb8] sm:$0xff]  ;;  %v2538_v2 = vld [vmem:[%s10938_s2 + $0xc0] sm:$0xff]  ;;  %v2543_v21 = vld [vmem:[%s10938_s2 + $0xe8] sm:$0xff] }
 0x741   :  { %2217 = vmatmul.mubr.f32.gmra.mrb[42].mxu0 %v8678_v57  ;;  %v5363_v57 = vld [vmem:[%s10936_s8 + $0x478] sm:$0xff] }
 0x742   :  { %6213 = vmatpush1.bf16.msra.mxu0 %v6212_v39  ;;  %5332 = vmatprep.mubr.msk.f32.mxu0 %vm1117_vm1, %v8703_v34  ;;  %v6220_v34 = vpack.c.bf16 %v5358_v13, %v5356_v25  ;;  %v6222_v29 = vpack.c.bf16 %v5363_v57, %v5361_v22  ;;  %v5380_v39 = vld [vmem:[%s10936_s8 + $0x500] sm:$0xff]  ;;  %v5389_v25 = vld [vmem:[%s10936_s8 + $0x548] sm:$0xff]  ;;  %v5391_v13 = vld [vmem:[%s10936_s8 + $0x558] sm:$0xff] }
 0x743   :  { %6215 = vmatprep.subr.bf16.mxu0 %v6214_v1  ;;  %v5382_v1 = vld [vmem:[%s10936_s8 + $0x510] sm:$0xff]  ;;  %v6250_v57 = vpack.c.bf16 %v5391_v13, %v5389_v25 }
 0x744   :  { %v6244_v61 = vpack.c.bf16 %v5382_v1, %v5380_v39  ;;  %v2541_v39 = vld [vmem:[%s10938_s2 + $0xd8] sm:$0xff] }
 0x745   :  { %2223 = vmatmul.mubr.f32.gmra.mrb[44].mxu0 %v8695_v50  ;;  %v5367_v50 = vld [vmem:[%s10936_s8 + $0x498] sm:$0xff] }
 0x746   :  { %6217 = vmatpush1.bf16.msra.mxu0 %v6216_v63  ;;  %5333 = vmatprep.mubr.msk.f32.mxu0 %vm1117_vm1, %v8734_v52  ;;  %v6224_v52 = vpack.c.bf16 %v5362_v60, %v5360_v16  ;;  %v6226_v8 = vpack.c.bf16 %v5367_v50, %v5365_v30  ;;  %v5384_v63 = vld [vmem:[%s10936_s8 + $0x520] sm:$0xff]  ;;  %v5393_v16 = vld [vmem:[%s10936_s8 + $0x568] sm:$0xff]  ;;  %v5395_v60 = vld [vmem:[%s10936_s8 + $0x578] sm:$0xff] }
 0x747   :  { %6219 = vmatprep.subr.bf16.mxu0 %v6218_v24  ;;  %v5386_v24 = vld [vmem:[%s10936_s8 + $0x530] sm:$0xff]  ;;  %v6254_v50 = vpack.c.bf16 %v5395_v60, %v5393_v16 }
 0x748   :  { %v6248_v22 = vpack.c.bf16 %v5386_v24, %v5384_v63  ;;  %v9226_v63 = vpack.c.bf16 %v2543_v21, %v2542_v14 }
 0x749   :  { %2229 = vmatmul.mubr.f32.gmra.mrb[46].mxu0 %v8721_v51  ;;  %v5371_v51 = vld [vmem:[%s10936_s8 + $0x4b8] sm:$0xff] }
 0x74a   :  { %6221 = vmatpush1.bf16.msra.mxu0 %v6220_v34  ;;  %5406 = vmatprep.mubr.msk.f32.mxu0 %vm1117_vm1, %v8762_v44  ;;  %v6228_v44 = vpack.c.bf16 %v5366_v46, %v5364_v41  ;;  %v6230_v48 = vpack.c.bf16 %v5371_v51, %v5369_v40  ;;  %v5388_v34 = vld [vmem:[%s10936_s8 + $0x540] sm:$0xff]  ;;  %v5397_v41 = vld [vmem:[%s10936_s8 + $0x588] sm:$0xff]  ;;  %v5399_v46 = vld [vmem:[%s10936_s8 + $0x598] sm:$0xff] }
 0x74b   :  { %6223 = vmatprep.subr.bf16.mxu0 %v6222_v29  ;;  %v5390_v29 = vld [vmem:[%s10936_s8 + $0x550] sm:$0xff]  ;;  %v6258_v51 = vpack.c.bf16 %v5399_v46, %v5397_v41 }
 0x74c   :  { %v6252_v30 = vpack.c.bf16 %v5390_v29, %v5388_v34 }
 0x74e   :  { %6225 = vmatpush1.bf16.msra.mxu0 %v6224_v52  ;;  %v5392_v52 = vld [vmem:[%s10936_s8 + $0x560] sm:$0xff] }
 0x74f   :  { %6227 = vmatprep.subr.bf16.mxu0 %v6226_v8  ;;  %v5394_v8 = vld [vmem:[%s10936_s8 + $0x570] sm:$0xff] }
 0x750   :  { %v6256_v40 = vpack.c.bf16 %v5394_v8, %v5392_v52 }
 0x752   :  { %6229 = vmatpush1.bf16.msra.mxu0 %v6228_v44  ;;  %v5396_v44 = vld [vmem:[%s10936_s8 + $0x580] sm:$0xff] }
 0x753   :  { %6231 = vmatprep.subr.bf16.mxu0 %v6230_v48  ;;  %v5398_v48 = vld [vmem:[%s10936_s8 + $0x590] sm:$0xff] }
 0x754   :  { %v6260_v5 = vpack.c.bf16 %v5398_v48, %v5396_v44 }
 0x756   :  { %6233 = vmatpush1.bf16.msra.mxu0 %v6232_v15  ;;  %v5400_v15 = vld [vmem:[%s10936_s8 + $0x5a0] sm:$0xff] }
 0x757   :  { %6235 = vmatprep.subr.bf16.mxu0 %v6234_v4  ;;  %v5402_v4 = vld [vmem:[%s10936_s8 + $0x5b0] sm:$0xff]  ;;  %s5690_s8 = sld [smem:[#allocation2 + $0x3]] }
 0x758   :  { %v6264_v56 = vpack.c.bf16 %v5402_v4, %v5400_v15 }
 0x75a   :  { %6237 = vmatpush1.bf16.msra.mxu0 %v6236_v26 }
 0x75b   :  { %6239 = vmatprep.subr.bf16.mxu0 %v6238_v36  ;;  %v2536_v36 = vld [vmem:[%s10938_s2 + $0xb0] sm:$0xff] }
 0x75c   :  { %v9194_v10 = vpack.c.bf16 %v2537_v53, %v2536_v36 }
 0x75e   :  { %6241 = vmatpush1.bf16.msra.mxu0 %v6240_v33  ;;  %v9200_v33 = vpack.c.bf16 %v2539_v54, %v2538_v2 }
 0x75f   :  { %6243 = vmatprep.subr.bf16.mxu0 %v6242_v28  ;;  %v2540_v28 = vld [vmem:[%s10938_s2 + $0xd0] sm:$0xff] }
 0x760   :  { %v9210_v1 = vpack.c.bf16 %v2541_v39, %v2540_v28 }
 0x762   :  { %6245 = vmatpush1.bf16.msra.mxu0 %v6244_v61  ;;  %v2545_v61 = vld [vmem:[%s10891_s11 + $0x8] sm:$0xff] }
 0x763   :  { %6247 = vmatprep.subr.bf16.mxu0 %v6246_v3  ;;  %v2547_v3 = vld [vmem:[%s10891_s11 + $0x18] sm:$0xff] }
 0x764   :  { %v9229_v24 = vpack.c.bf16 %v2547_v3, %v2545_v61 }
 0x766   :  { %6249 = vmatpush1.bf16.msra.mxu0 %v6248_v22 }
 0x767   :  { %6251 = vmatprep.subr.bf16.mxu0 %v6250_v57 }
 0x76a   :  { %6253 = vmatpush1.bf16.msra.mxu0 %v6252_v30 }
 0x76b   :  { %6255 = vmatprep.subr.bf16.mxu0 %v6254_v50 }
 0x76e   :  { %6257 = vmatpush1.bf16.msra.mxu0 %v6256_v40 }
 0x76f   :  { %6259 = vmatprep.subr.bf16.mxu0 %v6258_v51 }
 0x772   :  { %6261 = vmatpush1.bf16.msra.mxu0 %v6260_v5 }
 0x773   :  { %6263 = vmatprep.subr.bf16.mxu0 %v6262_v9 }
 0x776   :  { %6265 = vmatpush1.bf16.msra.mxu0 %v6264_v56 }
 0x777   :  { %2476 = vmatprep.subr.mxu0 %v5405_v12 }
 0x77a   :  { %2477 = vmatpush1.msra.mxu0 %v5404_v19 }
 0x77b   :  { %2481 = vmatmul.mubr.f32.vlgmr.msra.gmra.mrb[40].mxu0 %v8754_v45  ;;  %v2530_v45 = vld [vmem:[%s10938_s2 + $0x80] sm:$0xff] }
 0x77c   :  { %5407 = vmatprep.mubr.msk.f32.mxu0 %vm1117_vm1, %v8788_v31 }
 0x77f   :  { %2487 = vmatmul.mubr.f32.gmra.mrb[42].mxu0 %v8780_v49  ;;  %v2531_v49 = vld [vmem:[%s10938_s2 + $0x88] sm:$0xff] }
 0x780   :  { %5408 = vmatprep.mubr.msk.f32.mxu0 %vm1117_vm1, %v8814_v35  ;;  %v9161_v31 = vpack.c.bf16 %v2531_v49, %v2530_v45  ;;  %v2533_v35 = vld [vmem:[%s10938_s2 + $0x98] sm:$0xff] }
 0x782   :  { %6292 = vmatpush1.bf16.msra.mxu1 %v9161_v31 }
 0x783   :  { %2493 = vmatmul.mubr.f32.gmra.mrb[44].mxu0 %v8806_v47  ;;  %6293 = vmatprep.subr.bf16.mxu1 %v7020_v32  ;;  %v2532_v47 = vld [vmem:[%s10938_s2 + $0x90] sm:$0xff] }
 0x784   :  { %5409 = vmatprep.mubr.msk.f32.mxu0 %vm1117_vm1, %v8840_v18  ;;  %v2534_v18 = vld [vmem:[%s10938_s2 + $0xa0] sm:$0xff]  ;;  %vm2558_vm1 = vcmask 916480   ;;  %s5098_s2 = sshll.u32 %s7023_s30, 4  ;;  %s5099_s2 = int_to_ptr.vmem [resolvable:$true] %s5098_s2 }
 0x785   :  { %v9181_v26 = vpack.c.bf16 %v2535_v11, %v2534_v18  ;;  %v2544_v18 = vld [vmem:[%s10891_s11] sm:$0xff]  ;;  %v2546_v11 = vld [vmem:[%s10891_s11 + $0x10] sm:$0xff]  ;;  %s6992_s5 = scalar_lea.vmem %s5099_s2, 32  ;;  %p6997_p6 = scmp.lt.s32.totalorder %s5099_s2, %s5099_s2 }
 0x786   :  { %v9270_v36 = vpack.c.bf16 %v2546_v11, %v2544_v18  ;;  %p6993_p5 = scmp.ne.s32.totalorder %s5099_s2, %s6992_s5  ;;  %p6998_p7 = scmp.lt.s32.totalorder %s6992_s5, %s6992_s5 }
 0x787   :  { %2499 = vmatmul.mubr.f32.gmra.mrb[46].mxu0 %v8832_v38  ;;  %v9171_v38 = vpack.c.bf16 %v2533_v35, %v2532_v47 }
 0x788   :  { %3593 = vmatprep.mubr.f32.mxu0 %v7019_v7  ;;  %p6999_p8 = por %p6998_p7, %p6997_p6 }
 0x789   :  { %6295 = vmatpush1.bf16.msra.mxu1 %v9171_v38 }
 0x78a   :  { %6296 = vmatprep.subr.bf16.mxu1 %v7020_v32  ;;  %p7000_p9 = pnand %p6999_p8, %p6993_p5 }
 0x78d   :  { %6298 = vmatpush1.bf16.msra.mxu1 %v9181_v26 }
 0x78e   :  { %6299 = vmatprep.subr.bf16.mxu1 %v7020_v32 }
 0x791   :  { %6301 = vmatpush1.bf16.msra.mxu1 %v9194_v10 }
 0x792   :  { %6302 = vmatprep.subr.bf16.mxu1 %v7020_v32 }
 0x795   :  { %6304 = vmatpush1.bf16.msra.mxu1 %v9200_v33 }
 0x796   :  { %6305 = vmatprep.subr.bf16.mxu1 %v7020_v32 }
 0x799   :  { %6307 = vmatpush1.bf16.msra.mxu1 %v9210_v1 }
 0x79a   :  { %6308 = vmatprep.subr.bf16.mxu1 %v7020_v32 }
 0x79d   :  { %6310 = vmatpush1.bf16.msra.mxu1 %v9226_v63 }
 0x79e   :  { %6312 = vmatprep.subr.bf16.mxu1 %v9229_v24 }
 0x84e   :  { %v9233_v25 = vpop.f32.mrb[40].mxu0 }
 0x84f   :  { %v9235_v13 = vpop.f32.mrb[41].mxu0 }
 0x850   :  { %v2559_v29 = vsel %vm2558_vm1, %v9235_v13, 0.0 }
 0x852   :  { %v9237_v22 = vpop.f32.mrb[42].mxu0 }
 0x853   :  { %v2548_v57 = vadd.f32 %v9237_v22, %v9233_v25  ;;  %v9241_v34 = vpop.f32.mrb[43].mxu0 }
 0x854   :  { %v2560_v16 = vsel %vm2558_vm1, %v9241_v34, 0.0 }
 0x855   :  { %v2561_v60 = vadd.f32 %v2560_v16, %v2559_v29 }
 0x856   :  { %v9247_v30 = vpop.f32.mrb[44].mxu0 }
 0x857   :  { %v2549_v50 = vadd.f32 %v2548_v57, %v9247_v30  ;;  %v9250_v52 = vpop.f32.mrb[45].mxu0 }
 0x858   :  { %v2562_v8 = vsel %vm2558_vm1, %v9250_v52, 0.0 }
 0x859   :  { %v2563_v41 = vadd.f32 %v2562_v8, %v2561_v60 }
 0x85a   :  { %v9254_v46 = vpop.f32.mrb[46].mxu0 }
 0x85b   :  { %v2550_v40 = vsel %vm1108_vm2, %v9254_v46, 0.0  ;;  %v9258_v51 = vpop.f32.mrb[47].mxu0 }
 0x85c   :  { %v2551_v44 = vadd.f32 %v2550_v40, %v2549_v50  ;;  %v2565_v48 = vsel %vm2564_vm11, %v9258_v51, 0.0 }
 0x85d   :  { %v2566_v43 = vadd.f32 %v2565_v48, %v2563_v41 }
 0x85e   :  { %v2552_v62 = vrot.slane %v2551_v44, 4 }
 0x85f   :  { %v2567_v5 = vrot.slane %v2566_v43, 4 }
 0x860   :  { %v2553_v9 = vadd.f32 %v2552_v62, %v2551_v44 }
 0x861   :  { %v2568_v15 = vadd.f32 %v2567_v5, %v2566_v43 }
 0x862   :  { %v2554_v4 = vrot.slane %v2553_v9, 2 }
 0x863   :  { %v2569_v56 = vrot.slane %v2568_v15, 2 }
 0x864   :  { %v2555_v12 = vadd.f32 %v2554_v4, %v2553_v9 }
 0x865   :  { %v2570_v19 = vadd.f32 %v2569_v56, %v2568_v15 }
 0x866   :  { %v2556_v45 = vrot.slane %v2555_v12, 1 }
 0x867   :  { %v2571_v49 = vrot.slane %v2570_v19, 1 }
 0x868   :  { %v2557_v35 = vadd.f32 %v2556_v45, %v2555_v12 }
 0x869   :  { %v2572_v47 = vadd.f32 %v2571_v49, %v2570_v19 }
 0x86b   :  { %5411 = vmatprep.mubr.msk.f32.mxu1 %vm2558_vm1, %v2572_v47 }
 0x86c   :  { %2641 = vmatmul.mubr.f32.vlgmr.msra.gmra.mrb[58].mxu1 %v2557_v35 }
 0x86d   :  { %2715 = vmatprep.mubr.f32.mxu1 %v7019_v7  ;;  %6314 = vmatpush1.bf16.msra.mxu1 %v9270_v36 }
 0x86e   :  { %6315 = vmatprep.subr.bf16.mxu1 %v7020_v32 }
 0x93f   :  { %v2642_v53 = vpop.f32.mrb[58].mxu1 }
 0x940   :  { %v9274_v2 = vmul.f32 0.0022222223, %v2642_v53  ;;  %v2644_v54 = vpop.f32.mrb[59].mxu1 }
 0x941   :  { %v2843_v54 = vld [vmem:[%s10892_s12] sm:$0x1]  ;;  %s5410_s12 = sld [smem:[#allocation2 + $0x1]] }
 0x942   :  { %5412 = vmatmul.mubr.msk.f32.vlgmr.msra.gmra.mrb[60].mxu1 %vm2647_vm12, %v9274_v2 }
 0x943   :  { %6317 = vmatpush1.bf16.msra.mxu1 %v8723_v59 }
 0x944   :  { %6318 = vmatprep.subr.bf16.mxu1 %v7020_v32 }
 0x947   :  { %6320 = vmatpush1.bf16.msra.mxu1 %v8744_v37 }
 0x948   :  { %6321 = vmatprep.subr.bf16.mxu1 %v7020_v32 }
 0x94b   :  { %6323 = vmatpush1.bf16.msra.mxu1 %v8771_v58 }
 0x94c   :  { %6324 = vmatprep.subr.bf16.mxu1 %v7020_v32 }
 0x94f   :  { %6326 = vmatpush1.bf16.msra.mxu1 %v8797_v17 }
 0x950   :  { %6327 = vmatprep.subr.bf16.mxu1 %v7020_v32 }
 0x953   :  { %6329 = vmatpush1.bf16.msra.mxu1 %v8823_v6 }
 0x954   :  { %6330 = vmatprep.subr.bf16.mxu1 %v7020_v32 }
 0x957   :  { %6332 = vmatpush1.bf16.msra.mxu1 %v8849_v0 }
 0x958   :  { %6333 = vmatprep.subr.bf16.mxu1 %v7020_v32 }
 0x95b   :  { %6335 = vmatpush1.bf16.msra.mxu1 %v8871_v23 }
 0x95c   :  { %6336 = vmatprep.subr.bf16.mxu1 %v7020_v32 }
 0x95f   :  { %6338 = vmatpush1.bf16.msra.mxu1 %v8893_v20 }
 0x960   :  { %6339 = vmatprep.subr.bf16.mxu1 %v7020_v32 }
 0x963   :  { %6341 = vmatpush1.bf16.msra.mxu1 %v9161_v31 }
 0x964   :  { %6342 = vmatprep.subr.bf16.mxu1 %v7020_v32 }
 0x967   :  { %6344 = vmatpush1.bf16.msra.mxu1 %v9171_v38 }
 0x968   :  { %6345 = vmatprep.subr.bf16.mxu1 %v7020_v32 }
 0x96b   :  { %6347 = vmatpush1.bf16.msra.mxu1 %v9181_v26 }
 0x96c   :  { %6348 = vmatprep.subr.bf16.mxu1 %v7020_v32 }
 0x96f   :  { %6350 = vmatpush1.bf16.msra.mxu1 %v9194_v10 }
 0x970   :  { %6351 = vmatprep.subr.bf16.mxu1 %v7020_v32 }
 0x973   :  { %6353 = vmatpush1.bf16.msra.mxu1 %v9200_v33 }
 0x974   :  { %6354 = vmatprep.subr.bf16.mxu1 %v7020_v32 }
 0x977   :  { %6356 = vmatpush1.bf16.msra.mxu1 %v9210_v1 }
 0x978   :  { %6357 = vmatprep.subr.bf16.mxu1 %v7020_v32 }
 0x97b   :  { %6359 = vmatpush1.bf16.msra.mxu1 %v9226_v63 }
 0x97c   :  { %6361 = vmatprep.subr.bf16.mxu1 %v9229_v24 }
 0xa15   :  { %v2717_v59 = vpop.f32.mrb[60].mxu1 }
 0xa16   :  { %v2725_v37 = vrot.slane %v2717_v59, %v8255_v55  ;;  %v2719_v58 = vpop.f32.mrb[61].mxu1 }
 0xa17   :  { %v2729_v17 = vrot.slane %v2719_v58, %v8255_v55  ;;  %v2847_v58 = vld [vmem:[%s10893_s13] sm:$0x1] }
 0xa18   :  { %v2730_v6 = vsub.f32 %v9233_v25, %v2725_v37  ;;  %v2732_v0 = vsub.f32 %v9237_v22, %v2725_v37  ;;  %v2734_v23 = vsub.f32 %v9247_v30, %v2725_v37  ;;  %v2736_v20 = vsub.f32 %v9254_v46, %v2725_v37 }
 0xa19   :  { %v2731_v31 = vsub.f32 %v9235_v13, %v2729_v17  ;;  %v2733_v38 = vsub.f32 %v9241_v34, %v2729_v17  ;;  %v2735_v26 = vsub.f32 %v9250_v52, %v2729_v17  ;;  %v2737_v10 = vsub.f32 %v9258_v51, %v2729_v17 }
 0xa1a   :  { %v2738_v33 = vmul.f32 %v2730_v6, %v2730_v6  ;;  %v2740_v28 = vmul.f32 %v2732_v0, %v2732_v0  ;;  %v2744_v39 = vmul.f32 %v2736_v20, %v2736_v20  ;;  %v2742_v61 = vmul.f32 %v2734_v23, %v2734_v23 }
 0xa1b   :  { %v2739_v1 = vmul.f32 %v2731_v31, %v2731_v31  ;;  %v2741_v14 = vmul.f32 %v2733_v38, %v2733_v38  ;;  %v2743_v21 = vmul.f32 %v2735_v26, %v2735_v26  ;;  %v2745_v63 = vmul.f32 %v2737_v10, %v2737_v10 }
 0xa1c   :  { %v2746_v3 = vadd.f32 %v2740_v28, %v2738_v33  ;;  %v2748_v50 = vsel %vm1108_vm2, %v2744_v39, 0.0 }
 0xa1d   :  { %v2756_v57 = vsel %vm2558_vm1, %v2739_v1, 0.0  ;;  %v2757_v29 = vsel %vm2558_vm1, %v2741_v14, 0.0  ;;  %v2759_v8 = vsel %vm2558_vm1, %v2743_v21, 0.0  ;;  %v2761_v44 = vsel %vm2564_vm11, %v2745_v63, 0.0 }
 0xa1e   :  { %v2747_v16 = vadd.f32 %v2746_v3, %v2742_v61  ;;  %v2758_v60 = vadd.f32 %v2757_v29, %v2756_v57  ;;  %v3038_v21 = vstv %s5410_s12  ;;  %vm3884_vm11 = vcmask 261120  }
 0xa20   :  { %v2749_v41 = vadd.f32 %v2748_v50, %v2747_v16  ;;  %v2760_v40 = vadd.f32 %v2759_v8, %v2758_v60 }
 0xa22   :  { %v2762_v48 = vadd.f32 %v2761_v44, %v2760_v40  ;;  %v2750_v43 = vrot.slane %v2749_v41, 4 }
 0xa24   :  { %v2763_v62 = vrot.slane %v2762_v48, 4  ;;  %v2751_v5 = vadd.f32 %v2750_v43, %v2749_v41 }
 0xa26   :  { %v2764_v9 = vadd.f32 %v2763_v62, %v2762_v48  ;;  %v2752_v15 = vrot.slane %v2751_v5, 2 }
 0xa28   :  { %v2765_v4 = vrot.slane %v2764_v9, 2  ;;  %v2753_v56 = vadd.f32 %v2752_v15, %v2751_v5 }
 0xa2a   :  { %v2766_v12 = vadd.f32 %v2765_v4, %v2764_v9  ;;  %v2754_v19 = vrot.slane %v2753_v56, 1 }
 0xa2c   :  { %v2767_v45 = vrot.slane %v2766_v12, 1  ;;  %v2755_v47 = vadd.f32 %v2754_v19, %v2753_v56  ;;  %v3055_v19 = vld [vmem:[%s10894_s14] sm:$0xff] }
 0xa2e   :  { %v2768_v49 = vadd.f32 %v2767_v45, %v2766_v12  ;;  %v5490_v45 = vld [vmem:[%s10894_s14 + $0x20] sm:$0xff] }
 0xa30   :  { %5413 = vmatprep.mubr.msk.f32.mxu1 %vm2558_vm1, %v2768_v49  ;;  %v5427_v49 = vld [vmem:[%s10895_s15 + $0x1e8] sm:$0xff] }
 0xa31   :  { %2837 = vmatmul.mubr.f32.vlgmr.msra.gmra.mrb[62].mxu1 %v2755_v47  ;;  %v5429_v47 = vld [vmem:[%s10895_s15 + $0x1f8] sm:$0xff] }
 0xa32   :  { %6363 = vmatpush1.bf16.msra.mxu1 %v9270_v36  ;;  %2917 = vmatprep.mubr.f32.mxu1 %v7019_v7 }
 0xa33   :  { %6365 = vmatprep.subr.bf16.mxu1 %v9229_v24 }
 0xb04   :  { %v2838_v35 = vpop.f32.mrb[62].mxu1 }
 0xb05   :  { %v2842_v18 = vmul.f32 0.0022222223, %v2838_v35  ;;  %v2840_v11 = vpop.f32.mrb[63].mxu1  ;;  %v3056_v35 = vld [vmem:[%s10894_s14 + $0x8] sm:$0x3f] }
 0xb06   :  { %v6388_v11 = vpack.c.bf16 %v5429_v47, %v5427_v49 }
 0xb07   :  { %v2844_v53 = vadd.f32 1e-05, %v2842_v18  ;;  %v5491_v18 = vld [vmem:[%s10894_s14 + $0x28] sm:$0x3f] }
 0xb09   :  { %6976 = vrsqrt.f32 %v2844_v53  ;;  %v5426_v53 = vld [vmem:[%s10895_s15 + $0x1e0] sm:$0xff] }
 0xb13   :  { %v6977_v59 = vpop.eup %6976 }
 0xb14   :  { %v2846_v37 = vmul.f32 %v6977_v59, %v2843_v54  ;;  %v5428_v54 = vld [vmem:[%s10895_s15 + $0x1f0] sm:$0xff]  ;;  %v5431_v59 = vld [vmem:[%s10895_s15 + $0x208] sm:$0xff] }
 0xb16   :  { %5414 = vmatmul.mubr.msk.f32.vlgmr.msra.gmra.mrb[64].mxu1 %vm2647_vm12, %v2846_v37  ;;  %v2848_v17 = vmul.f32 %v2846_v37, %v9274_v2  ;;  %v5433_v37 = vld [vmem:[%s10895_s15 + $0x218] sm:$0xff] }
 0xb17   :  { %6367 = vmatpush1.bf16.msra.mxu1 %v9270_v36  ;;  %2991 = vmatprep.mubr.f32.mxu1 %v7019_v7 }
 0xb18   :  { %v2849_v24 = vsub.f32 %v2847_v58, %v2848_v17  ;;  %v5420_v58 = vld [vmem:[%s10894_s14 + $0x10] sm:$0xff]  ;;  %v6390_v17 = vpack.c.bf16 %v5428_v54, %v5426_v53  ;;  %v5469_v53 = vld [vmem:[%s10895_s15 + $0x338] sm:$0xff] }
 0xb1a   :  { %5415 = vmatmul.mubr.msk.f32.vlgmr.msra.gmra.mrb[66].mxu1 %vm2647_vm12, %v2849_v24  ;;  %v6392_v24 = vpack.c.bf16 %v5433_v37, %v5431_v59  ;;  %v5466_v37 = vld [vmem:[%s10895_s15 + $0x320] sm:$0xff] }
 0xb1b   :  { %3134 = vmatprep.mubr.f32.mxu1 %v7019_v7 }
 0xbe9   :  { %v2919_v6 = vpop.f32.mrb[64].mxu1 }
 0xbea   :  { %v3001_v0 = vrot.slane %v2919_v6, %v8255_v55  ;;  %v2921_v23 = vpop.f32.mrb[65].mxu1  ;;  %v5430_v6 = vld [vmem:[%s10895_s15 + $0x200] sm:$0xff] }
 0xbeb   :  { %v3005_v20 = vrot.slane %v2921_v23, %v8255_v55  ;;  %v5435_v23 = vld [vmem:[%s10895_s15 + $0x228] sm:$0xff] }
 0xbec   :  { %v3006_v31 = vmul.f32 %v3001_v0, %v9233_v25  ;;  %v3008_v2 = vmul.f32 %v3001_v0, %v9237_v22  ;;  %v3010_v36 = vmul.f32 %v3001_v0, %v9247_v30  ;;  %v3012_v38 = vmul.f32 %v3001_v0, %v9254_v46  ;;  %v5432_v0 = vld [vmem:[%s10895_s15 + $0x210] sm:$0xff] }
 0xbed   :  { %v3007_v26 = vmul.f32 %v3005_v20, %v9235_v13  ;;  %v3009_v10 = vmul.f32 %v3005_v20, %v9241_v34  ;;  %v3011_v33 = vmul.f32 %v3005_v20, %v9250_v52  ;;  %v3013_v28 = vmul.f32 %v3005_v20, %v9258_v51  ;;  %v2993_v39 = vpop.f32.mrb[66].mxu1  ;;  %v5437_v20 = vld [vmem:[%s10895_s15 + $0x238] sm:$0xff] }
 0xbee   :  { %v3017_v1 = vrot.slane %v2993_v39, %v8255_v55  ;;  %v2995_v14 = vpop.f32.mrb[67].mxu1 }
 0xbef   :  { %v3021_v25 = vrot.slane %v2995_v14, %v8255_v55  ;;  %v5440_v14 = vld [vmem:[%s10895_s15 + $0x250] sm:$0xff] }
 0xbf0   :  { %v3022_v22 = vadd.f32 %v3017_v1, %v3006_v31  ;;  %v3024_v61 = vadd.f32 %v3017_v1, %v3008_v2  ;;  %v3026_v30 = vadd.f32 %v3017_v1, %v3010_v36  ;;  %v3028_v3 = vadd.f32 %v3017_v1, %v3012_v38  ;;  %v5421_v31 = vld [vmem:[%s10894_s14 + $0x18] sm:$0x3f]  ;;  %v5434_v38 = vld [vmem:[%s10895_s15 + $0x220] sm:$0xff] }
 0xbf1   :  { %v3023_v46 = vadd.f32 %v3021_v25, %v3007_v26  ;;  %v3025_v63 = vadd.f32 %v3021_v25, %v3009_v10  ;;  %v3027_v13 = vadd.f32 %v3021_v25, %v3011_v33  ;;  %v3029_v57 = vadd.f32 %v3021_v25, %v3013_v28  ;;  %v5436_v26 = vld [vmem:[%s10895_s15 + $0x230] sm:$0xff]  ;;  %v5439_v10 = vld [vmem:[%s10895_s15 + $0x248] sm:$0xff]  ;;  %v5441_v33 = vld [vmem:[%s10895_s15 + $0x258] sm:$0xff] }
 0xbf2   :  { %vm3034_vm13 = vcmp.gt.f32.partialorder %v3026_v30, 0.0  ;;  %vm3036_vm14 = vcmp.gt.f32.partialorder %v3028_v3, 0.0  ;;  %v3043_v34 = vmul.f32 %v3038_v21, %v3026_v30  ;;  %v3045_v52 = vmul.f32 %v3038_v21, %v3028_v3  ;;  %v5438_v1 = vld [vmem:[%s10895_s15 + $0x240] sm:$0xff]  ;;  %v5445_v25 = vld [vmem:[%s10895_s15 + $0x278] sm:$0xff] }
 0xbf3   :  { %vm3031_vm15 = vcmp.gt.f32.partialorder %v3023_v46, 0.0  ;;  %vm3033_vm3 = vcmp.gt.f32.partialorder %v3025_v63, 0.0  ;;  %v3040_v51 = vmul.f32 %v3038_v21, %v3023_v46  ;;  %v3042_v29 = vmul.f32 %v3038_v21, %v3025_v63 }
 0xbf4   :  { %vm3030_vm4 = vcmp.gt.f32.partialorder %v3022_v22, 0.0  ;;  %vm3032_vm5 = vcmp.gt.f32.partialorder %v3024_v61, 0.0  ;;  %v3039_v16 = vmul.f32 %v3038_v21, %v3022_v22  ;;  %v3041_v60 = vmul.f32 %v3038_v21, %v3024_v61 }
 0xbf5   :  { %v3048_v50 = vsel %vm3031_vm15, %v3023_v46, %v3040_v51  ;;  %v3050_v8 = vsel %vm3033_vm3, %v3025_v63, %v3042_v29  ;;  %vm3035_vm6 = vcmp.gt.f32.partialorder %v3027_v13, 0.0  ;;  %vm3037_vm8 = vcmp.gt.f32.partialorder %v3029_v57, 0.0  ;;  %v5447_v46 = vld [vmem:[%s10895_s15 + $0x288] sm:$0xff]  ;;  %v5449_v63 = vld [vmem:[%s10895_s15 + $0x298] sm:$0xff] }
 0xbf6   :  { %v6368_v41 = vpack.c.bf16 %v3050_v8, %v3048_v50  ;;  %v3047_v40 = vsel %vm3030_vm4, %v3022_v22, %v3039_v16  ;;  %v3049_v44 = vsel %vm3032_vm5, %v3024_v61, %v3041_v60  ;;  %v3044_v48 = vmul.f32 %v3038_v21, %v3027_v13  ;;  %v5451_v51 = vld [vmem:[%s10895_s15 + $0x2a8] sm:$0xff]  ;;  %v5453_v29 = vld [vmem:[%s10895_s15 + $0x2b8] sm:$0xff]  ;;  %v5450_v50 = vld [vmem:[%s10895_s15 + $0x2a0] sm:$0xff] }
 0xbf7   :  { %v6370_v43 = vpack.c.bf16 %v3049_v44, %v3047_v40  ;;  %v3046_v62 = vmul.f32 %v3038_v21, %v3029_v57  ;;  %v3051_v5 = vsel %vm3034_vm13, %v3026_v30, %v3043_v34  ;;  %v3053_v9 = vsel %vm3036_vm14, %v3028_v3, %v3045_v52  ;;  %v5443_v21 = vld [vmem:[%s10895_s15 + $0x268] sm:$0xff]  ;;  %v5442_v30 = vld [vmem:[%s10895_s15 + $0x260] sm:$0xff]  ;;  %v5444_v3 = vld [vmem:[%s10895_s15 + $0x270] sm:$0xff] }
 0xbf8   :  { %6369 = vmatprep.subr.bf16.mxu1 %v6368_v41  ;;  %6509 = vmatprep.subr.bf16.mxu0 %v6368_v41  ;;  %v3052_v15 = vsel %vm3035_vm6, %v3027_v13, %v3044_v48  ;;  %v6375_v4 = vpack.c.bf16 %v3053_v9, %v3051_v5  ;;  %v6394_v2 = vpack.c.bf16 %v5432_v0, %v5430_v6  ;;  %v5446_v34 = vld [vmem:[%s10895_s15 + $0x280] sm:$0xff]  ;;  %v5448_v52 = vld [vmem:[%s10895_s15 + $0x290] sm:$0xff]  ;;  %v5457_v40 = vld [vmem:[%s10895_s15 + $0x2d8] sm:$0xff]  ;;  %vm4259_vm3 = vcmask 113664  }
 0xbf9   :  { %6371 = vmatpush1.bf16.msra.mxu1 %v6370_v43  ;;  %6511 = vmatpush1.bf16.msra.mxu0 %v6370_v43  ;;  %v3054_v56 = vsel %vm3037_vm8, %v3029_v57, %v3046_v62  ;;  %v6396_v36 = vpack.c.bf16 %v5437_v20, %v5435_v23  ;;  %v6398_v28 = vpack.c.bf16 %v5436_v26, %v5434_v38  ;;  %v5452_v8 = vld [vmem:[%s10895_s15 + $0x2b0] sm:$0xff]  ;;  %v5459_v5 = vld [vmem:[%s10895_s15 + $0x2e8] sm:$0xff]  ;;  %v5461_v9 = vld [vmem:[%s10895_s15 + $0x2f8] sm:$0xff]  ;;  %vm7022_vm5 = vmmov 0  }
 0xbfa   :  { %v6372_v12 = vpack.c.bf16 %v3054_v56, %v3052_v15  ;;  %v6400_v39 = vpack.c.bf16 %v5441_v33, %v5439_v10  ;;  %v6402_v22 = vpack.c.bf16 %v5440_v14, %v5438_v1  ;;  %v6404_v61 = vpack.c.bf16 %v5445_v25, %v5443_v21  ;;  %v5456_v62 = vld [vmem:[%s10895_s15 + $0x2d0] sm:$0xff]  ;;  %v5458_v56 = vld [vmem:[%s10895_s15 + $0x2e0] sm:$0xff] }
 0xbfb   :  { %v6406_v13 = vpack.c.bf16 %v5444_v3, %v5442_v30  ;;  %v6408_v57 = vpack.c.bf16 %v5449_v63, %v5447_v46  ;;  %v6410_v16 = vpack.c.bf16 %v5448_v52, %v5446_v34  ;;  %v6412_v60 = vpack.c.bf16 %v5453_v29, %v5451_v51  ;;  %v5470_v23 = vld [vmem:[%s10895_s15 + $0x340] sm:$0xff]  ;;  %v5472_v20 = vld [vmem:[%s10895_s15 + $0x350] sm:$0xff] }
 0xbfc   :  { %6374 = vmatprep.subr.msk.bf16.mxu1 %vm8376_vm7, %v6372_v12  ;;  %6514 = vmatprep.subr.msk.bf16.mxu0 %vm8376_vm7, %v6372_v12  ;;  %v6414_v44 = vpack.c.bf16 %v5452_v8, %v5450_v50  ;;  %v5474_v26 = vld [vmem:[%s10895_s15 + $0x360] sm:$0xff]  ;;  %v5476_v10 = vld [vmem:[%s10895_s15 + $0x370] sm:$0xff]  ;;  %vm5013_vm6 = vcmask 48128  }
 0xbfd   :  { %6377 = vmatpush1.bf16.msk.msra.mxu1 %vm8376_vm7, %v6375_v4  ;;  %6517 = vmatpush1.bf16.msk.msra.mxu0 %vm8376_vm7, %v6375_v4  ;;  %v6438_v33 = vpack.c.bf16 %v5476_v10, %v5474_v26  ;;  %v5478_v1 = vld [vmem:[%s10895_s15 + $0x380] sm:$0xff]  ;;  %v5480_v21 = vld [vmem:[%s10895_s15 + $0x390] sm:$0xff] }
 0xbfe   :  { %6379 = vmatprep.subr.bf16.mxu1 %v6368_v41  ;;  %v5455_v41 = vld [vmem:[%s10895_s15 + $0x2c8] sm:$0xff]  ;;  %v6442_v25 = vpack.c.bf16 %v5480_v21, %v5478_v1  ;;  %v5482_v30 = vld [vmem:[%s10895_s15 + $0x3a0] sm:$0xff]  ;;  %v5484_v46 = vld [vmem:[%s10895_s15 + $0x3b0] sm:$0xff] }
 0xbff   :  { %v6416_v48 = vpack.c.bf16 %v5457_v40, %v5455_v41  ;;  %v6446_v63 = vpack.c.bf16 %v5484_v46, %v5482_v30  ;;  %v3147_v41 = vld [vmem:[%s10895_s15] sm:$0xff]  ;;  %v3149_v40 = vld [vmem:[%s10895_s15 + $0x10] sm:$0xff] }
 0xc00   :  { %5418 = vmatmul.mubr.msk.f32.vlgmr.msra.gmra.mrb[68].mxu1 %vm3057_vm9, %v3055_v19  ;;  %5494 = vmatmul.mubr.msk.f32.vlgmr.msra.gmra.mrb[48].mxu0 %vm3057_vm9, %v5490_v45  ;;  %v5463_v19 = vld [vmem:[%s10895_s15 + $0x308] sm:$0xff]  ;;  %v5465_v45 = vld [vmem:[%s10895_s15 + $0x318] sm:$0xff]  ;;  %v3167_v10 = vld [vmem:[%s10895_s15 + $0xa0] sm:$0xff] }
 0xc01   :  { %6381 = vmatpush1.bf16.msra.mxu1 %v6370_v43  ;;  %3140 = vmatprep.mubr.f32.mxu1 %v7019_v7  ;;  %v5454_v43 = vld [vmem:[%s10895_s15 + $0x2c0] sm:$0xff]  ;;  %v6424_v47 = vpack.c.bf16 %v5465_v45, %v5463_v19  ;;  %v3158_v19 = vld [vmem:[%s10895_s15 + $0x58] sm:$0xff] }
 0xc02   :  { %6384 = vmatprep.subr.msk.bf16.mxu1 %vm8376_vm7, %v6372_v12  ;;  %3599 = vmatprep.mubr.f32.mxu0 %v7019_v7  ;;  %v6418_v15 = vpack.c.bf16 %v5456_v62, %v5454_v43  ;;  %v5460_v12 = vld [vmem:[%s10895_s15 + $0x2f0] sm:$0xff]  ;;  %v3154_v43 = vld [vmem:[%s10895_s15 + $0x38] sm:$0xff]  ;;  %v3171_v21 = vld [vmem:[%s10895_s15 + $0xc0] sm:$0xff] }
 0xc03   :  { %v6422_v49 = vpack.c.bf16 %v5460_v12, %v5458_v56  ;;  %v3153_v56 = vld [vmem:[%s10895_s15 + $0x30] sm:$0xff]  ;;  %v3156_v12 = vld [vmem:[%s10895_s15 + $0x48] sm:$0xff]  ;;  %v3175_v46 = vld [vmem:[%s10895_s15 + $0xe0] sm:$0xff] }
 0xc04   :  { %5419 = vmatmul.mubr.msk.f32.gmra.mrb[70].mxu1 %vm3057_vm9, %v3056_v35  ;;  %5495 = vmatmul.mubr.msk.f32.gmra.mrb[50].mxu0 %vm3057_vm9, %v5491_v18  ;;  %v5462_v35 = vld [vmem:[%s10895_s15 + $0x300] sm:$0xff]  ;;  %v5464_v18 = vld [vmem:[%s10895_s15 + $0x310] sm:$0xff] }
 0xc05   :  { %6387 = vmatpush1.bf16.msk.msra.mxu1 %vm8376_vm7, %v6375_v4  ;;  %3280 = vmatprep.mubr.f32.mxu1 %v7019_v7  ;;  %v6420_v4 = vpack.c.bf16 %v5461_v9, %v5459_v5  ;;  %v6426_v54 = vpack.c.bf16 %v5464_v18, %v5462_v35  ;;  %v6450_v5 = vpack.c.bf16 %v3149_v40, %v3147_v41  ;;  %v3155_v18 = vld [vmem:[%s10895_s15 + $0x40] sm:$0xff]  ;;  %v3181_v40 = vld [vmem:[%s10895_s15 + $0x110] sm:$0xff] }
 0xc06   :  { %6389 = vmatprep.subr.bf16.mxu1 %v6388_v11  ;;  %3952 = vmatprep.mubr.f32.mxu0 %v7019_v7  ;;  %v5467_v11 = vld [vmem:[%s10895_s15 + $0x328] sm:$0xff]  ;;  %v6456_v35 = vpack.c.bf16 %v3158_v19, %v3156_v12  ;;  %v3179_v41 = vld [vmem:[%s10895_s15 + $0x100] sm:$0xff] }
 0xc07   :  { %v6428_v59 = vpack.c.bf16 %v5469_v53, %v5467_v11  ;;  %v3157_v11 = vld [vmem:[%s10895_s15 + $0x50] sm:$0xff]  ;;  %v3160_v53 = vld [vmem:[%s10895_s15 + $0x68] sm:$0xff] }
 0xc08   :  { %5424 = vmatmul.mubr.msk.f32.vlgmr.msra.gmra.mrb[72].mxu1 %vm3057_vm9, %v5420_v58  ;;  %v5468_v58 = vld [vmem:[%s10895_s15 + $0x330] sm:$0xff] }
 0xc09   :  { %3286 = vmatprep.mubr.f32.mxu1 %v7019_v7  ;;  %6391 = vmatpush1.bf16.msra.mxu1 %v6390_v17  ;;  %v5471_v17 = vld [vmem:[%s10895_s15 + $0x348] sm:$0xff]  ;;  %v6430_v6 = vpack.c.bf16 %v5468_v58, %v5466_v37  ;;  %v3159_v58 = vld [vmem:[%s10895_s15 + $0x60] sm:$0xff] }
 0xc0a   :  { %6393 = vmatprep.subr.bf16.mxu1 %v6392_v24  ;;  %v5473_v24 = vld [vmem:[%s10895_s15 + $0x358] sm:$0xff] }
 0xc0b   :  { %v6432_v0 = vpack.c.bf16 %v5473_v24, %v5471_v17  ;;  %v3161_v17 = vld [vmem:[%s10895_s15 + $0x70] sm:$0xff]  ;;  %v3164_v24 = vld [vmem:[%s10895_s15 + $0x88] sm:$0xff] }
 0xc0c   :  { %5425 = vmatmul.mubr.msk.f32.gmra.mrb[74].mxu1 %vm3057_vm9, %v5421_v31  ;;  %v5475_v31 = vld [vmem:[%s10895_s15 + $0x368] sm:$0xff] }
 0xc0d   :  { %6395 = vmatpush1.bf16.msra.mxu1 %v6394_v2  ;;  %v5477_v2 = vld [vmem:[%s10895_s15 + $0x378] sm:$0xff] }
 0xc0e   :  { %6397 = vmatprep.subr.bf16.mxu1 %v6396_v36  ;;  %v6434_v36 = vpack.c.bf16 %v5472_v20, %v5470_v23  ;;  %v6436_v38 = vpack.c.bf16 %v5477_v2, %v5475_v31  ;;  %v3163_v20 = vld [vmem:[%s10895_s15 + $0x80] sm:$0xff]  ;;  %v3165_v31 = vld [vmem:[%s10895_s15 + $0x90] sm:$0xff]  ;;  %v3168_v2 = vld [vmem:[%s10895_s15 + $0xa8] sm:$0xff] }
 0xc11   :  { %6399 = vmatpush1.bf16.msra.mxu1 %v6398_v28  ;;  %v5479_v28 = vld [vmem:[%s10895_s15 + $0x388] sm:$0xff] }
 0xc12   :  { %6401 = vmatprep.subr.bf16.mxu1 %v6400_v39  ;;  %v5481_v39 = vld [vmem:[%s10895_s15 + $0x398] sm:$0xff] }
 0xc13   :  { %v6440_v14 = vpack.c.bf16 %v5481_v39, %v5479_v28  ;;  %v3172_v28 = vld [vmem:[%s10895_s15 + $0xc8] sm:$0xff]  ;;  %v3174_v39 = vld [vmem:[%s10895_s15 + $0xd8] sm:$0xff] }
 0xc15   :  { %6403 = vmatpush1.bf16.msra.mxu1 %v6402_v22  ;;  %v5483_v22 = vld [vmem:[%s10895_s15 + $0x3a8] sm:$0xff] }
 0xc16   :  { %6405 = vmatprep.subr.bf16.mxu1 %v6404_v61  ;;  %v5485_v61 = vld [vmem:[%s10895_s15 + $0x3b8] sm:$0xff] }
 0xc17   :  { %v6444_v3 = vpack.c.bf16 %v5485_v61, %v5483_v22  ;;  %v3176_v22 = vld [vmem:[%s10895_s15 + $0xe8] sm:$0xff]  ;;  %v3178_v61 = vld [vmem:[%s10895_s15 + $0xf8] sm:$0xff] }
 0xc19   :  { %6407 = vmatpush1.bf16.msra.mxu1 %v6406_v13  ;;  %v3148_v13 = vld [vmem:[%s10895_s15 + $0x8] sm:$0xff] }
 0xc1a   :  { %6409 = vmatprep.subr.bf16.mxu1 %v6408_v57  ;;  %v3150_v57 = vld [vmem:[%s10895_s15 + $0x18] sm:$0xff] }
 0xc1b   :  { %v6448_v34 = vpack.c.bf16 %v3150_v57, %v3148_v13  ;;  %v3180_v13 = vld [vmem:[%s10895_s15 + $0x108] sm:$0xff]  ;;  %v3182_v57 = vld [vmem:[%s10895_s15 + $0x118] sm:$0xff] }
 0xc1d   :  { %6411 = vmatpush1.bf16.msra.mxu1 %v6410_v16 }
 0xc1e   :  { %6413 = vmatprep.subr.bf16.mxu1 %v6412_v60 }
 0xc21   :  { %6415 = vmatpush1.bf16.msra.mxu1 %v6414_v44 }
 0xc22   :  { %6417 = vmatprep.subr.bf16.mxu1 %v6416_v48  ;;  %v3152_v48 = vld [vmem:[%s10895_s15 + $0x28] sm:$0xff] }
 0xc25   :  { %6419 = vmatpush1.bf16.msra.mxu1 %v6418_v15  ;;  %v6452_v15 = vpack.c.bf16 %v3154_v43, %v3152_v48  ;;  %v3184_v48 = vld [vmem:[%s10895_s15 + $0x128] sm:$0xff]  ;;  %v3186_v43 = vld [vmem:[%s10895_s15 + $0x138] sm:$0xff] }
 0xc26   :  { %6421 = vmatprep.subr.bf16.mxu1 %v6420_v4  ;;  %v3151_v4 = vld [vmem:[%s10895_s15 + $0x20] sm:$0xff] }
 0xc29   :  { %6423 = vmatpush1.bf16.msra.mxu1 %v6422_v49  ;;  %v6454_v49 = vpack.c.bf16 %v3153_v56, %v3151_v4  ;;  %v3188_v4 = vld [vmem:[%s10895_s15 + $0x148] sm:$0xff]  ;;  %v3190_v56 = vld [vmem:[%s10895_s15 + $0x158] sm:$0xff] }
 0xc2a   :  { %6425 = vmatprep.subr.bf16.mxu1 %v6424_v47  ;;  %v6488_v19 = vpack.c.bf16 %v3190_v56, %v3188_v4  ;;  %v5513_v4 = vld [vmem:[%s10895_s15 + $0x448] sm:$0xff] }
 0xc2d   :  { %6427 = vmatpush1.bf16.msra.mxu1 %v6426_v54  ;;  %v3162_v54 = vld [vmem:[%s10895_s15 + $0x78] sm:$0xff] }
 0xc2e   :  { %6429 = vmatprep.subr.bf16.mxu1 %v6428_v59  ;;  %v6458_v59 = vpack.c.bf16 %v3157_v11, %v3155_v18  ;;  %v6460_v37 = vpack.c.bf16 %v3162_v54, %v3160_v53  ;;  %v3191_v53 = vld [vmem:[%s10895_s15 + $0x160] sm:$0xff]  ;;  %v3193_v54 = vld [vmem:[%s10895_s15 + $0x170] sm:$0xff] }
 0xc31   :  { %6431 = vmatpush1.bf16.msra.mxu1 %v6430_v6  ;;  %v3166_v6 = vld [vmem:[%s10895_s15 + $0x98] sm:$0xff] }
 0xc32   :  { %6433 = vmatprep.subr.bf16.mxu1 %v6432_v0  ;;  %v6462_v0 = vpack.c.bf16 %v3161_v17, %v3159_v58  ;;  %v6464_v23 = vpack.c.bf16 %v3166_v6, %v3164_v24  ;;  %v6494_v58 = vpack.c.bf16 %v3193_v54, %v3191_v53  ;;  %v3195_v24 = vld [vmem:[%s10895_s15 + $0x180] sm:$0xff]  ;;  %v3197_v6 = vld [vmem:[%s10895_s15 + $0x190] sm:$0xff]  ;;  %v5521_v53 = vld [vmem:[%s10895_s15 + $0x488] sm:$0xff] }
 0xc33   :  { %v5523_v54 = vld [vmem:[%s10895_s15 + $0x498] sm:$0xff] }
 0xc35   :  { %6435 = vmatpush1.bf16.msra.mxu1 %v6434_v36  ;;  %v3170_v36 = vld [vmem:[%s10895_s15 + $0xb8] sm:$0xff] }
 0xc36   :  { %6437 = vmatprep.subr.bf16.mxu1 %v6436_v38  ;;  %v6466_v38 = vpack.c.bf16 %v3165_v31, %v3163_v20  ;;  %v6468_v26 = vpack.c.bf16 %v3170_v36, %v3168_v2  ;;  %v6498_v20 = vpack.c.bf16 %v3197_v6, %v3195_v24  ;;  %v3199_v2 = vld [vmem:[%s10895_s15 + $0x1a0] sm:$0xff]  ;;  %v3201_v36 = vld [vmem:[%s10895_s15 + $0x1b0] sm:$0xff]  ;;  %v5525_v24 = vld [vmem:[%s10895_s15 + $0x4a8] sm:$0xff] }
 0xc37   :  { %v5527_v6 = vld [vmem:[%s10895_s15 + $0x4b8] sm:$0xff] }
 0xc39   :  { %6439 = vmatpush1.bf16.msra.mxu1 %v6438_v33  ;;  %v3169_v33 = vld [vmem:[%s10895_s15 + $0xb0] sm:$0xff] }
 0xc3a   :  { %6441 = vmatprep.subr.bf16.mxu1 %v6440_v14  ;;  %v6470_v1 = vpack.c.bf16 %v3169_v33, %v3167_v10  ;;  %v6472_v14 = vpack.c.bf16 %v3174_v39, %v3172_v28  ;;  %v6502_v10 = vpack.c.bf16 %v3201_v36, %v3199_v2  ;;  %v3203_v28 = vld [vmem:[%s10895_s15 + $0x1c0] sm:$0xff]  ;;  %v3205_v39 = vld [vmem:[%s10895_s15 + $0x1d0] sm:$0xff]  ;;  %v5529_v2 = vld [vmem:[%s10895_s15 + $0x4c8] sm:$0xff] }
 0xc3b   :  { %v5531_v36 = vld [vmem:[%s10895_s15 + $0x4d8] sm:$0xff] }
 0xc3d   :  { %6443 = vmatpush1.bf16.msra.mxu1 %v6442_v25  ;;  %v3173_v25 = vld [vmem:[%s10895_s15 + $0xd0] sm:$0xff] }
 0xc3e   :  { %6445 = vmatprep.subr.bf16.mxu1 %v6444_v3  ;;  %v6474_v30 = vpack.c.bf16 %v3173_v25, %v3171_v21  ;;  %v6476_v3 = vpack.c.bf16 %v3178_v61, %v3176_v22  ;;  %v6506_v21 = vpack.c.bf16 %v3205_v39, %v3203_v28  ;;  %v5496_v22 = vld [vmem:[%s10895_s15 + $0x3c0] sm:$0xff]  ;;  %v5498_v61 = vld [vmem:[%s10895_s15 + $0x3d0] sm:$0xff]  ;;  %v5533_v28 = vld [vmem:[%s10895_s15 + $0x4e8] sm:$0xff] }
 0xc3f   :  { %v5535_v39 = vld [vmem:[%s10895_s15 + $0x4f8] sm:$0xff] }
 0xc41   :  { %6447 = vmatpush1.bf16.msra.mxu1 %v6446_v63  ;;  %v3177_v63 = vld [vmem:[%s10895_s15 + $0xf0] sm:$0xff] }
 0xc42   :  { %6449 = vmatprep.subr.bf16.mxu1 %v6448_v34  ;;  %v6478_v34 = vpack.c.bf16 %v3177_v63, %v3175_v46  ;;  %v6520_v46 = vpack.c.bf16 %v5498_v61, %v5496_v22  ;;  %v5537_v22 = vld [vmem:[%s10895_s15 + $0x508] sm:$0xff]  ;;  %v5539_v61 = vld [vmem:[%s10895_s15 + $0x518] sm:$0xff] }
 0xcd3   :  { %v9580_v52 = vpop.f32.mrb[68].mxu1  ;;  %v9582_v51 = vpop.f32.mrb[48].mxu0 }
 0xcd4   :  { %v3138_v29 = vpop.f32.mrb[69].mxu1  ;;  %v9584_v16 = vpop.f32.mrb[49].mxu0 }
 0xcd7   :  { %v9586_v60 = vpop.f32.mrb[70].mxu1  ;;  %v9588_v50 = vpop.f32.mrb[50].mxu0 }
 0xcd8   :  { %v9590_v8 = vpop.f32.mrb[71].mxu1  ;;  %v9598_v44 = vpop.f32.mrb[51].mxu0 }
 0xcdb   :  { %v3282_v62 = vpop.f32.mrb[72].mxu1 }
 0xcdc   :  { %v3284_v9 = vpop.f32.mrb[73].mxu1 }
 0xcdd   :  { %5486 = vmatprep.mubr.msk.f32.mxu1 %vm2558_vm1, %v3284_v9  ;;  %v3183_v9 = vld [vmem:[%s10895_s15 + $0x120] sm:$0xff] }
 0xcde   :  { %3425 = vmatmul.mubr.f32.vlgmr.msra.gmra.mrb[76].mxu1 %v3282_v62  ;;  %v6482_v62 = vpack.c.bf16 %v3181_v40, %v3179_v41 }
 0xcdf   :  { %6451 = vmatpush1.bf16.msra.mxu1 %v6450_v5  ;;  %v3288_v45 = vpop.f32.mrb[74].mxu1  ;;  %v6484_v5 = vpack.c.bf16 %v3186_v43, %v3184_v48  ;;  %v5504_v48 = vld [vmem:[%s10895_s15 + $0x400] sm:$0xff]  ;;  %v5506_v43 = vld [vmem:[%s10895_s15 + $0x410] sm:$0xff] }
 0xce0   :  { %v3290_v47 = vpop.f32.mrb[75].mxu1  ;;  %6453 = vmatprep.subr.bf16.mxu1 %v6452_v15  ;;  %v3185_v15 = vld [vmem:[%s10895_s15 + $0x130] sm:$0xff] }
 0xce1   :  { %5487 = vmatprep.mubr.msk.f32.mxu1 %vm2558_vm1, %v3290_v47  ;;  %v6486_v12 = vpack.c.bf16 %v3185_v15, %v3183_v9  ;;  %v3192_v47 = vld [vmem:[%s10895_s15 + $0x168] sm:$0xff]  ;;  %v5508_v9 = vld [vmem:[%s10895_s15 + $0x420] sm:$0xff]  ;;  %v5510_v15 = vld [vmem:[%s10895_s15 + $0x430] sm:$0xff] }
 0xce2   :  { %3431 = vmatmul.mubr.f32.gmra.mrb[78].mxu1 %v3288_v45  ;;  %v3187_v45 = vld [vmem:[%s10895_s15 + $0x140] sm:$0xff] }
 0xce3   :  { %6455 = vmatpush1.bf16.msra.mxu1 %v6454_v49  ;;  %5488 = vmatprep.mubr.msk.f32.mxu1 %vm2558_vm1, %v3138_v29  ;;  %v6480_v29 = vpack.c.bf16 %v3182_v57, %v3180_v13  ;;  %v3189_v49 = vld [vmem:[%s10895_s15 + $0x150] sm:$0xff]  ;;  %v5500_v13 = vld [vmem:[%s10895_s15 + $0x3e0] sm:$0xff] }
 0xce4   :  { %6457 = vmatprep.subr.bf16.mxu1 %v6456_v35  ;;  %v3194_v35 = vld [vmem:[%s10895_s15 + $0x178] sm:$0xff]  ;;  %v6490_v18 = vpack.c.bf16 %v3189_v49, %v3187_v45  ;;  %v5502_v57 = vld [vmem:[%s10895_s15 + $0x3f0] sm:$0xff]  ;;  %v5517_v45 = vld [vmem:[%s10895_s15 + $0x468] sm:$0xff] }
 0xce5   :  { %v6492_v11 = vpack.c.bf16 %v3194_v35, %v3192_v47  ;;  %v6524_v41 = vpack.c.bf16 %v5502_v57, %v5500_v13  ;;  %v5519_v49 = vld [vmem:[%s10895_s15 + $0x478] sm:$0xff]  ;;  %v5541_v13 = vld [vmem:[%s10895_s15 + $0x528] sm:$0xff] }
 0xce6   :  { %v6538_v35 = vpack.c.bf16 %v5519_v49, %v5517_v45  ;;  %v5543_v57 = vld [vmem:[%s10895_s15 + $0x538] sm:$0xff] }
 0xce7   :  { %6459 = vmatpush1.bf16.msra.mxu1 %v6458_v59  ;;  %v3196_v59 = vld [vmem:[%s10895_s15 + $0x188] sm:$0xff] }
 0xce8   :  { %6461 = vmatprep.subr.bf16.mxu1 %v6460_v37  ;;  %v3198_v37 = vld [vmem:[%s10895_s15 + $0x198] sm:$0xff] }
 0xce9   :  { %v6496_v17 = vpack.c.bf16 %v3198_v37, %v3196_v59  ;;  %v6542_v37 = vpack.c.bf16 %v5523_v54, %v5521_v53  ;;  %v3756_v53 = vld [vmem:[%s10896_s16 + $0x8] sm:$0xff] }
 0xceb   :  { %6463 = vmatpush1.bf16.msra.mxu1 %v6462_v0  ;;  %v3200_v0 = vld [vmem:[%s10895_s15 + $0x1a8] sm:$0xff] }
 0xcec   :  { %6465 = vmatprep.subr.bf16.mxu1 %v6464_v23  ;;  %v3202_v23 = vld [vmem:[%s10895_s15 + $0x1b8] sm:$0xff] }
 0xced   :  { %v6500_v31 = vpack.c.bf16 %v3202_v23, %v3200_v0  ;;  %v6546_v23 = vpack.c.bf16 %v5527_v6, %v5525_v24  ;;  %v3760_v24 = vld [vmem:[%s10896_s16 + $0x28] sm:$0xff]  ;;  %v3762_v6 = vld [vmem:[%s10896_s16 + $0x38] sm:$0xff] }
 0xcef   :  { %6467 = vmatpush1.bf16.msra.mxu1 %v6466_v38  ;;  %v3204_v38 = vld [vmem:[%s10895_s15 + $0x1c8] sm:$0xff] }
 0xcf0   :  { %6469 = vmatprep.subr.bf16.mxu1 %v6468_v26  ;;  %v3206_v26 = vld [vmem:[%s10895_s15 + $0x1d8] sm:$0xff] }
 0xcf1   :  { %v6504_v33 = vpack.c.bf16 %v3206_v26, %v3204_v38  ;;  %v6550_v26 = vpack.c.bf16 %v5531_v36, %v5529_v2  ;;  %v3766_v2 = vld [vmem:[%s10896_s16 + $0x58] sm:$0xff] }
 0xcf3   :  { %6471 = vmatpush1.bf16.msra.mxu1 %v6470_v1  ;;  %v5497_v1 = vld [vmem:[%s10895_s15 + $0x3c8] sm:$0xff] }
 0xcf4   :  { %6473 = vmatprep.subr.bf16.mxu1 %v6472_v14  ;;  %v5499_v14 = vld [vmem:[%s10895_s15 + $0x3d8] sm:$0xff] }
 0xcf5   :  { %v6518_v25 = vpack.c.bf16 %v5499_v14, %v5497_v1  ;;  %v6554_v14 = vpack.c.bf16 %v5535_v39, %v5533_v28  ;;  %v3770_v28 = vld [vmem:[%s10896_s16 + $0x78] sm:$0xff] }
 0xcf7   :  { %6475 = vmatpush1.bf16.msra.mxu1 %v6474_v30  ;;  %v5501_v30 = vld [vmem:[%s10895_s15 + $0x3e8] sm:$0xff] }
 0xcf8   :  { %6477 = vmatprep.subr.bf16.mxu1 %v6476_v3  ;;  %v5503_v3 = vld [vmem:[%s10895_s15 + $0x3f8] sm:$0xff] }
 0xcf9   :  { %v6522_v63 = vpack.c.bf16 %v5503_v3, %v5501_v30  ;;  %v6558_v3 = vpack.c.bf16 %v5539_v61, %v5537_v22  ;;  %v3774_v22 = vld [vmem:[%s10896_s16 + $0x98] sm:$0xff] }
 0xcfb   :  { %6479 = vmatpush1.bf16.msra.mxu1 %v6478_v34  ;;  %v5505_v34 = vld [vmem:[%s10895_s15 + $0x408] sm:$0xff] }
 0xcfc   :  { %6481 = vmatprep.subr.bf16.mxu1 %v6480_v29  ;;  %v5507_v29 = vld [vmem:[%s10895_s15 + $0x418] sm:$0xff] }
 0xcfd   :  { %v6526_v40 = vpack.c.bf16 %v5507_v29, %v5505_v34  ;;  %v6562_v29 = vpack.c.bf16 %v5543_v57, %v5541_v13  ;;  %v3778_v13 = vld [vmem:[%s10896_s16 + $0xb8] sm:$0xff] }
 0xcff   :  { %6483 = vmatpush1.bf16.msra.mxu1 %v6482_v62  ;;  %v5509_v62 = vld [vmem:[%s10895_s15 + $0x428] sm:$0xff] }
 0xd00   :  { %6485 = vmatprep.subr.bf16.mxu1 %v6484_v5 }
 0xd03   :  { %6487 = vmatpush1.bf16.msra.mxu1 %v6486_v12  ;;  %v5512_v12 = vld [vmem:[%s10895_s15 + $0x440] sm:$0xff] }
 0xd04   :  { %6489 = vmatprep.subr.bf16.mxu1 %v6488_v19  ;;  %v5514_v19 = vld [vmem:[%s10895_s15 + $0x450] sm:$0xff] }
 0xd05   :  { %v6536_v47 = vpack.c.bf16 %v5514_v19, %v5512_v12  ;;  %v5553_v12 = vld [vmem:[%s10895_s15 + $0x588] sm:$0xff]  ;;  %v5555_v19 = vld [vmem:[%s10895_s15 + $0x598] sm:$0xff] }
 0xd06   :  { %v6574_v49 = vpack.c.bf16 %v5555_v19, %v5553_v12 }
 0xd07   :  { %6491 = vmatpush1.bf16.msra.mxu1 %v6490_v18  ;;  %v5516_v18 = vld [vmem:[%s10895_s15 + $0x460] sm:$0xff] }
 0xd08   :  { %6493 = vmatprep.subr.bf16.mxu1 %v6492_v11  ;;  %v5518_v11 = vld [vmem:[%s10895_s15 + $0x470] sm:$0xff] }
 0xd09   :  { %v6540_v59 = vpack.c.bf16 %v5518_v11, %v5516_v18  ;;  %v3755_v11 = vld [vmem:[%s10896_s16] sm:$0xff] }
 0xd0a   :  { %v9963_v54 = vpack.c.bf16 %v3756_v53, %v3755_v11 }
 0xd0b   :  { %6495 = vmatpush1.bf16.msra.mxu1 %v6494_v58  ;;  %v5520_v58 = vld [vmem:[%s10895_s15 + $0x480] sm:$0xff] }
 0xd0c   :  { %6497 = vmatprep.subr.bf16.mxu1 %v6496_v17  ;;  %v5522_v17 = vld [vmem:[%s10895_s15 + $0x490] sm:$0xff] }
 0xd0d   :  { %v6544_v0 = vpack.c.bf16 %v5522_v17, %v5520_v58  ;;  %v3759_v17 = vld [vmem:[%s10896_s16 + $0x20] sm:$0xff] }
 0xd0f   :  { %6499 = vmatpush1.bf16.msra.mxu1 %v6498_v20  ;;  %v5524_v20 = vld [vmem:[%s10895_s15 + $0x4a0] sm:$0xff] }
 0xd10   :  { %6501 = vmatprep.subr.bf16.mxu1 %v6500_v31  ;;  %v5526_v31 = vld [vmem:[%s10895_s15 + $0x4b0] sm:$0xff] }
 0xd11   :  { %v6548_v38 = vpack.c.bf16 %v5526_v31, %v5524_v20  ;;  %v3765_v31 = vld [vmem:[%s10896_s16 + $0x50] sm:$0xff] }
 0xd12   :  { %v10017_v36 = vpack.c.bf16 %v3766_v2, %v3765_v31 }
 0xd13   :  { %6503 = vmatpush1.bf16.msra.mxu1 %v6502_v10  ;;  %v5528_v10 = vld [vmem:[%s10895_s15 + $0x4c0] sm:$0xff] }
 0xd14   :  { %6505 = vmatprep.subr.bf16.mxu1 %v6504_v33  ;;  %v5530_v33 = vld [vmem:[%s10895_s15 + $0x4d0] sm:$0xff] }
 0xd15   :  { %v6552_v1 = vpack.c.bf16 %v5530_v33, %v5528_v10  ;;  %v3769_v33 = vld [vmem:[%s10896_s16 + $0x70] sm:$0xff] }
 0xd16   :  { %v10037_v39 = vpack.c.bf16 %v3770_v28, %v3769_v33  ;;  %v3789_v33 = vld [vmem:[%s10897_s17 + $0x30] sm:$0xff] }
 0xd17   :  { %6507 = vmatpush1.bf16.msra.mxu1 %v6506_v21  ;;  %v5532_v21 = vld [vmem:[%s10895_s15 + $0x4e0] sm:$0xff] }
 0xd18   :  { %6519 = vmatprep.subr.bf16.mxu1 %v6518_v25  ;;  %v5534_v25 = vld [vmem:[%s10895_s15 + $0x4f0] sm:$0xff] }
 0xd19   :  { %v6556_v30 = vpack.c.bf16 %v5534_v25, %v5532_v21  ;;  %v3773_v25 = vld [vmem:[%s10896_s16 + $0x90] sm:$0xff] }
 0xd1a   :  { %3508 = vmatmul.mubr.f32.vlgmr.msra.gmra.mrb[76].mxu1 %v9580_v52  ;;  %v5511_v52 = vld [vmem:[%s10895_s15 + $0x438] sm:$0xff]  ;;  %v10058_v61 = vpack.c.bf16 %v3774_v22, %v3773_v25 }
 0xd1b   :  { %5489 = vmatprep.mubr.msk.f32.mxu1 %vm2558_vm1, %v9590_v8  ;;  %6521 = vmatpush1.bf16.msra.mxu1 %v6520_v46  ;;  %v6528_v8 = vpack.c.bf16 %v5506_v43, %v5504_v48  ;;  %v6530_v5 = vpack.c.bf16 %v5511_v52, %v5509_v62  ;;  %v5536_v46 = vld [vmem:[%s10895_s15 + $0x500] sm:$0xff]  ;;  %v5545_v48 = vld [vmem:[%s10895_s15 + $0x548] sm:$0xff]  ;;  %v5547_v43 = vld [vmem:[%s10895_s15 + $0x558] sm:$0xff] }
 0xd1c   :  { %6523 = vmatprep.subr.bf16.mxu1 %v6522_v63  ;;  %v5538_v63 = vld [vmem:[%s10895_s15 + $0x510] sm:$0xff]  ;;  %v6566_v52 = vpack.c.bf16 %v5547_v43, %v5545_v48  ;;  %v3783_v48 = vld [vmem:[%s10897_s17] sm:$0xff] }
 0xd1d   :  { %v6560_v34 = vpack.c.bf16 %v5538_v63, %v5536_v46  ;;  %v3777_v46 = vld [vmem:[%s10896_s16 + $0xb0] sm:$0xff] }
 0xd1e   :  { %3514 = vmatmul.mubr.f32.gmra.mrb[78].mxu1 %v9586_v60  ;;  %v5515_v60 = vld [vmem:[%s10895_s15 + $0x458] sm:$0xff]  ;;  %v10077_v57 = vpack.c.bf16 %v3778_v13, %v3777_v46 }
 0xd1f   :  { %6525 = vmatpush1.bf16.msra.mxu1 %v6524_v41  ;;  %5556 = vmatprep.mubr.msk.f32.mxu1 %vm2558_vm1, %v9584_v16  ;;  %v6532_v16 = vpack.c.bf16 %v5510_v15, %v5508_v9  ;;  %v6534_v56 = vpack.c.bf16 %v5515_v60, %v5513_v4  ;;  %v5540_v41 = vld [vmem:[%s10895_s15 + $0x520] sm:$0xff]  ;;  %v5549_v9 = vld [vmem:[%s10895_s15 + $0x568] sm:$0xff]  ;;  %v5551_v15 = vld [vmem:[%s10895_s15 + $0x578] sm:$0xff] }
 0xd20   :  { %6527 = vmatprep.subr.bf16.mxu1 %v6526_v40  ;;  %v5542_v40 = vld [vmem:[%s10895_s15 + $0x530] sm:$0xff]  ;;  %v6570_v60 = vpack.c.bf16 %v5551_v15, %v5549_v9 }
 0xd21   :  { %v6564_v62 = vpack.c.bf16 %v5542_v40, %v5540_v41  ;;  %v3784_v41 = vld [vmem:[%s10897_s17 + $0x8] sm:$0xff]  ;;  %v3786_v40 = vld [vmem:[%s10897_s17 + $0x18] sm:$0xff] }
 0xd22   :  { %v10095_v43 = vpack.c.bf16 %v3786_v40, %v3784_v41 }
 0xd23   :  { %6529 = vmatpush1.bf16.msra.mxu1 %v6528_v8  ;;  %v5544_v8 = vld [vmem:[%s10895_s15 + $0x540] sm:$0xff] }
 0xd24   :  { %6531 = vmatprep.subr.bf16.mxu1 %v6530_v5  ;;  %v5546_v5 = vld [vmem:[%s10895_s15 + $0x550] sm:$0xff]  ;;  %6621 = vmatprep.subr.bf16.mxu0 %v10095_v43 }
 0xd25   :  { %v6568_v4 = vpack.c.bf16 %v5546_v5, %v5544_v8  ;;  %v3790_v8 = vld [vmem:[%s10897_s17 + $0x38] sm:$0xff] }
 0xd27   :  { %6533 = vmatpush1.bf16.msra.mxu1 %v6532_v16  ;;  %v5548_v16 = vld [vmem:[%s10895_s15 + $0x560] sm:$0xff] }
 0xd28   :  { %6535 = vmatprep.subr.bf16.mxu1 %v6534_v56  ;;  %v5550_v56 = vld [vmem:[%s10895_s15 + $0x570] sm:$0xff] }
 0xd29   :  { %v6572_v45 = vpack.c.bf16 %v5550_v56, %v5548_v16 }
 0xd2b   :  { %6537 = vmatpush1.bf16.msra.mxu1 %v6536_v47  ;;  %v5552_v47 = vld [vmem:[%s10895_s15 + $0x580] sm:$0xff] }
 0xd2c   :  { %6539 = vmatprep.subr.bf16.mxu1 %v6538_v35  ;;  %v5554_v35 = vld [vmem:[%s10895_s15 + $0x590] sm:$0xff] }
 0xd2d   :  { %v6576_v18 = vpack.c.bf16 %v5554_v35, %v5552_v47 }
 0xd2f   :  { %6541 = vmatpush1.bf16.msra.mxu1 %v6540_v59  ;;  %v3757_v59 = vld [vmem:[%s10896_s16 + $0x10] sm:$0xff] }
 0xd30   :  { %6543 = vmatprep.subr.bf16.mxu1 %v6542_v37  ;;  %v3758_v37 = vld [vmem:[%s10896_s16 + $0x18] sm:$0xff] }
 0xd31   :  { %v9976_v58 = vpack.c.bf16 %v3758_v37, %v3757_v59 }
 0xd33   :  { %6545 = vmatpush1.bf16.msra.mxu1 %v6544_v0 }
 0xd34   :  { %6547 = vmatprep.subr.bf16.mxu1 %v6546_v23  ;;  %v3764_v23 = vld [vmem:[%s10896_s16 + $0x48] sm:$0xff] }
 0xd37   :  { %6549 = vmatpush1.bf16.msra.mxu1 %v6548_v38  ;;  %v3767_v38 = vld [vmem:[%s10896_s16 + $0x60] sm:$0xff] }
 0xd38   :  { %6551 = vmatprep.subr.bf16.mxu1 %v6550_v26  ;;  %v3768_v26 = vld [vmem:[%s10896_s16 + $0x68] sm:$0xff] }
 0xd39   :  { %v10027_v10 = vpack.c.bf16 %v3768_v26, %v3767_v38  ;;  %v3787_v26 = vld [vmem:[%s10897_s17 + $0x20] sm:$0xff] }
 0xd3a   :  { %v10151_v28 = vpack.c.bf16 %v3789_v33, %v3787_v26 }
 0xd3b   :  { %6553 = vmatpush1.bf16.msra.mxu1 %v6552_v1  ;;  %v3771_v1 = vld [vmem:[%s10896_s16 + $0x80] sm:$0xff] }
 0xd3c   :  { %6555 = vmatprep.subr.bf16.mxu1 %v6554_v14  ;;  %v3772_v14 = vld [vmem:[%s10896_s16 + $0x88] sm:$0xff] }
 0xd3d   :  { %v10047_v21 = vpack.c.bf16 %v3772_v14, %v3771_v1 }
 0xd3f   :  { %6557 = vmatpush1.bf16.msra.mxu1 %v6556_v30  ;;  %v3775_v30 = vld [vmem:[%s10896_s16 + $0xa0] sm:$0xff] }
 0xd40   :  { %6559 = vmatprep.subr.bf16.mxu1 %v6558_v3  ;;  %v3776_v3 = vld [vmem:[%s10896_s16 + $0xa8] sm:$0xff] }
 0xd41   :  { %v10071_v63 = vpack.c.bf16 %v3776_v3, %v3775_v30 }
 0xd43   :  { %6561 = vmatpush1.bf16.msra.mxu1 %v6560_v34  ;;  %v3779_v34 = vld [vmem:[%s10896_s16 + $0xc0] sm:$0xff] }
 0xd44   :  { %6563 = vmatprep.subr.bf16.mxu1 %v6562_v29  ;;  %v3780_v29 = vld [vmem:[%s10896_s16 + $0xc8] sm:$0xff] }
 0xd45   :  { %v10111_v15 = vpack.c.bf16 %v3780_v29, %v3779_v34 }
 0xd47   :  { %6565 = vmatpush1.bf16.msra.mxu1 %v6564_v62  ;;  %v3785_v62 = vld [vmem:[%s10897_s17 + $0x10] sm:$0xff] }
 0xd48   :  { %6567 = vmatprep.subr.bf16.mxu1 %v6566_v52  ;;  %v3788_v52 = vld [vmem:[%s10897_s17 + $0x28] sm:$0xff]  ;;  %v10106_v5 = vpack.c.bf16 %v3785_v62, %v3783_v48 }
 0xd49   :  { %v10108_v9 = vpack.c.bf16 %v3790_v8, %v3788_v52 }
 0xd4a   :  { %6623 = vmatpush1.bf16.msra.mxu0 %v10106_v5 }
 0xd4b   :  { %6569 = vmatpush1.bf16.msra.mxu1 %v6568_v4  ;;  %v3781_v4 = vld [vmem:[%s10896_s16 + $0xd0] sm:$0xff]  ;;  %6625 = vmatprep.subr.bf16.mxu0 %v10108_v9 }
 0xd4c   :  { %6571 = vmatprep.subr.bf16.mxu1 %v6570_v60  ;;  %v3782_v60 = vld [vmem:[%s10896_s16 + $0xd8] sm:$0xff] }
 0xd4d   :  { %v10124_v16 = vpack.c.bf16 %v3782_v60, %v3781_v4 }
 0xd4e   :  { %6627 = vmatpush1.bf16.msra.mxu0 %v10151_v28 }
 0xd4f   :  { %6573 = vmatpush1.bf16.msra.mxu1 %v6572_v45  ;;  %6628 = vmatprep.subr.bf16.mxu0 %v7020_v32 }
 0xd50   :  { %6575 = vmatprep.subr.bf16.mxu1 %v6574_v49 }
 0xd53   :  { %6577 = vmatpush1.bf16.msra.mxu1 %v6576_v18 }
 0xd54   :  { %6578 = vmatprep.subr.bf16.mxu1 %v7020_v32 }
 0xd56   :  { %3738 = vmatmul.mubr.f32.vlgmr.msra.gmra.mrb[76].mxu1 %v9582_v51  ;;  %v9987_v51 = vpack.c.bf16 %v3760_v24, %v3759_v17 }
 0xd57   :  { %5557 = vmatprep.mubr.msk.f32.mxu1 %vm2558_vm1, %v9598_v44  ;;  %6580 = vmatpush1.bf16.msra.mxu1 %v9963_v54  ;;  %v3761_v44 = vld [vmem:[%s10896_s16 + $0x30] sm:$0xff]  ;;  %vm3801_vm1 = vcmask 783360  }
 0xd58   :  { %6581 = vmatprep.subr.bf16.mxu1 %v7020_v32  ;;  %v9997_v0 = vpack.c.bf16 %v3762_v6, %v3761_v44 }
 0xd5a   :  { %3744 = vmatmul.mubr.f32.gmra.mrb[78].mxu1 %v9588_v50  ;;  %v3763_v50 = vld [vmem:[%s10896_s16 + $0x40] sm:$0xff] }
 0xd5b   :  { %6583 = vmatpush1.bf16.msra.mxu1 %v9976_v58  ;;  %v10007_v20 = vpack.c.bf16 %v3764_v23, %v3763_v50 }
 0xd5c   :  { %6584 = vmatprep.subr.bf16.mxu1 %v7020_v32 }
 0xd5f   :  { %6586 = vmatpush1.bf16.msra.mxu1 %v9987_v51 }
 0xd60   :  { %6587 = vmatprep.subr.bf16.mxu1 %v7020_v32 }
 0xd63   :  { %6589 = vmatpush1.bf16.msra.mxu1 %v9997_v0 }
 0xd64   :  { %6590 = vmatprep.subr.bf16.mxu1 %v7020_v32 }
 0xd67   :  { %6592 = vmatpush1.bf16.msra.mxu1 %v10007_v20 }
 0xd68   :  { %6593 = vmatprep.subr.bf16.mxu1 %v7020_v32 }
 0xd6b   :  { %6595 = vmatpush1.bf16.msra.mxu1 %v10017_v36 }
 0xd6c   :  { %6596 = vmatprep.subr.bf16.mxu1 %v7020_v32 }
 0xd6f   :  { %6598 = vmatpush1.bf16.msra.mxu1 %v10027_v10 }
 0xd70   :  { %6599 = vmatprep.subr.bf16.mxu1 %v7020_v32 }
 0xd73   :  { %6601 = vmatpush1.bf16.msra.mxu1 %v10037_v39 }
 0xd74   :  { %6602 = vmatprep.subr.bf16.mxu1 %v7020_v32 }
 0xd77   :  { %6604 = vmatpush1.bf16.msra.mxu1 %v10047_v21 }
 0xd78   :  { %6605 = vmatprep.subr.bf16.mxu1 %v7020_v32 }
 0xd7b   :  { %6607 = vmatpush1.bf16.msra.mxu1 %v10058_v61 }
 0xd7c   :  { %6608 = vmatprep.subr.bf16.mxu1 %v7020_v32 }
 0xd7f   :  { %6610 = vmatpush1.bf16.msra.mxu1 %v10071_v63 }
 0xd80   :  { %6611 = vmatprep.subr.bf16.mxu1 %v7020_v32 }
 0xd83   :  { %6613 = vmatpush1.bf16.msra.mxu1 %v10077_v57 }
 0xd84   :  { %6614 = vmatprep.subr.bf16.mxu1 %v7020_v32 }
 0xd87   :  { %6616 = vmatpush1.bf16.msra.mxu1 %v10111_v15 }
 0xd88   :  { %6617 = vmatprep.subr.bf16.mxu1 %v7020_v32 }
 0xd8b   :  { %6619 = vmatpush1.bf16.msra.mxu1 %v10124_v16 }
 0xd8c   :  { %6872 = vmatprep.subr.bf16.mxu1 %v7020_v32 }
 0xe29   :  { %v10129_v56 = vpop.f32.mrb[76].mxu1 }
 0xe2a   :  { %v10131_v12 = vpop.f32.mrb[77].mxu1 }
 0xe2b   :  { %v3800_v47 = vsel %vm3799_vm10, %v10131_v12, 0.0 }
 0xe2d   :  { %v10133_v19 = vpop.f32.mrb[78].mxu1 }
 0xe2e   :  { %v3791_v45 = vsel %vm1108_vm2, %v10133_v19, 0.0  ;;  %v10137_v49 = vpop.f32.mrb[79].mxu1 }
 0xe2f   :  { %v3792_v35 = vadd.f32 %v3791_v45, %v10129_v56  ;;  %v3802_v18 = vsel %vm3801_vm1, %v10137_v49, 0.0 }
 0xe30   :  { %v3803_v11 = vadd.f32 %v3802_v18, %v3800_v47 }
 0xe31   :  { %v3793_v53 = vrot.slane %v3792_v35, 4 }
 0xe32   :  { %v3804_v59 = vrot.slane %v3803_v11, 4 }
 0xe33   :  { %v3794_v37 = vadd.f32 %v3793_v53, %v3792_v35 }
 0xe34   :  { %v3805_v17 = vadd.f32 %v3804_v59, %v3803_v11  ;;  %v4066_v11 = vld [vmem:[%s10898_s18] sm:$0x1]  ;;  %s5558_s18 = sld [smem:[#allocation2 + $0x2]] }
 0xe35   :  { %v3795_v24 = vrot.slane %v3794_v37, 2 }
 0xe36   :  { %v3806_v44 = vrot.slane %v3805_v17, 2 }
 0xe37   :  { %v3796_v6 = vadd.f32 %v3795_v24, %v3794_v37  ;;  %v4070_v37 = vld [vmem:[%s10899_s19] sm:$0x1] }
 0xe38   :  { %v3807_v50 = vadd.f32 %v3806_v44, %v3805_v17 }
 0xe39   :  { %v3797_v23 = vrot.slane %v3796_v6, 1 }
 0xe3a   :  { %v3808_v31 = vrot.slane %v3807_v50, 1  ;;  %v4249_v33 = vstv %s5558_s18 }
 0xe3b   :  { %v3798_v38 = vadd.f32 %v3797_v23, %v3796_v6 }
 0xe3c   :  { %v3809_v2 = vadd.f32 %v3808_v31, %v3807_v50 }
 0xe3e   :  { %5559 = vmatprep.mubr.msk.f32.mxu1 %vm3799_vm10, %v3809_v2 }
 0xe3f   :  { %3878 = vmatmul.mubr.f32.vlgmr.msra.gmra.mrb[80].mxu1 %v3798_v38 }
 0xf12   :  { %v3879_v1 = vpop.f32.mrb[80].mxu1 }
 0xf13   :  { %v10155_v14 = vmul.f32 0.010204081, %v3879_v1  ;;  %v3881_v25 = vpop.f32.mrb[81].mxu1 }
 0xf15   :  { %5560 = vmatmul.mubr.msk.f32.vlgmr.msra.gmra.mrb[52].mxu0 %vm3884_vm11, %v10155_v14 }
 0xf16   :  { %6630 = vmatpush1.bf16.msra.mxu0 %v9963_v54 }
 0xf17   :  { %6631 = vmatprep.subr.bf16.mxu0 %v7020_v32 }
 0xf1a   :  { %6633 = vmatpush1.bf16.msra.mxu0 %v9976_v58 }
 0xf1b   :  { %6634 = vmatprep.subr.bf16.mxu0 %v7020_v32 }
 0xf1e   :  { %6636 = vmatpush1.bf16.msra.mxu0 %v9987_v51 }
 0xf1f   :  { %6637 = vmatprep.subr.bf16.mxu0 %v7020_v32 }
 0xf22   :  { %6639 = vmatpush1.bf16.msra.mxu0 %v9997_v0 }
 0xf23   :  { %6640 = vmatprep.subr.bf16.mxu0 %v7020_v32 }
 0xf26   :  { %6642 = vmatpush1.bf16.msra.mxu0 %v10007_v20 }
 0xf27   :  { %6643 = vmatprep.subr.bf16.mxu0 %v7020_v32 }
 0xf2a   :  { %6645 = vmatpush1.bf16.msra.mxu0 %v10017_v36 }
 0xf2b   :  { %6646 = vmatprep.subr.bf16.mxu0 %v7020_v32 }
 0xf2e   :  { %6648 = vmatpush1.bf16.msra.mxu0 %v10027_v10 }
 0xf2f   :  { %6649 = vmatprep.subr.bf16.mxu0 %v7020_v32 }
 0xf32   :  { %6651 = vmatpush1.bf16.msra.mxu0 %v10037_v39 }
 0xf33   :  { %6652 = vmatprep.subr.bf16.mxu0 %v7020_v32 }
 0xf36   :  { %6654 = vmatpush1.bf16.msra.mxu0 %v10047_v21 }
 0xf37   :  { %6655 = vmatprep.subr.bf16.mxu0 %v7020_v32 }
 0xf3a   :  { %6657 = vmatpush1.bf16.msra.mxu0 %v10058_v61 }
 0xf3b   :  { %6658 = vmatprep.subr.bf16.mxu0 %v7020_v32 }
 0xf3e   :  { %6660 = vmatpush1.bf16.msra.mxu0 %v10071_v63 }
 0xf3f   :  { %6661 = vmatprep.subr.bf16.mxu0 %v7020_v32 }
 0xf42   :  { %6663 = vmatpush1.bf16.msra.mxu0 %v10077_v57 }
 0xf43   :  { %6664 = vmatprep.subr.bf16.mxu0 %v7020_v32 }
 0xf46   :  { %6666 = vmatpush1.bf16.msra.mxu0 %v10111_v15 }
 0xf47   :  { %6667 = vmatprep.subr.bf16.mxu0 %v7020_v32 }
 0xf4a   :  { %6669 = vmatpush1.bf16.msra.mxu0 %v10124_v16 }
 0xf4b   :  { %6671 = vmatprep.subr.bf16.mxu0 %v10095_v43 }
 0xfe8   :  { %v3954_v54 = vpop.f32.mrb[52].mxu0 }
 0xfe9   :  { %v3962_v58 = vrot.slane %v3954_v54, %v8255_v55  ;;  %v3956_v51 = vpop.f32.mrb[53].mxu0 }
 0xfea   :  { %v3966_v0 = vrot.slane %v3956_v51, %v8255_v55 }
 0xfeb   :  { %v3967_v20 = vsub.f32 %v10129_v56, %v3962_v58  ;;  %v3969_v36 = vsub.f32 %v10133_v19, %v3962_v58 }
 0xfec   :  { %v3968_v10 = vsub.f32 %v10131_v12, %v3966_v0  ;;  %v3970_v39 = vsub.f32 %v10137_v49, %v3966_v0 }
 0xfed   :  { %v3971_v21 = vmul.f32 %v3967_v20, %v3967_v20  ;;  %v3973_v22 = vmul.f32 %v3969_v36, %v3969_v36 }
 0xfee   :  { %v3972_v61 = vmul.f32 %v3968_v10, %v3968_v10  ;;  %v3974_v30 = vmul.f32 %v3970_v39, %v3970_v39  ;;  %v5572_v39 = vld [vmem:[%s10901_s21 + $0x1c8] sm:$0xff] }
 0xfef   :  { %v3975_v3 = vsel %vm1108_vm2, %v3973_v22, 0.0  ;;  %v4258_v22 = vld [vmem:[%s10900_s20] sm:$0x3f] }
 0xff0   :  { %v3976_v46 = vadd.f32 %v3975_v3, %v3971_v21  ;;  %v3983_v63 = vsel %vm3799_vm10, %v3972_v61, 0.0  ;;  %v3984_v13 = vsel %vm3801_vm1, %v3974_v30, 0.0  ;;  %v5574_v21 = vld [vmem:[%s10901_s21 + $0x1d8] sm:$0xff]  ;;  %v5571_v30 = vld [vmem:[%s10901_s21 + $0x1c0] sm:$0xff]  ;;  %v5573_v3 = vld [vmem:[%s10901_s21 + $0x1d0] sm:$0xff] }
 0xff1   :  { %v3985_v57 = vadd.f32 %v3984_v13, %v3983_v63  ;;  %v6698_v61 = vpack.c.bf16 %v5574_v21, %v5572_v39  ;;  %v5578_v63 = vld [vmem:[%s10901_s21 + $0x1f8] sm:$0xff]  ;;  %v5567_v13 = vld [vmem:[%s10900_s20 + $0x8] sm:$0x3f] }
 0xff2   :  { %v3977_v34 = vrot.slane %v3976_v46, 4 }
 0xff3   :  { %v3986_v29 = vrot.slane %v3985_v57, 4 }
 0xff4   :  { %v3978_v41 = vadd.f32 %v3977_v34, %v3976_v46  ;;  %v5576_v46 = vld [vmem:[%s10901_s21 + $0x1e8] sm:$0xff] }
 0xff5   :  { %v3987_v40 = vadd.f32 %v3986_v29, %v3985_v57  ;;  %v6700_v57 = vpack.c.bf16 %v5573_v3, %v5571_v30  ;;  %v6702_v34 = vpack.c.bf16 %v5578_v63, %v5576_v46  ;;  %v5575_v29 = vld [vmem:[%s10901_s21 + $0x1e0] sm:$0xff]  ;;  %v5612_v30 = vld [vmem:[%s10901_s21 + $0x308] sm:$0xff]  ;;  %v5614_v3 = vld [vmem:[%s10901_s21 + $0x318] sm:$0xff] }
 0xff6   :  { %v3979_v48 = vrot.slane %v3978_v41, 2  ;;  %v6738_v63 = vpack.c.bf16 %v5614_v3, %v5612_v30  ;;  %v4358_v30 = vld [vmem:[%s10901_s21 + $0x90] sm:$0xff]  ;;  %v4361_v3 = vld [vmem:[%s10901_s21 + $0xa8] sm:$0xff] }
 0xff7   :  { %v3988_v62 = vrot.slane %v3987_v40, 2 }
 0xff8   :  { %v3980_v52 = vadd.f32 %v3979_v48, %v3978_v41  ;;  %v5577_v41 = vld [vmem:[%s10901_s21 + $0x1f0] sm:$0xff]  ;;  %v5582_v48 = vld [vmem:[%s10901_s21 + $0x218] sm:$0xff] }
 0xff9   :  { %v3989_v8 = vadd.f32 %v3988_v62, %v3987_v40  ;;  %v5580_v40 = vld [vmem:[%s10901_s21 + $0x208] sm:$0xff]  ;;  %v6704_v62 = vpack.c.bf16 %v5577_v41, %v5575_v29  ;;  %v5618_v29 = vld [vmem:[%s10901_s21 + $0x338] sm:$0xff] }
 0xffa   :  { %v3981_v15 = vrot.slane %v3980_v52, 1 }
 0xffb   :  { %v3990_v4 = vrot.slane %v3989_v8, 1 }
 0xffc   :  { %v3982_v16 = vadd.f32 %v3981_v15, %v3980_v52  ;;  %v6706_v52 = vpack.c.bf16 %v5582_v48, %v5580_v40  ;;  %v5581_v15 = vld [vmem:[%s10901_s21 + $0x210] sm:$0xff]  ;;  %v5615_v48 = vld [vmem:[%s10901_s21 + $0x320] sm:$0xff] }
 0xffd   :  { %v3991_v60 = vadd.f32 %v3990_v4, %v3989_v8  ;;  %v5579_v8 = vld [vmem:[%s10901_s21 + $0x200] sm:$0xff]  ;;  %v5584_v4 = vld [vmem:[%s10901_s21 + $0x228] sm:$0xff] }
 0xfff   :  { %5561 = vmatprep.mubr.msk.f32.mxu0 %vm3799_vm10, %v3991_v60  ;;  %v5586_v60 = vld [vmem:[%s10901_s21 + $0x238] sm:$0xff] }
0x1000   :  { %4060 = vmatmul.mubr.f32.vlgmr.msra.gmra.mrb[54].mxu0 %v3982_v16  ;;  %v6708_v16 = vpack.c.bf16 %v5581_v15, %v5579_v8  ;;  %v5622_v8 = vld [vmem:[%s10901_s21 + $0x358] sm:$0xff] }
0x1001   :  { %6673 = vmatpush1.bf16.msra.mxu0 %v10106_v5  ;;  %4140 = vmatprep.mubr.f32.mxu0 %v7019_v7 }
0x1002   :  { %6675 = vmatprep.subr.bf16.mxu0 %v10108_v9 }
0x1005   :  { %6677 = vmatpush1.bf16.msra.mxu0 %v10151_v28 }
0x1006   :  { %6679 = vmatprep.subr.bf16.mxu0 %v10095_v43 }
0x10d3   :  { %v4061_v45 = vpop.f32.mrb[54].mxu0 }
0x10d4   :  { %v4065_v47 = vmul.f32 0.010204081, %v4061_v45  ;;  %v4063_v35 = vpop.f32.mrb[55].mxu0  ;;  %v6710_v45 = vpack.c.bf16 %v5586_v60, %v5584_v4  ;;  %v5619_v60 = vld [vmem:[%s10901_s21 + $0x340] sm:$0xff] }
0x10d5   :  { %v5585_v35 = vld [vmem:[%s10901_s21 + $0x230] sm:$0xff] }
0x10d6   :  { %v4067_v18 = vadd.f32 1e-05, %v4065_v47  ;;  %v5583_v47 = vld [vmem:[%s10901_s21 + $0x220] sm:$0xff] }
0x10d8   :  { %6978 = vrsqrt.f32 %v4067_v18  ;;  %v5588_v18 = vld [vmem:[%s10901_s21 + $0x248] sm:$0xff] }
0x10e2   :  { %v6979_v53 = vpop.eup %6978 }
0x10e3   :  { %v4069_v59 = vmul.f32 %v6979_v53, %v4066_v11  ;;  %v5590_v11 = vld [vmem:[%s10901_s21 + $0x258] sm:$0xff]  ;;  %v6712_v53 = vpack.c.bf16 %v5585_v35, %v5583_v47  ;;  %v5624_v47 = vld [vmem:[%s10901_s21 + $0x368] sm:$0xff] }
0x10e4   :  { %v5626_v35 = vld [vmem:[%s10901_s21 + $0x378] sm:$0xff] }
0x10e5   :  { %5562 = vmatmul.mubr.msk.f32.vlgmr.msra.gmra.mrb[56].mxu0 %vm3884_vm11, %v4069_v59  ;;  %v4071_v43 = vmul.f32 %v4069_v59, %v10155_v14  ;;  %v6714_v59 = vpack.c.bf16 %v5590_v11, %v5588_v18  ;;  %v5623_v18 = vld [vmem:[%s10901_s21 + $0x360] sm:$0xff]  ;;  %v6750_v11 = vpack.c.bf16 %v5626_v35, %v5624_v47  ;;  %v4373_v47 = vld [vmem:[%s10901_s21 + $0x108] sm:$0xff]  ;;  %v4375_v35 = vld [vmem:[%s10901_s21 + $0x118] sm:$0xff] }
0x10e6   :  { %6681 = vmatpush1.bf16.msra.mxu0 %v10106_v5  ;;  %4214 = vmatprep.mubr.f32.mxu0 %v7019_v7 }
0x10e7   :  { %6683 = vmatprep.subr.bf16.mxu0 %v10108_v9  ;;  %v4072_v17 = vsub.f32 %v4070_v37, %v4071_v43  ;;  %v5587_v43 = vld [vmem:[%s10901_s21 + $0x240] sm:$0xff]  ;;  %v5589_v37 = vld [vmem:[%s10901_s21 + $0x250] sm:$0xff] }
0x10ea   :  { %6685 = vmatpush1.bf16.msra.mxu0 %v10151_v28 }
0x10ed   :  { %5563 = vmatmul.mubr.msk.f32.vlgmr.msra.gmra.mrb[58].mxu0 %vm3884_vm11, %v4072_v17  ;;  %v5592_v17 = vld [vmem:[%s10901_s21 + $0x268] sm:$0xff] }
0x10ee   :  { %4333 = vmatprep.mubr.f32.mxu0 %v7019_v7 }
0x11b8   :  { %v4142_v24 = vpop.f32.mrb[56].mxu0 }
0x11b9   :  { %v4224_v5 = vrot.slane %v4142_v24, %v8255_v55  ;;  %v4144_v44 = vpop.f32.mrb[57].mxu0  ;;  %v5594_v24 = vld [vmem:[%s10901_s21 + $0x278] sm:$0xff] }
0x11ba   :  { %v4228_v6 = vrot.slane %v4144_v44, %v8255_v55  ;;  %v6718_v44 = vpack.c.bf16 %v5594_v24, %v5592_v17 }
0x11bb   :  { %v4229_v9 = vmul.f32 %v4224_v5, %v10129_v56  ;;  %v4231_v50 = vmul.f32 %v4224_v5, %v10133_v19  ;;  %v6716_v5 = vpack.c.bf16 %v5589_v37, %v5587_v43  ;;  %v4341_v43 = vld [vmem:[%s10901_s21 + $0x8] sm:$0xff]  ;;  %v4343_v37 = vld [vmem:[%s10901_s21 + $0x18] sm:$0xff] }
0x11bc   :  { %v4230_v23 = vmul.f32 %v4228_v6, %v10131_v12  ;;  %v4232_v31 = vmul.f32 %v4228_v6, %v10137_v49  ;;  %v5591_v6 = vld [vmem:[%s10901_s21 + $0x260] sm:$0xff]  ;;  %v6754_v17 = vpack.c.bf16 %v4343_v37, %v4341_v43  ;;  %v4377_v43 = vld [vmem:[%s10901_s21 + $0x128] sm:$0xff]  ;;  %v4379_v37 = vld [vmem:[%s10901_s21 + $0x138] sm:$0xff] }
0x11c0   :  { %v4216_v2 = vpop.f32.mrb[58].mxu0 }
0x11c1   :  { %v4236_v38 = vrot.slane %v4216_v2, %v8255_v55  ;;  %v4218_v26 = vpop.f32.mrb[59].mxu0 }
0x11c2   :  { %v4240_v28 = vrot.slane %v4218_v26, %v8255_v55  ;;  %v5597_v26 = vld [vmem:[%s10901_s21 + $0x290] sm:$0xff] }
0x11c3   :  { %v4241_v1 = vadd.f32 %v4236_v38, %v4229_v9  ;;  %v4243_v14 = vadd.f32 %v4236_v38, %v4231_v50  ;;  %v5593_v9 = vld [vmem:[%s10901_s21 + $0x270] sm:$0xff]  ;;  %v5596_v50 = vld [vmem:[%s10901_s21 + $0x288] sm:$0xff]  ;;  %v5595_v38 = vld [vmem:[%s10901_s21 + $0x280] sm:$0xff] }
0x11c4   :  { %v4242_v25 = vadd.f32 %v4240_v28, %v4230_v23  ;;  %v4244_v54 = vadd.f32 %v4240_v28, %v4232_v31  ;;  %v5598_v23 = vld [vmem:[%s10901_s21 + $0x298] sm:$0xff]  ;;  %v6720_v31 = vpack.c.bf16 %v5593_v9, %v5591_v6  ;;  %v4342_v6 = vld [vmem:[%s10901_s21 + $0x10] sm:$0xff]  ;;  %v4345_v9 = vld [vmem:[%s10901_s21 + $0x28] sm:$0xff] }
0x11c5   :  { %vm4245_vm12 = vcmp.gt.f32.partialorder %v4241_v1, 0.0  ;;  %vm4247_vm13 = vcmp.gt.f32.partialorder %v4243_v14, 0.0  ;;  %v4250_v56 = vmul.f32 %v4249_v33, %v4241_v1  ;;  %v4252_v58 = vmul.f32 %v4249_v33, %v4243_v14  ;;  %v5602_v28 = vld [vmem:[%s10901_s21 + $0x2b8] sm:$0xff] }
0x11c6   :  { %vm4246_vm14 = vcmp.gt.f32.partialorder %v4242_v25, 0.0  ;;  %vm4248_vm15 = vcmp.gt.f32.partialorder %v4244_v54, 0.0  ;;  %v4251_v12 = vmul.f32 %v4249_v33, %v4242_v25  ;;  %v4253_v19 = vmul.f32 %v4249_v33, %v4244_v54  ;;  %v5600_v33 = vld [vmem:[%s10901_s21 + $0x2a8] sm:$0xff] }
0x11c7   :  { %v4254_v49 = vsel %vm4245_vm12, %v4241_v1, %v4250_v56  ;;  %v4256_v51 = vsel %vm4247_vm13, %v4243_v14, %v4252_v58  ;;  %v6722_v2 = vpack.c.bf16 %v5598_v23, %v5596_v50  ;;  %v6724_v1 = vpack.c.bf16 %v5597_v26, %v5595_v38  ;;  %v5604_v56 = vld [vmem:[%s10901_s21 + $0x2c8] sm:$0xff]  ;;  %v5606_v58 = vld [vmem:[%s10901_s21 + $0x2d8] sm:$0xff]  ;;  %v4344_v26 = vld [vmem:[%s10901_s21 + $0x20] sm:$0xff] }
0x11c8   :  { %v10224_v0 = vpack.c.bf16 %v4256_v51, %v4254_v49  ;;  %v4255_v20 = vsel %vm4246_vm14, %v4242_v25, %v4251_v12  ;;  %v4257_v36 = vsel %vm4248_vm15, %v4244_v54, %v4253_v19  ;;  %v6726_v14 = vpack.c.bf16 %v5602_v28, %v5600_v33  ;;  %v5599_v25 = vld [vmem:[%s10901_s21 + $0x2a0] sm:$0xff]  ;;  %v5601_v54 = vld [vmem:[%s10901_s21 + $0x2b0] sm:$0xff]  ;;  %v4347_v50 = vld [vmem:[%s10901_s21 + $0x38] sm:$0xff] }
0x11c9   :  { %v10226_v10 = vpack.c.bf16 %v4257_v36, %v4255_v20  ;;  %v6728_v12 = vpack.c.bf16 %v5601_v54, %v5599_v25  ;;  %v6730_v19 = vpack.c.bf16 %v5606_v58, %v5604_v56  ;;  %v5603_v49 = vld [vmem:[%s10901_s21 + $0x2c0] sm:$0xff]  ;;  %v5605_v51 = vld [vmem:[%s10901_s21 + $0x2d0] sm:$0xff]  ;;  %v5608_v20 = vld [vmem:[%s10901_s21 + $0x2e8] sm:$0xff]  ;;  %v6758_v38 = vpack.c.bf16 %v4347_v50, %v4345_v9 }
0x11ca   :  { %v5610_v36 = vld [vmem:[%s10901_s21 + $0x2f8] sm:$0xff]  ;;  %v6732_v39 = vpack.c.bf16 %v5605_v51, %v5603_v49  ;;  %v4346_v33 = vld [vmem:[%s10901_s21 + $0x30] sm:$0xff]  ;;  %v4349_v28 = vld [vmem:[%s10901_s21 + $0x48] sm:$0xff] }
0x11cb   :  { %6688 = vmatprep.subr.msk.bf16.mxu0 %vm8376_vm7, %v10226_v10  ;;  %v6734_v21 = vpack.c.bf16 %v5610_v36, %v5608_v20  ;;  %v4348_v54 = vld [vmem:[%s10901_s21 + $0x40] sm:$0xff]  ;;  %v4350_v56 = vld [vmem:[%s10901_s21 + $0x50] sm:$0xff]  ;;  %v4353_v58 = vld [vmem:[%s10901_s21 + $0x68] sm:$0xff] }
0x11cc   :  { %6691 = vmatpush1.bf16.msk.msra.mxu0 %vm8376_vm7, %v10224_v0  ;;  %v4352_v51 = vld [vmem:[%s10901_s21 + $0x60] sm:$0xff]  ;;  %v4354_v20 = vld [vmem:[%s10901_s21 + $0x70] sm:$0xff]  ;;  %v4357_v36 = vld [vmem:[%s10901_s21 + $0x88] sm:$0xff] }
0x11cd   :  { %6694 = vmatprep.subr.msk.bf16.mxu0 %vm8376_vm7, %v10226_v10  ;;  %v4381_v9 = vld [vmem:[%s10901_s21 + $0x148] sm:$0xff]  ;;  %v4383_v50 = vld [vmem:[%s10901_s21 + $0x158] sm:$0xff] }
0x11cf   :  { %5566 = vmatmul.mubr.msk.f32.vlgmr.msra.gmra.mrb[60].mxu0 %vm4259_vm3, %v4258_v22  ;;  %v5607_v22 = vld [vmem:[%s10901_s21 + $0x2e0] sm:$0xff] }
0x11d0   :  { %6697 = vmatpush1.bf16.msk.msra.mxu0 %vm8376_vm7, %v10224_v0  ;;  %4465 = vmatprep.mubr.f32.mxu0 %v7019_v7 }
0x11d1   :  { %6699 = vmatprep.subr.bf16.mxu0 %v6698_v61  ;;  %v5609_v61 = vld [vmem:[%s10901_s21 + $0x2f0] sm:$0xff] }
0x11d2   :  { %v6736_v46 = vpack.c.bf16 %v5609_v61, %v5607_v22  ;;  %v4356_v61 = vld [vmem:[%s10901_s21 + $0x80] sm:$0xff] }
0x11d3   :  { %5570 = vmatmul.mubr.msk.f32.vlgmr.msra.gmra.mrb[62].mxu0 %vm4259_vm3, %v5567_v13  ;;  %v5611_v13 = vld [vmem:[%s10901_s21 + $0x300] sm:$0xff] }
0x11d4   :  { %6701 = vmatpush1.bf16.msra.mxu0 %v6700_v57  ;;  %v5613_v57 = vld [vmem:[%s10901_s21 + $0x310] sm:$0xff] }
0x11d5   :  { %6703 = vmatprep.subr.bf16.mxu0 %v6702_v34  ;;  %v5616_v34 = vld [vmem:[%s10901_s21 + $0x328] sm:$0xff]  ;;  %v6740_v41 = vpack.c.bf16 %v5613_v57, %v5611_v13  ;;  %v4360_v57 = vld [vmem:[%s10901_s21 + $0xa0] sm:$0xff] }
0x11d6   :  { %v6742_v40 = vpack.c.bf16 %v5618_v29, %v5616_v34  ;;  %v4362_v34 = vld [vmem:[%s10901_s21 + $0xb0] sm:$0xff]  ;;  %v4365_v29 = vld [vmem:[%s10901_s21 + $0xc8] sm:$0xff] }
0x11d8   :  { %6705 = vmatpush1.bf16.msra.mxu0 %v6704_v62  ;;  %v5617_v62 = vld [vmem:[%s10901_s21 + $0x330] sm:$0xff] }
0x11d9   :  { %6707 = vmatprep.subr.bf16.mxu0 %v6706_v52  ;;  %v5620_v52 = vld [vmem:[%s10901_s21 + $0x348] sm:$0xff]  ;;  %v6744_v15 = vpack.c.bf16 %v5617_v62, %v5615_v48  ;;  %v4364_v62 = vld [vmem:[%s10901_s21 + $0xc0] sm:$0xff] }
0x11da   :  { %v6746_v4 = vpack.c.bf16 %v5622_v8, %v5620_v52  ;;  %v4366_v52 = vld [vmem:[%s10901_s21 + $0xd0] sm:$0xff]  ;;  %v4369_v8 = vld [vmem:[%s10901_s21 + $0xe8] sm:$0xff] }
0x11dc   :  { %6709 = vmatpush1.bf16.msra.mxu0 %v6708_v16  ;;  %v5621_v16 = vld [vmem:[%s10901_s21 + $0x350] sm:$0xff] }
0x11dd   :  { %6711 = vmatprep.subr.bf16.mxu0 %v6710_v45  ;;  %v6748_v45 = vpack.c.bf16 %v5621_v16, %v5619_v60  ;;  %v4368_v16 = vld [vmem:[%s10901_s21 + $0xe0] sm:$0xff] }
0x11e0   :  { %6713 = vmatpush1.bf16.msra.mxu0 %v6712_v53  ;;  %v5625_v53 = vld [vmem:[%s10901_s21 + $0x370] sm:$0xff] }
0x11e1   :  { %6715 = vmatprep.subr.bf16.mxu0 %v6714_v59  ;;  %v6752_v59 = vpack.c.bf16 %v5625_v53, %v5623_v18  ;;  %v4372_v53 = vld [vmem:[%s10901_s21 + $0x100] sm:$0xff] }
0x11e4   :  { %6717 = vmatpush1.bf16.msra.mxu0 %v6716_v5 }
0x11e5   :  { %6719 = vmatprep.subr.bf16.mxu0 %v6718_v44  ;;  %v4340_v44 = vld [vmem:[%s10901_s21] sm:$0xff] }
0x11e8   :  { %6721 = vmatpush1.bf16.msra.mxu0 %v6720_v31  ;;  %v6756_v31 = vpack.c.bf16 %v4342_v6, %v4340_v44  ;;  %v4376_v44 = vld [vmem:[%s10901_s21 + $0x120] sm:$0xff]  ;;  %v4378_v6 = vld [vmem:[%s10901_s21 + $0x130] sm:$0xff] }
0x11e9   :  { %6723 = vmatprep.subr.bf16.mxu0 %v6722_v2 }
0x11ec   :  { %6725 = vmatpush1.bf16.msra.mxu0 %v6724_v1  ;;  %v4351_v1 = vld [vmem:[%s10901_s21 + $0x58] sm:$0xff] }
0x11ed   :  { %6727 = vmatprep.subr.bf16.mxu0 %v6726_v14  ;;  %v6760_v14 = vpack.c.bf16 %v4346_v33, %v4344_v26  ;;  %v6762_v25 = vpack.c.bf16 %v4351_v1, %v4349_v28  ;;  %v4385_v26 = vld [vmem:[%s10901_s21 + $0x168] sm:$0xff]  ;;  %v4387_v33 = vld [vmem:[%s10901_s21 + $0x178] sm:$0xff] }
0x11ee   :  { %v6798_v1 = vpack.c.bf16 %v4387_v33, %v4385_v26  ;;  %v5659_v26 = vld [vmem:[%s10901_s21 + $0x450] sm:$0xff]  ;;  %v5662_v33 = vld [vmem:[%s10901_s21 + $0x468] sm:$0xff] }
0x11f0   :  { %6729 = vmatpush1.bf16.msra.mxu0 %v6728_v12  ;;  %v4355_v12 = vld [vmem:[%s10901_s21 + $0x78] sm:$0xff] }
0x11f1   :  { %6731 = vmatprep.subr.bf16.mxu0 %v6730_v19  ;;  %v6764_v19 = vpack.c.bf16 %v4350_v56, %v4348_v54  ;;  %v6766_v49 = vpack.c.bf16 %v4355_v12, %v4353_v58  ;;  %v4389_v54 = vld [vmem:[%s10901_s21 + $0x188] sm:$0xff]  ;;  %v4391_v56 = vld [vmem:[%s10901_s21 + $0x198] sm:$0xff] }
0x11f2   :  { %v6802_v12 = vpack.c.bf16 %v4391_v56, %v4389_v54  ;;  %v5663_v54 = vld [vmem:[%s10901_s21 + $0x470] sm:$0xff]  ;;  %v5666_v56 = vld [vmem:[%s10901_s21 + $0x488] sm:$0xff] }
0x11f4   :  { %6733 = vmatpush1.bf16.msra.mxu0 %v6732_v39  ;;  %v4359_v39 = vld [vmem:[%s10901_s21 + $0x98] sm:$0xff] }
0x11f5   :  { %6735 = vmatprep.subr.bf16.mxu0 %v6734_v21  ;;  %v6768_v21 = vpack.c.bf16 %v4354_v20, %v4352_v51  ;;  %v6770_v22 = vpack.c.bf16 %v4359_v39, %v4357_v36  ;;  %v4393_v51 = vld [vmem:[%s10901_s21 + $0x1a8] sm:$0xff]  ;;  %v4395_v20 = vld [vmem:[%s10901_s21 + $0x1b8] sm:$0xff] }
0x11f6   :  { %v6806_v39 = vpack.c.bf16 %v4395_v20, %v4393_v51  ;;  %v5667_v51 = vld [vmem:[%s10901_s21 + $0x490] sm:$0xff]  ;;  %v5670_v20 = vld [vmem:[%s10901_s21 + $0x4a8] sm:$0xff] }
0x11f8   :  { %6737 = vmatpush1.bf16.msra.mxu0 %v6736_v46  ;;  %v4363_v46 = vld [vmem:[%s10901_s21 + $0xb8] sm:$0xff] }
0x11f9   :  { %6739 = vmatprep.subr.bf16.mxu0 %v6738_v63  ;;  %v6772_v63 = vpack.c.bf16 %v4358_v30, %v4356_v61  ;;  %v6774_v13 = vpack.c.bf16 %v4363_v46, %v4361_v3  ;;  %v5634_v30 = vld [vmem:[%s10901_s21 + $0x388] sm:$0xff]  ;;  %v5636_v3 = vld [vmem:[%s10901_s21 + $0x398] sm:$0xff] }
0x11fa   :  { %v6816_v46 = vpack.c.bf16 %v5636_v3, %v5634_v30  ;;  %v5674_v30 = vld [vmem:[%s10901_s21 + $0x4c8] sm:$0xff]  ;;  %v5676_v3 = vld [vmem:[%s10901_s21 + $0x4d8] sm:$0xff] }
0x11fc   :  { %6741 = vmatpush1.bf16.msra.mxu0 %v6740_v41  ;;  %v4367_v41 = vld [vmem:[%s10901_s21 + $0xd8] sm:$0xff] }
0x11fd   :  { %6743 = vmatprep.subr.bf16.mxu0 %v6742_v40  ;;  %v6776_v40 = vpack.c.bf16 %v4362_v34, %v4360_v57  ;;  %v6778_v48 = vpack.c.bf16 %v4367_v41, %v4365_v29  ;;  %v5638_v57 = vld [vmem:[%s10901_s21 + $0x3a8] sm:$0xff]  ;;  %v5640_v34 = vld [vmem:[%s10901_s21 + $0x3b8] sm:$0xff] }
0x11fe   :  { %v6820_v41 = vpack.c.bf16 %v5640_v34, %v5638_v57  ;;  %v5675_v57 = vld [vmem:[%s10901_s21 + $0x4d0] sm:$0xff]  ;;  %v5678_v34 = vld [vmem:[%s10901_s21 + $0x4e8] sm:$0xff] }
0x1200   :  { %6745 = vmatpush1.bf16.msra.mxu0 %v6744_v15  ;;  %v4371_v15 = vld [vmem:[%s10901_s21 + $0xf8] sm:$0xff] }
0x1201   :  { %6747 = vmatprep.subr.bf16.mxu0 %v6746_v4  ;;  %v6780_v4 = vpack.c.bf16 %v4366_v52, %v4364_v62  ;;  %v6782_v60 = vpack.c.bf16 %v4371_v15, %v4369_v8  ;;  %v5641_v52 = vld [vmem:[%s10901_s21 + $0x3c0] sm:$0xff]  ;;  %v5643_v8 = vld [vmem:[%s10901_s21 + $0x3d0] sm:$0xff]  ;;  %v5646_v15 = vld [vmem:[%s10901_s21 + $0x3e8] sm:$0xff] }
0x1204   :  { %6749 = vmatpush1.bf16.msra.mxu0 %v6748_v45  ;;  %v4370_v45 = vld [vmem:[%s10901_s21 + $0xf0] sm:$0xff] }
0x1205   :  { %6751 = vmatprep.subr.bf16.mxu0 %v6750_v11  ;;  %v6784_v18 = vpack.c.bf16 %v4370_v45, %v4368_v16  ;;  %v6786_v11 = vpack.c.bf16 %v4375_v35, %v4373_v47  ;;  %v5645_v45 = vld [vmem:[%s10901_s21 + $0x3e0] sm:$0xff]  ;;  %v5647_v47 = vld [vmem:[%s10901_s21 + $0x3f0] sm:$0xff]  ;;  %v5650_v35 = vld [vmem:[%s10901_s21 + $0x408] sm:$0xff] }
0x1208   :  { %6753 = vmatpush1.bf16.msra.mxu0 %v6752_v59  ;;  %v4374_v59 = vld [vmem:[%s10901_s21 + $0x110] sm:$0xff] }
0x1209   :  { %6755 = vmatprep.subr.bf16.mxu0 %v6754_v17  ;;  %v6788_v17 = vpack.c.bf16 %v4374_v59, %v4372_v53  ;;  %v5649_v59 = vld [vmem:[%s10901_s21 + $0x400] sm:$0xff] }
0x12a2   :  { %v10423_v24 = vpop.f32.mrb[60].mxu0 }
0x12a3   :  { %v4337_v5 = vpop.f32.mrb[61].mxu0 }
0x12a6   :  { %v4467_v23 = vpop.f32.mrb[62].mxu0 }
0x12a7   :  { %v4469_v2 = vpop.f32.mrb[63].mxu0 }
0x12a8   :  { %5627 = vmatprep.mubr.msk.f32.mxu0 %vm3799_vm10, %v4469_v2  ;;  %v4380_v2 = vld [vmem:[%s10901_s21 + $0x140] sm:$0xff] }
0x12a9   :  { %4597 = vmatmul.mubr.f32.vlgmr.msra.gmra.mrb[64].mxu0 %v4467_v23  ;;  %v6792_v23 = vpack.c.bf16 %v4378_v6, %v4376_v44  ;;  %v5653_v6 = vld [vmem:[%s10901_s21 + $0x420] sm:$0xff] }
0x12aa   :  { %6757 = vmatpush1.bf16.msra.mxu0 %v6756_v31  ;;  %5628 = vmatprep.mubr.msk.f32.mxu0 %vm3799_vm10, %v4337_v5  ;;  %v6790_v5 = vpack.c.bf16 %v4379_v37, %v4377_v43  ;;  %v6794_v31 = vpack.c.bf16 %v4383_v50, %v4381_v9  ;;  %v5651_v43 = vld [vmem:[%s10901_s21 + $0x410] sm:$0xff]  ;;  %v5654_v37 = vld [vmem:[%s10901_s21 + $0x428] sm:$0xff] }
0x12ab   :  { %6759 = vmatprep.subr.bf16.mxu0 %v6758_v38  ;;  %v4382_v38 = vld [vmem:[%s10901_s21 + $0x150] sm:$0xff]  ;;  %v5658_v50 = vld [vmem:[%s10901_s21 + $0x448] sm:$0xff] }
0x12ac   :  { %v6796_v28 = vpack.c.bf16 %v4382_v38, %v4380_v2  ;;  %v5655_v9 = vld [vmem:[%s10901_s21 + $0x430] sm:$0xff]  ;;  %v5657_v38 = vld [vmem:[%s10901_s21 + $0x440] sm:$0xff] }
0x12ae   :  { %6761 = vmatpush1.bf16.msra.mxu0 %v6760_v14  ;;  %v4384_v14 = vld [vmem:[%s10901_s21 + $0x160] sm:$0xff] }
0x12af   :  { %6763 = vmatprep.subr.bf16.mxu0 %v6762_v25  ;;  %v4386_v25 = vld [vmem:[%s10901_s21 + $0x170] sm:$0xff] }
0x12b0   :  { %v6800_v58 = vpack.c.bf16 %v4386_v25, %v4384_v14  ;;  %v5661_v25 = vld [vmem:[%s10901_s21 + $0x460] sm:$0xff] }
0x12b2   :  { %6765 = vmatpush1.bf16.msra.mxu0 %v6764_v19  ;;  %v4388_v19 = vld [vmem:[%s10901_s21 + $0x180] sm:$0xff] }
0x12b3   :  { %6767 = vmatprep.subr.bf16.mxu0 %v6766_v49  ;;  %v4390_v49 = vld [vmem:[%s10901_s21 + $0x190] sm:$0xff] }
0x12b4   :  { %v6804_v36 = vpack.c.bf16 %v4390_v49, %v4388_v19  ;;  %v5665_v49 = vld [vmem:[%s10901_s21 + $0x480] sm:$0xff] }
0x12b6   :  { %6769 = vmatpush1.bf16.msra.mxu0 %v6768_v21  ;;  %v4392_v21 = vld [vmem:[%s10901_s21 + $0x1a0] sm:$0xff] }
0x12b7   :  { %6771 = vmatprep.subr.bf16.mxu0 %v6770_v22  ;;  %v4394_v22 = vld [vmem:[%s10901_s21 + $0x1b0] sm:$0xff] }
0x12b8   :  { %v6808_v61 = vpack.c.bf16 %v4394_v22, %v4392_v21  ;;  %v5669_v22 = vld [vmem:[%s10901_s21 + $0x4a0] sm:$0xff] }
0x12ba   :  { %6773 = vmatpush1.bf16.msra.mxu0 %v6772_v63  ;;  %v5633_v63 = vld [vmem:[%s10901_s21 + $0x380] sm:$0xff] }
0x12bb   :  { %6775 = vmatprep.subr.bf16.mxu0 %v6774_v13  ;;  %v5635_v13 = vld [vmem:[%s10901_s21 + $0x390] sm:$0xff] }
0x12bc   :  { %v6818_v29 = vpack.c.bf16 %v5635_v13, %v5633_v63  ;;  %v6856_v63 = vpack.c.bf16 %v5676_v3, %v5674_v30  ;;  %v5673_v13 = vld [vmem:[%s10901_s21 + $0x4c0] sm:$0xff]  ;;  %v4931_v3 = vld [vmem:[%s10903_s23 + $0xb8] sm:$0xff] }
0x12be   :  { %6777 = vmatpush1.bf16.msra.mxu0 %v6776_v40  ;;  %v5637_v40 = vld [vmem:[%s10901_s21 + $0x3a0] sm:$0xff] }
0x12bf   :  { %6779 = vmatprep.subr.bf16.mxu0 %v6778_v48 }
0x12c2   :  { %6781 = vmatpush1.bf16.msra.mxu0 %v6780_v4  ;;  %v5648_v4 = vld [vmem:[%s10901_s21 + $0x3f8] sm:$0xff] }
0x12c3   :  { %6783 = vmatprep.subr.bf16.mxu0 %v6782_v60  ;;  %v6826_v60 = vpack.c.bf16 %v5643_v8, %v5641_v52  ;;  %v6828_v16 = vpack.c.bf16 %v5648_v4, %v5646_v15  ;;  %v5681_v52 = vld [vmem:[%s10901_s21 + $0x500] sm:$0xff]  ;;  %v5683_v8 = vld [vmem:[%s10901_s21 + $0x510] sm:$0xff]  ;;  %v5686_v15 = vld [vmem:[%s10901_s21 + $0x528] sm:$0xff] }
0x12c4   :  { %v5688_v4 = vld [vmem:[%s10901_s21 + $0x538] sm:$0xff] }
0x12c6   :  { %6785 = vmatpush1.bf16.msra.mxu0 %v6784_v18  ;;  %v5652_v18 = vld [vmem:[%s10901_s21 + $0x418] sm:$0xff] }
0x12c7   :  { %6787 = vmatprep.subr.bf16.mxu0 %v6786_v11  ;;  %v6830_v11 = vpack.c.bf16 %v5647_v47, %v5645_v45  ;;  %v6832_v53 = vpack.c.bf16 %v5652_v18, %v5650_v35  ;;  %v5685_v45 = vld [vmem:[%s10901_s21 + $0x520] sm:$0xff]  ;;  %v5687_v47 = vld [vmem:[%s10901_s21 + $0x530] sm:$0xff] }
0x12c8   :  { %v6870_v35 = vpack.c.bf16 %v5687_v47, %v5685_v45  ;;  %v4908_v18 = vld [vmem:[%s10903_s23] sm:$0xff] }
0x12ca   :  { %6789 = vmatpush1.bf16.msra.mxu0 %v6788_v17  ;;  %v5656_v17 = vld [vmem:[%s10901_s21 + $0x438] sm:$0xff] }
0x12cb   :  { %6791 = vmatprep.subr.bf16.mxu0 %v6790_v5  ;;  %v6834_v5 = vpack.c.bf16 %v5651_v43, %v5649_v59  ;;  %v6836_v44 = vpack.c.bf16 %v5656_v17, %v5654_v37  ;;  %v4911_v43 = vld [vmem:[%s10903_s23 + $0x18] sm:$0xff]  ;;  %v4912_v17 = vld [vmem:[%s10903_s23 + $0x20] sm:$0xff] }
0x12ce   :  { %6793 = vmatpush1.bf16.msra.mxu0 %v6792_v23  ;;  %v5660_v23 = vld [vmem:[%s10901_s21 + $0x458] sm:$0xff] }
0x12cf   :  { %6795 = vmatprep.subr.bf16.mxu0 %v6794_v31  ;;  %v6838_v31 = vpack.c.bf16 %v5655_v9, %v5653_v6  ;;  %v6840_v2 = vpack.c.bf16 %v5660_v23, %v5658_v50  ;;  %v4914_v6 = vld [vmem:[%s10903_s23 + $0x30] sm:$0xff]  ;;  %v4915_v9 = vld [vmem:[%s10903_s23 + $0x38] sm:$0xff]  ;;  %v4916_v23 = vld [vmem:[%s10903_s23 + $0x40] sm:$0xff] }
0x12d0   :  { %v6882_v50 = vpack.c.bf16 %v4915_v9, %v4914_v6 }
0x12d2   :  { %6797 = vmatpush1.bf16.msra.mxu0 %v6796_v28  ;;  %v5664_v28 = vld [vmem:[%s10901_s21 + $0x478] sm:$0xff] }
0x12d3   :  { %6799 = vmatprep.subr.bf16.mxu0 %v6798_v1  ;;  %v6842_v1 = vpack.c.bf16 %v5659_v26, %v5657_v38  ;;  %v6844_v14 = vpack.c.bf16 %v5664_v28, %v5662_v33  ;;  %v4918_v38 = vld [vmem:[%s10903_s23 + $0x50] sm:$0xff]  ;;  %v4919_v26 = vld [vmem:[%s10903_s23 + $0x58] sm:$0xff]  ;;  %v4920_v28 = vld [vmem:[%s10903_s23 + $0x60] sm:$0xff] }
0x12d4   :  { %v6888_v33 = vpack.c.bf16 %v4919_v26, %v4918_v38 }
0x12d6   :  { %6801 = vmatpush1.bf16.msra.mxu0 %v6800_v58  ;;  %v5668_v58 = vld [vmem:[%s10901_s21 + $0x498] sm:$0xff] }
0x12d7   :  { %6803 = vmatprep.subr.bf16.mxu0 %v6802_v12  ;;  %v6846_v12 = vpack.c.bf16 %v5663_v54, %v5661_v25  ;;  %v6848_v19 = vpack.c.bf16 %v5668_v58, %v5666_v56  ;;  %v4922_v25 = vld [vmem:[%s10903_s23 + $0x70] sm:$0xff]  ;;  %v4923_v54 = vld [vmem:[%s10903_s23 + $0x78] sm:$0xff]  ;;  %v4924_v58 = vld [vmem:[%s10903_s23 + $0x80] sm:$0xff] }
0x12d8   :  { %v6894_v56 = vpack.c.bf16 %v4923_v54, %v4922_v25 }
0x12da   :  { %6805 = vmatpush1.bf16.msra.mxu0 %v6804_v36  ;;  %v5672_v36 = vld [vmem:[%s10901_s21 + $0x4b8] sm:$0xff] }
0x12db   :  { %6807 = vmatprep.subr.bf16.mxu0 %v6806_v39  ;;  %v6850_v39 = vpack.c.bf16 %v5667_v51, %v5665_v49  ;;  %v6852_v21 = vpack.c.bf16 %v5672_v36, %v5670_v20  ;;  %v4926_v49 = vld [vmem:[%s10903_s23 + $0x90] sm:$0xff]  ;;  %v4927_v51 = vld [vmem:[%s10903_s23 + $0x98] sm:$0xff] }
0x12dc   :  { %v6900_v20 = vpack.c.bf16 %v4927_v51, %v4926_v49 }
0x12de   :  { %6809 = vmatpush1.bf16.msra.mxu0 %v6808_v61  ;;  %v5671_v61 = vld [vmem:[%s10901_s21 + $0x4b0] sm:$0xff] }
0x12df   :  { %6812 = vmatprep.subr.msk.bf16.mxu0 %vm8376_vm7, %v10226_v10  ;;  %v5629_v10 = vld [vmem:[%s10900_s20 + $0x10] sm:$0x3f] }
0x12e1   :  { %4671 = vmatmul.mubr.f32.vlgmr.msra.gmra.mrb[64].mxu0 %v10423_v24  ;;  %v5639_v24 = vld [vmem:[%s10901_s21 + $0x3b0] sm:$0xff] }
0x12e2   :  { %6815 = vmatpush1.bf16.msk.msra.mxu0 %vm8376_vm7, %v10224_v0  ;;  %4746 = vmatprep.mubr.f32.mxu0 %v7019_v7  ;;  %v5644_v0 = vld [vmem:[%s10901_s21 + $0x3d8] sm:$0xff]  ;;  %v6822_v48 = vpack.c.bf16 %v5639_v24, %v5637_v40  ;;  %v5677_v40 = vld [vmem:[%s10901_s21 + $0x4e0] sm:$0xff]  ;;  %v5679_v24 = vld [vmem:[%s10901_s21 + $0x4f0] sm:$0xff] }
0x12e3   :  { %6817 = vmatprep.subr.bf16.mxu0 %v6816_v46  ;;  %v6824_v62 = vpack.c.bf16 %v5644_v0, %v5642_v27  ;;  %v6854_v46 = vpack.c.bf16 %v5671_v61, %v5669_v22  ;;  %v5682_v27 = vld [vmem:[%s10901_s21 + $0x508] sm:$0xff]  ;;  %v5684_v0 = vld [vmem:[%s10901_s21 + $0x518] sm:$0xff]  ;;  %v4930_v61 = vld [vmem:[%s10903_s23 + $0xb0] sm:$0xff] }
0x12e4   :  { %v4929_v22 = vld [vmem:[%s10903_s23 + $0xa8] sm:$0xff] }
0x12e5   :  { %5632 = vmatmul.mubr.msk.f32.vlgmr.msra.gmra.mrb[66].mxu0 %vm4259_vm3, %v5629_v10  ;;  %v5680_v10 = vld [vmem:[%s10901_s21 + $0x4f8] sm:$0xff] }
0x12e6   :  { %6819 = vmatpush1.bf16.msra.mxu0 %v6818_v29  ;;  %v6858_v29 = vpack.c.bf16 %v5675_v57, %v5673_v13  ;;  %v4894_v13 = vsub.s32 1, %v8252_v42  ;;  %v5005_v42 = vld [vmem:[%s10905_s25] sm:$0x3] }
0x12e7   :  { %6821 = vmatprep.subr.bf16.mxu0 %v6820_v41  ;;  %v6860_v41 = vpack.c.bf16 %v5680_v10, %v5678_v34 }
0x12ea   :  { %6823 = vmatpush1.bf16.msra.mxu0 %v6822_v48  ;;  %v6862_v48 = vpack.c.bf16 %v5679_v24, %v5677_v40 }
0x12eb   :  { %6825 = vmatprep.subr.bf16.mxu0 %v6824_v62  ;;  %v6864_v62 = vpack.c.bf16 %v5684_v0, %v5682_v27 }
0x12ee   :  { %6827 = vmatpush1.bf16.msra.mxu0 %v6826_v60  ;;  %v6866_v60 = vpack.c.bf16 %v5683_v8, %v5681_v52  ;;  %v5692_v52 = vld [vmem:[%s10904_s24] ss:$0 sm:$0xff] }
0x12ef   :  { %6829 = vmatprep.subr.bf16.mxu0 %v6828_v16  ;;  %v6868_v16 = vpack.c.bf16 %v5688_v4, %v5686_v15 }
0x12f2   :  { %6831 = vmatpush1.bf16.msra.mxu0 %v6830_v11  ;;  %v4909_v11 = vld [vmem:[%s10903_s23 + $0x8] sm:$0xff] }
0x12f3   :  { %6833 = vmatprep.subr.bf16.mxu0 %v6832_v53  ;;  %v4910_v53 = vld [vmem:[%s10903_s23 + $0x10] sm:$0xff]  ;;  %v6873_v59 = vpack.c.bf16 %v4909_v11, %v4908_v18 }
0x12f4   :  { %v6876_v37 = vpack.c.bf16 %v4911_v43, %v4910_v53 }
0x12f5   :  { %6874 = vmatpush1.bf16.msra.mxu1 %v6873_v59 }
0x12f6   :  { %6835 = vmatpush1.bf16.msra.mxu0 %v6834_v5  ;;  %6875 = vmatprep.subr.bf16.mxu1 %v7020_v32  ;;  %v4913_v5 = vld [vmem:[%s10903_s23 + $0x28] sm:$0xff] }
0x12f7   :  { %6837 = vmatprep.subr.bf16.mxu0 %v6836_v44  ;;  %v6879_v44 = vpack.c.bf16 %v4913_v5, %v4912_v17 }
0x12f9   :  { %6877 = vmatpush1.bf16.msra.mxu1 %v6876_v37 }
0x12fa   :  { %6839 = vmatpush1.bf16.msra.mxu0 %v6838_v31  ;;  %6878 = vmatprep.subr.bf16.mxu1 %v7020_v32  ;;  %v4917_v31 = vld [vmem:[%s10903_s23 + $0x48] sm:$0xff] }
0x12fb   :  { %6841 = vmatprep.subr.bf16.mxu0 %v6840_v2  ;;  %v6885_v2 = vpack.c.bf16 %v4917_v31, %v4916_v23 }
0x12fd   :  { %6880 = vmatpush1.bf16.msra.mxu1 %v6879_v44 }
0x12fe   :  { %6843 = vmatpush1.bf16.msra.mxu0 %v6842_v1  ;;  %6881 = vmatprep.subr.bf16.mxu1 %v7020_v32  ;;  %v4921_v1 = vld [vmem:[%s10903_s23 + $0x68] sm:$0xff] }
0x12ff   :  { %6845 = vmatprep.subr.bf16.mxu0 %v6844_v14  ;;  %v6891_v14 = vpack.c.bf16 %v4921_v1, %v4920_v28 }
0x1301   :  { %6883 = vmatpush1.bf16.msra.mxu1 %v6882_v50 }
0x1302   :  { %6847 = vmatpush1.bf16.msra.mxu0 %v6846_v12  ;;  %6884 = vmatprep.subr.bf16.mxu1 %v7020_v32  ;;  %v4925_v12 = vld [vmem:[%s10903_s23 + $0x88] sm:$0xff] }
0x1303   :  { %6849 = vmatprep.subr.bf16.mxu0 %v6848_v19  ;;  %v6897_v19 = vpack.c.bf16 %v4925_v12, %v4924_v58 }
0x1305   :  { %6886 = vmatpush1.bf16.msra.mxu1 %v6885_v2 }
0x1306   :  { %6851 = vmatpush1.bf16.msra.mxu0 %v6850_v39  ;;  %6887 = vmatprep.subr.bf16.mxu1 %v7020_v32 }
0x1307   :  { %6853 = vmatprep.subr.bf16.mxu0 %v6852_v21  ;;  %v4928_v21 = vld [vmem:[%s10903_s23 + $0xa0] sm:$0xff] }
0x1308   :  { %v6903_v30 = vpack.c.bf16 %v4929_v22, %v4928_v21 }
0x1309   :  { %6889 = vmatpush1.bf16.msra.mxu1 %v6888_v33 }
0x130a   :  { %6855 = vmatpush1.bf16.msra.mxu0 %v6854_v46  ;;  %6890 = vmatprep.subr.bf16.mxu1 %v7020_v32  ;;  %v6906_v46 = vpack.c.bf16 %v4931_v3, %v4930_v61 }
0x130b   :  { %6857 = vmatprep.subr.bf16.mxu0 %v6856_v63  ;;  %v4886_v63 = vld [vmem:[%s10902_s22] sm:$0x3] }
0x130c   :  { %v4891_v57 = vrot.slane %v4886_v63, %v8255_v55  ;;  %v4895_v34 = vrot.slane %v4886_v63, %v4894_v13 }
0x130d   :  { %6892 = vmatpush1.bf16.msra.mxu1 %v6891_v14 }
0x130e   :  { %6859 = vmatpush1.bf16.msra.mxu0 %v6858_v29  ;;  %6893 = vmatprep.subr.bf16.mxu1 %v7020_v32  ;;  %v4903_v29 = vstv %s5690_s8 }
0x130f   :  { %6861 = vmatprep.subr.bf16.mxu0 %v6860_v41 }
0x1311   :  { %6895 = vmatpush1.bf16.msra.mxu1 %v6894_v56 }
0x1312   :  { %6863 = vmatpush1.bf16.msra.mxu0 %v6862_v48  ;;  %6896 = vmatprep.subr.bf16.mxu1 %v7020_v32 }
0x1313   :  { %6865 = vmatprep.subr.bf16.mxu0 %v6864_v62 }
0x1315   :  { %6898 = vmatpush1.bf16.msra.mxu1 %v6897_v19 }
0x1316   :  { %6867 = vmatpush1.bf16.msra.mxu0 %v6866_v60  ;;  %6899 = vmatprep.subr.bf16.mxu1 %v7020_v32 }
0x1317   :  { %6869 = vmatprep.subr.bf16.mxu0 %v6868_v16 }
0x1319   :  { %6901 = vmatpush1.bf16.msra.mxu1 %v6900_v20 }
0x131a   :  { %6871 = vmatpush1.bf16.msra.mxu0 %v6870_v35  ;;  %6902 = vmatprep.subr.bf16.mxu1 %v7020_v32 }
0x131d   :  { %6904 = vmatpush1.bf16.msra.mxu1 %v6903_v30 }
0x131e   :  { %6905 = vmatprep.subr.bf16.mxu1 %v7020_v32 }
0x1321   :  { %6907 = vmatpush1.bf16.msra.mxu1 %v6906_v46 }
0x1322   :  { %5697 = vmatprep.subr.mxu1 %v7019_v7 }
0x13b8   :  { %v4748_v36 = vpop.f32.mrb[66].mxu0 }
0x13b9   :  { %v4750_v39 = vpop.f32.mrb[67].mxu0 }
0x13ba   :  { %5689 = vmatprep.mubr.msk.f32.mxu0 %vm3799_vm10, %v4750_v39 }
0x13bb   :  { %4878 = vmatmul.mubr.f32.vlgmr.msra.gmra.mrb[64].mxu0 %v4748_v36 }
0x148e   :  { %v4879_v10 = vpop.f32.mrb[64].mxu0 }
0x148f   :  { %v4898_v41 = vadd.f32 %v4891_v57, %v4879_v10  ;;  %v4881_v40 = vpop.f32.mrb[65].mxu0 }
0x1490   :  { %v4899_v24 = vadd.f32 %v4895_v34, %v4881_v40 }
0x1491   :  { %v4904_v27 = vmul.f32 %v4903_v29, %v4898_v41  ;;  %vm4901_vm7 = vcmp.gt.f32.partialorder %v4898_v41, 0.0 }
0x1492   :  { %vm4902_vm4 = vcmp.gt.f32.partialorder %v4899_v24, 0.0  ;;  %v4905_v32 = vmul.f32 %v4903_v29, %v4899_v24 }
0x1493   :  { %v4906_v48 = vsel %vm4901_vm7, %v4898_v41, %v4904_v27 }
0x1494   :  { %v4907_v0 = vsel %vm4902_vm4, %v4899_v24, %v4905_v32 }
0x1495   :  { %5691 = vmatprep.mubr.msk.f32.mxu1 %vm469_vm0, %v4907_v0 }
0x1496   :  { %5000 = vmatmul.mubr.f32.vlgmr.msra.gmra.mrb[82].mxu1 %v4906_v48 }
0x1497   :  { %5699 = vmatprep.mubr.msk.f32.mxu1 %vm7022_vm5, %v7019_v7 }
0x1569   :  { %v5001_v55 = vpop.f32.mrb[82].mxu1 }
0x156a   :  { %v5003_v62 = vpop.f32.mrb[83].mxu1  ;;  %5698 = vmatpush3.msk.msra.mxu1 %vm1108_vm2, %v5001_v55 }
0x156b   :  { %5700 = vmatmul.mubr.msk.f32.vlgmr.msra.gmra.mrb[84].mxu1 %vm5013_vm6, %v5005_v42 }
0x163e   :  { %v5086_v8 = vpop.f32.mrb[84].mxu1 }
0x163f   :  { %v5087_v15 = vadd.f32 %v5692_v52, %v5086_v8  ;;  %v5701_v4 = vpop.f32.mrb[85].mxu1 }
0x1641   :  { %v5090_v7 = vmax.f32 %v5087_v15, 0.0 }
0x1643   :  { %5091 = vst [vmem:[#allocation5] sm:$0x3] %v5090_v7 }
0x1644   :  { %7003 = shalt.err (!%p7000_p9)
}
0x1645   :  { %s7004_s6 = scalar_lea.hbm %s10906_s26, 32 }
0x1646   :  { %p7005_p10 = scmp.ne.s32.totalorder %s10906_s26, %s7004_s6  ;;  %p7008_p11 = scmp.lt.u32.totalorder %s7004_s6, %s10906_s26 }
0x1648   :  { %p7010_p12 = pnand %p7008_p11, %p7005_p10 }
0x164a   :  { %7013 = shalt.err (!%p7010_p12)
}
0x164b   :  { %5101 = dma.vmem_to_hbm [thread:$0]  %s5099_s2, 32, %s10906_s26, [#allocation3]  }
0x164c   :  { %7016 = dma.done.wait [#allocation3], 32  }
0x164d   :  { %7017 = vsyncadd [#allocation3], 4294967264 }
0x164e   :  { %5105 = vsyncpa [#allocation3], 1 }
0x164f   :  { %5106 = vsyncpa [#allocation4], 1 }

</bundles_post_ra>
